<compile_context>
chip_gen: v7x
topology: tpu7x:2x2x1
jax: 0.10.0
libtpu: 0.0.40
codegen_flags: <defaults>
</compile_context>

<pallas_src>
import jax
import jax.numpy as jnp
from jax import lax
from jax.experimental import pallas as pl
from jax.experimental.pallas import tpu as pltpu

LEAKY_SLOPE = 0.01            # nn.LeakyReLU default
LANES = 128
CHUNK = 16                    # rows per register-resident sub-tile ((16,128) f32 = 2 vregs)
MAX_BLOCK_ROWS = 256          # cap block so padding waste is bounded and VMEM stays tiny
D1, D2, D3, D4 = 16, 8, 4, 1  # MLP widths


def _leaky(v):
    # Identical to where(v > 0, v, a*v) for 0 < a < 1; one fewer VALU op.
    return jnp.maximum(v, LEAKY_SLOPE * v)


def loss_approx_kernel(w1, b1, w2, b2, w3, b3, w4, b4, x_ref, o_ref):
    # x_ref / o_ref: (block_rows, 128) f32 VMEM tiles, batch on lanes.
    # w*/b*: flattened 1-D f32 arrays in SMEM, read as scalars (free broadcast).
    block_rows = x_ref.shape[0]
    n_chunks = block_rows // CHUNK

    def chunk_body(c, carry):
        r = c * CHUNK
        if not isinstance(r, int):
            r = pl.multiple_of(r, CHUNK)

        lx = jnp.log(x_ref[pl.ds(r, CHUNK), :])          # EUP

        # Layers 1+2 fused: each h1_j is consumed into all 8 layer-2 accumulators
        # immediately, so h1 never exists as a full array (keeps live set in vregs).
        acc2 = [None] * D2
        for j in range(D1):
            h1j = _leaky(lx * w1[j] + b1[j])
            for k in range(D2):
                t = h1j * w2[j * D2 + k]
                acc2[k] = t if acc2[k] is None else acc2[k] + t
        h2 = [_leaky(acc2[k] + b2[k]) for k in range(D2)]

        # Layer 3: 8 -> 4
        h3 = []
        for m in range(D3):
            acc = h2[0] * w3[0 * D3 + m]
            for k in range(1, D2):
                acc = acc + h2[k] * w3[k * D3 + m]
            h3.append(_leaky(acc + b3[m]))

        # Layer 4: 4 -> 1 (no activation)
        z = h3[0] * w4[0]
        for m in range(1, D3):
            z = z + h3[m] * w4[m]
        z = z + b4[0]

        # sigmoid(z) = 1 / (1 + exp(-z)); approx reciprocal -> EUP vrcp (frees VALU)
        o_ref[pl.ds(r, CHUNK), :] = pl.reciprocal(1.0 + jnp.exp(-z), approx=True)
        return carry

    if n_chunks == 1:
        chunk_body(0, 0)
    else:
        # Light unroll: gives the scheduler two chunks of visibility while keeping
        # peak register pressure well under the 64-vreg file.
        lax.fori_loop(0, n_chunks, chunk_body, 0, unroll=2)


def _round_up(a, m):
    return (a + m - 1) // m * m


def _choose_blocking(rows):
    """Pick (block_rows, num_blocks): bounded padding waste, >=2 grid steps when
    there is enough work (so both v7x TensorCores get a share)."""
    rows = max(rows, 1)
    num_blocks = pl.cdiv(rows, MAX_BLOCK_ROWS)
    if rows >= 2 * CHUNK:
        num_blocks = max(num_blocks, 2)
    block_rows = _round_up(pl.cdiv(rows, num_blocks), CHUNK)
    num_blocks = pl.cdiv(rows, block_rows)
    return block_rows, num_blocks


def _mlp_pallas(x2d, flat_params, block_rows, num_blocks):
    rows_pad = block_rows * num_blocks
    smem = pl.BlockSpec(memory_space=pltpu.MemorySpace.SMEM)
    tile = pl.BlockSpec((block_rows, LANES), lambda i: (i, 0))
    return pl.pallas_call(
        loss_approx_kernel,
        out_shape=jax.ShapeDtypeStruct((rows_pad, LANES), jnp.float32),
        grid=(num_blocks,),
        in_specs=[smem] * 8 + [tile],
        out_specs=tile,
        compiler_params=pltpu.CompilerParams(
            dimension_semantics=("parallel",),   # shards grid across TCs on v7x
            vmem_limit_bytes=32 * 1024 * 1024,   # safe on 64 MiB v7x, tiny working set
        ),
    )(*flat_params, x2d)


@jax.jit
def loss_approximator_forward(x, params):
    """x: (B, 1) float32. Returns (B, 1) float32, matching the PyTorch module."""
    (w1, b1), (w2, b2), (w3, b3), (w4, b4) = params
    B = x.shape[0]

    flat_params = (w1.reshape(-1), b1.reshape(-1),
                   w2.reshape(-1), b2.reshape(-1),
                   w3.reshape(-1), b3.reshape(-1),
                   w4.reshape(-1), b4.reshape(-1))

    # Lane-dense layout: batch goes on the 128-lane axis.
    rows = pl.cdiv(max(B, 1), LANES)
    block_rows, num_blocks = _choose_blocking(rows)
    rows_pad = block_rows * num_blocks
    b_pad = rows_pad * LANES

    x_flat = x.reshape(-1).astype(jnp.float32)
    # Pad with 1.0 so log() of the padding is benign; padded outputs are discarded.
    x_pad = jnp.pad(x_flat, (0, b_pad - B), constant_values=1.0)
    x2d = x_pad.reshape(rows_pad, LANES)

    def mlp_branch(x2d_):
        y2d = _mlp_pallas(x2d_, flat_params, block_rows, num_blocks)
        return y2d.reshape(-1)[:B].reshape(B, 1)

    def ones_branch(x2d_):
        return jnp.ones((B, 1), jnp.float32)

    # Global torch.min(x) > 0 branch hoisted out of the kernel (kept as a global
    # reduction so tiling the batch does not change semantics).
    return lax.cond(jnp.min(x) > 0.0, mlp_branch, ones_branch, x2d)


def init_params(key):
    """Deterministic init mirroring PyTorch Linear default (U(-1/sqrt(fan_in), +))."""
    dims = [(1, 16), (16, 8), (8, 4), (4, 1)]
    params = []
    for fan_in, fan_out in dims:
        kw, kb, key = jax.random.split(key, 3)
        bound = 1.0 / jnp.sqrt(jnp.float32(fan_in))
        # stored as (in, out): h_out[k] = sum_j h_in[j] * W[j, k] + b[k]
        w = jax.random.uniform(kw, (fan_in, fan_out), jnp.float32, -bound, bound)
        b = jax.random.uniform(kb, (1, fan_out), jnp.float32, -bound, bound)
        params.append((w, b))
    return params


def _reference(x, params):
    (w1, b1), (w2, b2), (w3, b3), (w4, b4) = params
    h = jnp.log(x)
    for (w, b) in ((w1, b1), (w2, b2), (w3, b3)):
        h = h @ w + b
        h = jnp.where(h > 0, h, LEAKY_SLOPE * h)
    y = jax.nn.sigmoid(h @ w4 + b4)
    return jnp.where(jnp.min(x) > 0, y, jnp.ones_like(y))


if __name__ == "__main__":
    key = jax.random.PRNGKey(0)
    k_x, k_x2, k_p = jax.random.split(key, 3)
    params = init_params(k_p)

    # Small batch (single block, single chunk).
    B = 8
    x = jax.random.uniform(k_x, (B, 1), jnp.float32, minval=0.1, maxval=2.0)
    out = jax.block_until_ready(loss_approximator_forward(x, params))
    assert out.shape == (B, 1)
    # Tolerance relaxed slightly for the approximate (EUP) reciprocal in sigmoid.
    assert jnp.allclose(out, _reference(x, params), atol=2e-3, rtol=2e-3)

    # Larger batch exercises multi-block grid + the in-kernel chunk loop.
    B2 = 5000
    x2 = jax.random.uniform(k_x2, (B2, 1), jnp.float32, minval=0.05, maxval=5.0)
    out2 = jax.block_until_ready(loss_approximator_forward(x2, params))
    assert out2.shape == (B2, 1)
    assert jnp.allclose(out2, _reference(x2, params), atol=2e-3, rtol=2e-3)

    # Non-positive input exercises the hoisted all-ones branch (kernel skipped).
    x_neg = x.at[3, 0].set(-1.0)
    out_neg = jax.block_until_ready(loss_approximator_forward(x_neg, params))
    assert out_neg.shape == (B, 1)
    assert jnp.allclose(out_neg, jnp.ones((B, 1), jnp.float32))

    print("KERNEL_OK")
</pallas_src>

<mosaic_0001>
module attributes {stable_mosaic.version = 11 : i64} {
  func.func @loss_approx_kernel(%arg0: i32, %arg1: memref<16xf32, #tpu.memory_space<smem>>, %arg2: memref<16xf32, #tpu.memory_space<smem>>, %arg3: memref<128xf32, #tpu.memory_space<smem>>, %arg4: memref<8xf32, #tpu.memory_space<smem>>, %arg5: memref<32xf32, #tpu.memory_space<smem>>, %arg6: memref<4xf32, #tpu.memory_space<smem>>, %arg7: memref<4xf32, #tpu.memory_space<smem>>, %arg8: memref<1xf32, #tpu.memory_space<smem>>, %arg9: memref<16x128xf32, #tpu.memory_space<vmem>>, %arg10: memref<16x128xf32, #tpu.memory_space<vmem>>) attributes {dimension_semantics = [#tpu.dimension_semantics<parallel>], iteration_bounds = array<i64: 1>, scalar_prefetch = 0 : i64, scratch_operands = 0 : i64, tpu.core_type = #tpu.core_type<tc>, window_params = [{transform_indices = @transform_0, window_bounds = array<i64: 16>}, {transform_indices = @transform_1, window_bounds = array<i64: 16>}, {transform_indices = @transform_2, window_bounds = array<i64: 128>}, {transform_indices = @transform_3, window_bounds = array<i64: 8>}, {transform_indices = @transform_4, window_bounds = array<i64: 32>}, {transform_indices = @transform_5, window_bounds = array<i64: 4>}, {transform_indices = @transform_6, window_bounds = array<i64: 4>}, {transform_indices = @transform_7, window_bounds = array<i64: 1>}, {transform_indices = @transform_8, window_bounds = array<i64: 16, 128>}, {transform_indices = @transform_9, window_bounds = array<i64: 16, 128>}]} {
    %c0 = arith.constant 0 : index
    %c0_0 = arith.constant 0 : index
    %0 = vector.load %arg9[%c0, %c0_0] : memref<16x128xf32, #tpu.memory_space<vmem>>, vector<16x128xf32>
    %1 = math.log %0 : vector<16x128xf32>
    %c0_1 = arith.constant 0 : index
    %2 = memref.load %arg1[%c0_1] : memref<16xf32, #tpu.memory_space<smem>>
    %3 = vector.broadcast %2 : f32 to vector<16x128xf32>
    %4 = arith.mulf %1, %3 : vector<16x128xf32>
    %c0_2 = arith.constant 0 : index
    %5 = memref.load %arg2[%c0_2] : memref<16xf32, #tpu.memory_space<smem>>
    %6 = vector.broadcast %5 : f32 to vector<16x128xf32>
    %7 = arith.addf %4, %6 : vector<16x128xf32>
    %cst = arith.constant 0.00999999977 : f32
    %8 = vector.broadcast %cst : f32 to vector<16x128xf32>
    %9 = arith.mulf %8, %7 : vector<16x128xf32>
    %10 = arith.maximumf %7, %9 : vector<16x128xf32>
    %c0_3 = arith.constant 0 : index
    %11 = memref.load %arg3[%c0_3] : memref<128xf32, #tpu.memory_space<smem>>
    %12 = vector.broadcast %11 : f32 to vector<16x128xf32>
    %13 = arith.mulf %10, %12 : vector<16x128xf32>
    %c1 = arith.constant 1 : index
    %14 = memref.load %arg3[%c1] : memref<128xf32, #tpu.memory_space<smem>>
    %15 = vector.broadcast %14 : f32 to vector<16x128xf32>
    %16 = arith.mulf %10, %15 : vector<16x128xf32>
    %c2 = arith.constant 2 : index
    %17 = memref.load %arg3[%c2] : memref<128xf32, #tpu.memory_space<smem>>
    %18 = vector.broadcast %17 : f32 to vector<16x128xf32>
    %19 = arith.mulf %10, %18 : vector<16x128xf32>
    %c3 = arith.constant 3 : index
    %20 = memref.load %arg3[%c3] : memref<128xf32, #tpu.memory_space<smem>>
    %21 = vector.broadcast %20 : f32 to vector<16x128xf32>
    %22 = arith.mulf %10, %21 : vector<16x128xf32>
    %c4 = arith.constant 4 : index
    %23 = memref.load %arg3[%c4] : memref<128xf32, #tpu.memory_space<smem>>
    %24 = vector.broadcast %23 : f32 to vector<16x128xf32>
    %25 = arith.mulf %10, %24 : vector<16x128xf32>
    %c5 = arith.constant 5 : index
    %26 = memref.load %arg3[%c5] : memref<128xf32, #tpu.memory_space<smem>>
    %27 = vector.broadcast %26 : f32 to vector<16x128xf32>
    %28 = arith.mulf %10, %27 : vector<16x128xf32>
    %c6 = arith.constant 6 : index
    %29 = memref.load %arg3[%c6] : memref<128xf32, #tpu.memory_space<smem>>
    %30 = vector.broadcast %29 : f32 to vector<16x128xf32>
    %31 = arith.mulf %10, %30 : vector<16x128xf32>
    %c7 = arith.constant 7 : index
    %32 = memref.load %arg3[%c7] : memref<128xf32, #tpu.memory_space<smem>>
    %33 = vector.broadcast %32 : f32 to vector<16x128xf32>
    %34 = arith.mulf %10, %33 : vector<16x128xf32>
    %c1_4 = arith.constant 1 : index
    %35 = memref.load %arg1[%c1_4] : memref<16xf32, #tpu.memory_space<smem>>
    %36 = vector.broadcast %35 : f32 to vector<16x128xf32>
    %37 = arith.mulf %1, %36 : vector<16x128xf32>
    %c1_5 = arith.constant 1 : index
    %38 = memref.load %arg2[%c1_5] : memref<16xf32, #tpu.memory_space<smem>>
    %39 = vector.broadcast %38 : f32 to vector<16x128xf32>
    %40 = arith.addf %37, %39 : vector<16x128xf32>
    %cst_6 = arith.constant 0.00999999977 : f32
    %41 = vector.broadcast %cst_6 : f32 to vector<16x128xf32>
    %42 = arith.mulf %41, %40 : vector<16x128xf32>
    %43 = arith.maximumf %40, %42 : vector<16x128xf32>
    %c8 = arith.constant 8 : index
    %44 = memref.load %arg3[%c8] : memref<128xf32, #tpu.memory_space<smem>>
    %45 = vector.broadcast %44 : f32 to vector<16x128xf32>
    %46 = arith.mulf %43, %45 : vector<16x128xf32>
    %47 = arith.addf %13, %46 : vector<16x128xf32>
    %c9 = arith.constant 9 : index
    %48 = memref.load %arg3[%c9] : memref<128xf32, #tpu.memory_space<smem>>
    %49 = vector.broadcast %48 : f32 to vector<16x128xf32>
    %50 = arith.mulf %43, %49 : vector<16x128xf32>
    %51 = arith.addf %16, %50 : vector<16x128xf32>
    %c10 = arith.constant 10 : index
    %52 = memref.load %arg3[%c10] : memref<128xf32, #tpu.memory_space<smem>>
    %53 = vector.broadcast %52 : f32 to vector<16x128xf32>
    %54 = arith.mulf %43, %53 : vector<16x128xf32>
    %55 = arith.addf %19, %54 : vector<16x128xf32>
    %c11 = arith.constant 11 : index
    %56 = memref.load %arg3[%c11] : memref<128xf32, #tpu.memory_space<smem>>
    %57 = vector.broadcast %56 : f32 to vector<16x128xf32>
    %58 = arith.mulf %43, %57 : vector<16x128xf32>
    %59 = arith.addf %22, %58 : vector<16x128xf32>
    %c12 = arith.constant 12 : index
    %60 = memref.load %arg3[%c12] : memref<128xf32, #tpu.memory_space<smem>>
    %61 = vector.broadcast %60 : f32 to vector<16x128xf32>
    %62 = arith.mulf %43, %61 : vector<16x128xf32>
    %63 = arith.addf %25, %62 : vector<16x128xf32>
    %c13 = arith.constant 13 : index
    %64 = memref.load %arg3[%c13] : memref<128xf32, #tpu.memory_space<smem>>
    %65 = vector.broadcast %64 : f32 to vector<16x128xf32>
    %66 = arith.mulf %43, %65 : vector<16x128xf32>
    %67 = arith.addf %28, %66 : vector<16x128xf32>
    %c14 = arith.constant 14 : index
    %68 = memref.load %arg3[%c14] : memref<128xf32, #tpu.memory_space<smem>>
    %69 = vector.broadcast %68 : f32 to vector<16x128xf32>
    %70 = arith.mulf %43, %69 : vector<16x128xf32>
    %71 = arith.addf %31, %70 : vector<16x128xf32>
    %c15 = arith.constant 15 : index
    %72 = memref.load %arg3[%c15] : memref<128xf32, #tpu.memory_space<smem>>
    %73 = vector.broadcast %72 : f32 to vector<16x128xf32>
    %74 = arith.mulf %43, %73 : vector<16x128xf32>
    %75 = arith.addf %34, %74 : vector<16x128xf32>
    %c2_7 = arith.constant 2 : index
    %76 = memref.load %arg1[%c2_7] : memref<16xf32, #tpu.memory_space<smem>>
    %77 = vector.broadcast %76 : f32 to vector<16x128xf32>
    %78 = arith.mulf %1, %77 : vector<16x128xf32>
    %c2_8 = arith.constant 2 : index
    %79 = memref.load %arg2[%c2_8] : memref<16xf32, #tpu.memory_space<smem>>
    %80 = vector.broadcast %79 : f32 to vector<16x128xf32>
    %81 = arith.addf %78, %80 : vector<16x128xf32>
    %cst_9 = arith.constant 0.00999999977 : f32
    %82 = vector.broadcast %cst_9 : f32 to vector<16x128xf32>
    %83 = arith.mulf %82, %81 : vector<16x128xf32>
    %84 = arith.maximumf %81, %83 : vector<16x128xf32>
    %c16 = arith.constant 16 : index
    %85 = memref.load %arg3[%c16] : memref<128xf32, #tpu.memory_space<smem>>
    %86 = vector.broadcast %85 : f32 to vector<16x128xf32>
    %87 = arith.mulf %84, %86 : vector<16x128xf32>
    %88 = arith.addf %47, %87 : vector<16x128xf32>
    %c17 = arith.constant 17 : index
    %89 = memref.load %arg3[%c17] : memref<128xf32, #tpu.memory_space<smem>>
    %90 = vector.broadcast %89 : f32 to vector<16x128xf32>
    %91 = arith.mulf %84, %90 : vector<16x128xf32>
    %92 = arith.addf %51, %91 : vector<16x128xf32>
    %c18 = arith.constant 18 : index
    %93 = memref.load %arg3[%c18] : memref<128xf32, #tpu.memory_space<smem>>
    %94 = vector.broadcast %93 : f32 to vector<16x128xf32>
    %95 = arith.mulf %84, %94 : vector<16x128xf32>
    %96 = arith.addf %55, %95 : vector<16x128xf32>
    %c19 = arith.constant 19 : index
    %97 = memref.load %arg3[%c19] : memref<128xf32, #tpu.memory_space<smem>>
    %98 = vector.broadcast %97 : f32 to vector<16x128xf32>
    %99 = arith.mulf %84, %98 : vector<16x128xf32>
    %100 = arith.addf %59, %99 : vector<16x128xf32>
    %c20 = arith.constant 20 : index
    %101 = memref.load %arg3[%c20] : memref<128xf32, #tpu.memory_space<smem>>
    %102 = vector.broadcast %101 : f32 to vector<16x128xf32>
    %103 = arith.mulf %84, %102 : vector<16x128xf32>
    %104 = arith.addf %63, %103 : vector<16x128xf32>
    %c21 = arith.constant 21 : index
    %105 = memref.load %arg3[%c21] : memref<128xf32, #tpu.memory_space<smem>>
    %106 = vector.broadcast %105 : f32 to vector<16x128xf32>
    %107 = arith.mulf %84, %106 : vector<16x128xf32>
    %108 = arith.addf %67, %107 : vector<16x128xf32>
    %c22 = arith.constant 22 : index
    %109 = memref.load %arg3[%c22] : memref<128xf32, #tpu.memory_space<smem>>
    %110 = vector.broadcast %109 : f32 to vector<16x128xf32>
    %111 = arith.mulf %84, %110 : vector<16x128xf32>
    %112 = arith.addf %71, %111 : vector<16x128xf32>
    %c23 = arith.constant 23 : index
    %113 = memref.load %arg3[%c23] : memref<128xf32, #tpu.memory_space<smem>>
    %114 = vector.broadcast %113 : f32 to vector<16x128xf32>
    %115 = arith.mulf %84, %114 : vector<16x128xf32>
    %116 = arith.addf %75, %115 : vector<16x128xf32>
    %c3_10 = arith.constant 3 : index
    %117 = memref.load %arg1[%c3_10] : memref<16xf32, #tpu.memory_space<smem>>
    %118 = vector.broadcast %117 : f32 to vector<16x128xf32>
    %119 = arith.mulf %1, %118 : vector<16x128xf32>
    %c3_11 = arith.constant 3 : index
    %120 = memref.load %arg2[%c3_11] : memref<16xf32, #tpu.memory_space<smem>>
    %121 = vector.broadcast %120 : f32 to vector<16x128xf32>
    %122 = arith.addf %119, %121 : vector<16x128xf32>
    %cst_12 = arith.constant 0.00999999977 : f32
    %123 = vector.broadcast %cst_12 : f32 to vector<16x128xf32>
    %124 = arith.mulf %123, %122 : vector<16x128xf32>
    %125 = arith.maximumf %122, %124 : vector<16x128xf32>
    %c24 = arith.constant 24 : index
    %126 = memref.load %arg3[%c24] : memref<128xf32, #tpu.memory_space<smem>>
    %127 = vector.broadcast %126 : f32 to vector<16x128xf32>
    %128 = arith.mulf %125, %127 : vector<16x128xf32>
    %129 = arith.addf %88, %128 : vector<16x128xf32>
    %c25 = arith.constant 25 : index
    %130 = memref.load %arg3[%c25] : memref<128xf32, #tpu.memory_space<smem>>
    %131 = vector.broadcast %130 : f32 to vector<16x128xf32>
    %132 = arith.mulf %125, %131 : vector<16x128xf32>
    %133 = arith.addf %92, %132 : vector<16x128xf32>
    %c26 = arith.constant 26 : index
    %134 = memref.load %arg3[%c26] : memref<128xf32, #tpu.memory_space<smem>>
    %135 = vector.broadcast %134 : f32 to vector<16x128xf32>
    %136 = arith.mulf %125, %135 : vector<16x128xf32>
    %137 = arith.addf %96, %136 : vector<16x128xf32>
    %c27 = arith.constant 27 : index
    %138 = memref.load %arg3[%c27] : memref<128xf32, #tpu.memory_space<smem>>
    %139 = vector.broadcast %138 : f32 to vector<16x128xf32>
    %140 = arith.mulf %125, %139 : vector<16x128xf32>
    %141 = arith.addf %100, %140 : vector<16x128xf32>
    %c28 = arith.constant 28 : index
    %142 = memref.load %arg3[%c28] : memref<128xf32, #tpu.memory_space<smem>>
    %143 = vector.broadcast %142 : f32 to vector<16x128xf32>
    %144 = arith.mulf %125, %143 : vector<16x128xf32>
    %145 = arith.addf %104, %144 : vector<16x128xf32>
    %c29 = arith.constant 29 : index
    %146 = memref.load %arg3[%c29] : memref<128xf32, #tpu.memory_space<smem>>
    %147 = vector.broadcast %146 : f32 to vector<16x128xf32>
    %148 = arith.mulf %125, %147 : vector<16x128xf32>
    %149 = arith.addf %108, %148 : vector<16x128xf32>
    %c30 = arith.constant 30 : index
    %150 = memref.load %arg3[%c30] : memref<128xf32, #tpu.memory_space<smem>>
    %151 = vector.broadcast %150 : f32 to vector<16x128xf32>
    %152 = arith.mulf %125, %151 : vector<16x128xf32>
    %153 = arith.addf %112, %152 : vector<16x128xf32>
    %c31 = arith.constant 31 : index
    %154 = memref.load %arg3[%c31] : memref<128xf32, #tpu.memory_space<smem>>
    %155 = vector.broadcast %154 : f32 to vector<16x128xf32>
    %156 = arith.mulf %125, %155 : vector<16x128xf32>
    %157 = arith.addf %116, %156 : vector<16x128xf32>
    %c4_13 = arith.constant 4 : index
    %158 = memref.load %arg1[%c4_13] : memref<16xf32, #tpu.memory_space<smem>>
    %159 = vector.broadcast %158 : f32 to vector<16x128xf32>
    %160 = arith.mulf %1, %159 : vector<16x128xf32>
    %c4_14 = arith.constant 4 : index
    %161 = memref.load %arg2[%c4_14] : memref<16xf32, #tpu.memory_space<smem>>
    %162 = vector.broadcast %161 : f32 to vector<16x128xf32>
    %163 = arith.addf %160, %162 : vector<16x128xf32>
    %cst_15 = arith.constant 0.00999999977 : f32
    %164 = vector.broadcast %cst_15 : f32 to vector<16x128xf32>
    %165 = arith.mulf %164, %163 : vector<16x128xf32>
    %166 = arith.maximumf %163, %165 : vector<16x128xf32>
    %c32 = arith.constant 32 : index
    %167 = memref.load %arg3[%c32] : memref<128xf32, #tpu.memory_space<smem>>
    %168 = vector.broadcast %167 : f32 to vector<16x128xf32>
    %169 = arith.mulf %166, %168 : vector<16x128xf32>
    %170 = arith.addf %129, %169 : vector<16x128xf32>
    %c33 = arith.constant 33 : index
    %171 = memref.load %arg3[%c33] : memref<128xf32, #tpu.memory_space<smem>>
    %172 = vector.broadcast %171 : f32 to vector<16x128xf32>
    %173 = arith.mulf %166, %172 : vector<16x128xf32>
    %174 = arith.addf %133, %173 : vector<16x128xf32>
    %c34 = arith.constant 34 : index
    %175 = memref.load %arg3[%c34] : memref<128xf32, #tpu.memory_space<smem>>
    %176 = vector.broadcast %175 : f32 to vector<16x128xf32>
    %177 = arith.mulf %166, %176 : vector<16x128xf32>
    %178 = arith.addf %137, %177 : vector<16x128xf32>
    %c35 = arith.constant 35 : index
    %179 = memref.load %arg3[%c35] : memref<128xf32, #tpu.memory_space<smem>>
    %180 = vector.broadcast %179 : f32 to vector<16x128xf32>
    %181 = arith.mulf %166, %180 : vector<16x128xf32>
    %182 = arith.addf %141, %181 : vector<16x128xf32>
    %c36 = arith.constant 36 : index
    %183 = memref.load %arg3[%c36] : memref<128xf32, #tpu.memory_space<smem>>
    %184 = vector.broadcast %183 : f32 to vector<16x128xf32>
    %185 = arith.mulf %166, %184 : vector<16x128xf32>
    %186 = arith.addf %145, %185 : vector<16x128xf32>
    %c37 = arith.constant 37 : index
    %187 = memref.load %arg3[%c37] : memref<128xf32, #tpu.memory_space<smem>>
    %188 = vector.broadcast %187 : f32 to vector<16x128xf32>
    %189 = arith.mulf %166, %188 : vector<16x128xf32>
    %190 = arith.addf %149, %189 : vector<16x128xf32>
    %c38 = arith.constant 38 : index
    %191 = memref.load %arg3[%c38] : memref<128xf32, #tpu.memory_space<smem>>
    %192 = vector.broadcast %191 : f32 to vector<16x128xf32>
    %193 = arith.mulf %166, %192 : vector<16x128xf32>
    %194 = arith.addf %153, %193 : vector<16x128xf32>
    %c39 = arith.constant 39 : index
    %195 = memref.load %arg3[%c39] : memref<128xf32, #tpu.memory_space<smem>>
    %196 = vector.broadcast %195 : f32 to vector<16x128xf32>
    %197 = arith.mulf %166, %196 : vector<16x128xf32>
    %198 = arith.addf %157, %197 : vector<16x128xf32>
    %c5_16 = arith.constant 5 : index
    %199 = memref.load %arg1[%c5_16] : memref<16xf32, #tpu.memory_space<smem>>
    %200 = vector.broadcast %199 : f32 to vector<16x128xf32>
    %201 = arith.mulf %1, %200 : vector<16x128xf32>
    %c5_17 = arith.constant 5 : index
    %202 = memref.load %arg2[%c5_17] : memref<16xf32, #tpu.memory_space<smem>>
    %203 = vector.broadcast %202 : f32 to vector<16x128xf32>
    %204 = arith.addf %201, %203 : vector<16x128xf32>
    %cst_18 = arith.constant 0.00999999977 : f32
    %205 = vector.broadcast %cst_18 : f32 to vector<16x128xf32>
    %206 = arith.mulf %205, %204 : vector<16x128xf32>
    %207 = arith.maximumf %204, %206 : vector<16x128xf32>
    %c40 = arith.constant 40 : index
    %208 = memref.load %arg3[%c40] : memref<128xf32, #tpu.memory_space<smem>>
    %209 = vector.broadcast %208 : f32 to vector<16x128xf32>
    %210 = arith.mulf %207, %209 : vector<16x128xf32>
    %211 = arith.addf %170, %210 : vector<16x128xf32>
    %c41 = arith.constant 41 : index
    %212 = memref.load %arg3[%c41] : memref<128xf32, #tpu.memory_space<smem>>
    %213 = vector.broadcast %212 : f32 to vector<16x128xf32>
    %214 = arith.mulf %207, %213 : vector<16x128xf32>
    %215 = arith.addf %174, %214 : vector<16x128xf32>
    %c42 = arith.constant 42 : index
    %216 = memref.load %arg3[%c42] : memref<128xf32, #tpu.memory_space<smem>>
    %217 = vector.broadcast %216 : f32 to vector<16x128xf32>
    %218 = arith.mulf %207, %217 : vector<16x128xf32>
    %219 = arith.addf %178, %218 : vector<16x128xf32>
    %c43 = arith.constant 43 : index
    %220 = memref.load %arg3[%c43] : memref<128xf32, #tpu.memory_space<smem>>
    %221 = vector.broadcast %220 : f32 to vector<16x128xf32>
    %222 = arith.mulf %207, %221 : vector<16x128xf32>
    %223 = arith.addf %182, %222 : vector<16x128xf32>
    %c44 = arith.constant 44 : index
    %224 = memref.load %arg3[%c44] : memref<128xf32, #tpu.memory_space<smem>>
    %225 = vector.broadcast %224 : f32 to vector<16x128xf32>
    %226 = arith.mulf %207, %225 : vector<16x128xf32>
    %227 = arith.addf %186, %226 : vector<16x128xf32>
    %c45 = arith.constant 45 : index
    %228 = memref.load %arg3[%c45] : memref<128xf32, #tpu.memory_space<smem>>
    %229 = vector.broadcast %228 : f32 to vector<16x128xf32>
    %230 = arith.mulf %207, %229 : vector<16x128xf32>
    %231 = arith.addf %190, %230 : vector<16x128xf32>
    %c46 = arith.constant 46 : index
    %232 = memref.load %arg3[%c46] : memref<128xf32, #tpu.memory_space<smem>>
    %233 = vector.broadcast %232 : f32 to vector<16x128xf32>
    %234 = arith.mulf %207, %233 : vector<16x128xf32>
    %235 = arith.addf %194, %234 : vector<16x128xf32>
    %c47 = arith.constant 47 : index
    %236 = memref.load %arg3[%c47] : memref<128xf32, #tpu.memory_space<smem>>
    %237 = vector.broadcast %236 : f32 to vector<16x128xf32>
    %238 = arith.mulf %207, %237 : vector<16x128xf32>
    %239 = arith.addf %198, %238 : vector<16x128xf32>
    %c6_19 = arith.constant 6 : index
    %240 = memref.load %arg1[%c6_19] : memref<16xf32, #tpu.memory_space<smem>>
    %241 = vector.broadcast %240 : f32 to vector<16x128xf32>
    %242 = arith.mulf %1, %241 : vector<16x128xf32>
    %c6_20 = arith.constant 6 : index
    %243 = memref.load %arg2[%c6_20] : memref<16xf32, #tpu.memory_space<smem>>
    %244 = vector.broadcast %243 : f32 to vector<16x128xf32>
    %245 = arith.addf %242, %244 : vector<16x128xf32>
    %cst_21 = arith.constant 0.00999999977 : f32
    %246 = vector.broadcast %cst_21 : f32 to vector<16x128xf32>
    %247 = arith.mulf %246, %245 : vector<16x128xf32>
    %248 = arith.maximumf %245, %247 : vector<16x128xf32>
    %c48 = arith.constant 48 : index
    %249 = memref.load %arg3[%c48] : memref<128xf32, #tpu.memory_space<smem>>
    %250 = vector.broadcast %249 : f32 to vector<16x128xf32>
    %251 = arith.mulf %248, %250 : vector<16x128xf32>
    %252 = arith.addf %211, %251 : vector<16x128xf32>
    %c49 = arith.constant 49 : index
    %253 = memref.load %arg3[%c49] : memref<128xf32, #tpu.memory_space<smem>>
    %254 = vector.broadcast %253 : f32 to vector<16x128xf32>
    %255 = arith.mulf %248, %254 : vector<16x128xf32>
    %256 = arith.addf %215, %255 : vector<16x128xf32>
    %c50 = arith.constant 50 : index
    %257 = memref.load %arg3[%c50] : memref<128xf32, #tpu.memory_space<smem>>
    %258 = vector.broadcast %257 : f32 to vector<16x128xf32>
    %259 = arith.mulf %248, %258 : vector<16x128xf32>
    %260 = arith.addf %219, %259 : vector<16x128xf32>
    %c51 = arith.constant 51 : index
    %261 = memref.load %arg3[%c51] : memref<128xf32, #tpu.memory_space<smem>>
    %262 = vector.broadcast %261 : f32 to vector<16x128xf32>
    %263 = arith.mulf %248, %262 : vector<16x128xf32>
    %264 = arith.addf %223, %263 : vector<16x128xf32>
    %c52 = arith.constant 52 : index
    %265 = memref.load %arg3[%c52] : memref<128xf32, #tpu.memory_space<smem>>
    %266 = vector.broadcast %265 : f32 to vector<16x128xf32>
    %267 = arith.mulf %248, %266 : vector<16x128xf32>
    %268 = arith.addf %227, %267 : vector<16x128xf32>
    %c53 = arith.constant 53 : index
    %269 = memref.load %arg3[%c53] : memref<128xf32, #tpu.memory_space<smem>>
    %270 = vector.broadcast %269 : f32 to vector<16x128xf32>
    %271 = arith.mulf %248, %270 : vector<16x128xf32>
    %272 = arith.addf %231, %271 : vector<16x128xf32>
    %c54 = arith.constant 54 : index
    %273 = memref.load %arg3[%c54] : memref<128xf32, #tpu.memory_space<smem>>
    %274 = vector.broadcast %273 : f32 to vector<16x128xf32>
    %275 = arith.mulf %248, %274 : vector<16x128xf32>
    %276 = arith.addf %235, %275 : vector<16x128xf32>
    %c55 = arith.constant 55 : index
    %277 = memref.load %arg3[%c55] : memref<128xf32, #tpu.memory_space<smem>>
    %278 = vector.broadcast %277 : f32 to vector<16x128xf32>
    %279 = arith.mulf %248, %278 : vector<16x128xf32>
    %280 = arith.addf %239, %279 : vector<16x128xf32>
    %c7_22 = arith.constant 7 : index
    %281 = memref.load %arg1[%c7_22] : memref<16xf32, #tpu.memory_space<smem>>
    %282 = vector.broadcast %281 : f32 to vector<16x128xf32>
    %283 = arith.mulf %1, %282 : vector<16x128xf32>
    %c7_23 = arith.constant 7 : index
    %284 = memref.load %arg2[%c7_23] : memref<16xf32, #tpu.memory_space<smem>>
    %285 = vector.broadcast %284 : f32 to vector<16x128xf32>
    %286 = arith.addf %283, %285 : vector<16x128xf32>
    %cst_24 = arith.constant 0.00999999977 : f32
    %287 = vector.broadcast %cst_24 : f32 to vector<16x128xf32>
    %288 = arith.mulf %287, %286 : vector<16x128xf32>
    %289 = arith.maximumf %286, %288 : vector<16x128xf32>
    %c56 = arith.constant 56 : index
    %290 = memref.load %arg3[%c56] : memref<128xf32, #tpu.memory_space<smem>>
    %291 = vector.broadcast %290 : f32 to vector<16x128xf32>
    %292 = arith.mulf %289, %291 : vector<16x128xf32>
    %293 = arith.addf %252, %292 : vector<16x128xf32>
    %c57 = arith.constant 57 : index
    %294 = memref.load %arg3[%c57] : memref<128xf32, #tpu.memory_space<smem>>
    %295 = vector.broadcast %294 : f32 to vector<16x128xf32>
    %296 = arith.mulf %289, %295 : vector<16x128xf32>
    %297 = arith.addf %256, %296 : vector<16x128xf32>
    %c58 = arith.constant 58 : index
    %298 = memref.load %arg3[%c58] : memref<128xf32, #tpu.memory_space<smem>>
    %299 = vector.broadcast %298 : f32 to vector<16x128xf32>
    %300 = arith.mulf %289, %299 : vector<16x128xf32>
    %301 = arith.addf %260, %300 : vector<16x128xf32>
    %c59 = arith.constant 59 : index
    %302 = memref.load %arg3[%c59] : memref<128xf32, #tpu.memory_space<smem>>
    %303 = vector.broadcast %302 : f32 to vector<16x128xf32>
    %304 = arith.mulf %289, %303 : vector<16x128xf32>
    %305 = arith.addf %264, %304 : vector<16x128xf32>
    %c60 = arith.constant 60 : index
    %306 = memref.load %arg3[%c60] : memref<128xf32, #tpu.memory_space<smem>>
    %307 = vector.broadcast %306 : f32 to vector<16x128xf32>
    %308 = arith.mulf %289, %307 : vector<16x128xf32>
    %309 = arith.addf %268, %308 : vector<16x128xf32>
    %c61 = arith.constant 61 : index
    %310 = memref.load %arg3[%c61] : memref<128xf32, #tpu.memory_space<smem>>
    %311 = vector.broadcast %310 : f32 to vector<16x128xf32>
    %312 = arith.mulf %289, %311 : vector<16x128xf32>
    %313 = arith.addf %272, %312 : vector<16x128xf32>
    %c62 = arith.constant 62 : index
    %314 = memref.load %arg3[%c62] : memref<128xf32, #tpu.memory_space<smem>>
    %315 = vector.broadcast %314 : f32 to vector<16x128xf32>
    %316 = arith.mulf %289, %315 : vector<16x128xf32>
    %317 = arith.addf %276, %316 : vector<16x128xf32>
    %c63 = arith.constant 63 : index
    %318 = memref.load %arg3[%c63] : memref<128xf32, #tpu.memory_space<smem>>
    %319 = vector.broadcast %318 : f32 to vector<16x128xf32>
    %320 = arith.mulf %289, %319 : vector<16x128xf32>
    %321 = arith.addf %280, %320 : vector<16x128xf32>
    %c8_25 = arith.constant 8 : index
    %322 = memref.load %arg1[%c8_25] : memref<16xf32, #tpu.memory_space<smem>>
    %323 = vector.broadcast %322 : f32 to vector<16x128xf32>
    %324 = arith.mulf %1, %323 : vector<16x128xf32>
    %c8_26 = arith.constant 8 : index
    %325 = memref.load %arg2[%c8_26] : memref<16xf32, #tpu.memory_space<smem>>
    %326 = vector.broadcast %325 : f32 to vector<16x128xf32>
    %327 = arith.addf %324, %326 : vector<16x128xf32>
    %cst_27 = arith.constant 0.00999999977 : f32
    %328 = vector.broadcast %cst_27 : f32 to vector<16x128xf32>
    %329 = arith.mulf %328, %327 : vector<16x128xf32>
    %330 = arith.maximumf %327, %329 : vector<16x128xf32>
    %c64 = arith.constant 64 : index
    %331 = memref.load %arg3[%c64] : memref<128xf32, #tpu.memory_space<smem>>
    %332 = vector.broadcast %331 : f32 to vector<16x128xf32>
    %333 = arith.mulf %330, %332 : vector<16x128xf32>
    %334 = arith.addf %293, %333 : vector<16x128xf32>
    %c65 = arith.constant 65 : index
    %335 = memref.load %arg3[%c65] : memref<128xf32, #tpu.memory_space<smem>>
    %336 = vector.broadcast %335 : f32 to vector<16x128xf32>
    %337 = arith.mulf %330, %336 : vector<16x128xf32>
    %338 = arith.addf %297, %337 : vector<16x128xf32>
    %c66 = arith.constant 66 : index
    %339 = memref.load %arg3[%c66] : memref<128xf32, #tpu.memory_space<smem>>
    %340 = vector.broadcast %339 : f32 to vector<16x128xf32>
    %341 = arith.mulf %330, %340 : vector<16x128xf32>
    %342 = arith.addf %301, %341 : vector<16x128xf32>
    %c67 = arith.constant 67 : index
    %343 = memref.load %arg3[%c67] : memref<128xf32, #tpu.memory_space<smem>>
    %344 = vector.broadcast %343 : f32 to vector<16x128xf32>
    %345 = arith.mulf %330, %344 : vector<16x128xf32>
    %346 = arith.addf %305, %345 : vector<16x128xf32>
    %c68 = arith.constant 68 : index
    %347 = memref.load %arg3[%c68] : memref<128xf32, #tpu.memory_space<smem>>
    %348 = vector.broadcast %347 : f32 to vector<16x128xf32>
    %349 = arith.mulf %330, %348 : vector<16x128xf32>
    %350 = arith.addf %309, %349 : vector<16x128xf32>
    %c69 = arith.constant 69 : index
    %351 = memref.load %arg3[%c69] : memref<128xf32, #tpu.memory_space<smem>>
    %352 = vector.broadcast %351 : f32 to vector<16x128xf32>
    %353 = arith.mulf %330, %352 : vector<16x128xf32>
    %354 = arith.addf %313, %353 : vector<16x128xf32>
    %c70 = arith.constant 70 : index
    %355 = memref.load %arg3[%c70] : memref<128xf32, #tpu.memory_space<smem>>
    %356 = vector.broadcast %355 : f32 to vector<16x128xf32>
    %357 = arith.mulf %330, %356 : vector<16x128xf32>
    %358 = arith.addf %317, %357 : vector<16x128xf32>
    %c71 = arith.constant 71 : index
    %359 = memref.load %arg3[%c71] : memref<128xf32, #tpu.memory_space<smem>>
    %360 = vector.broadcast %359 : f32 to vector<16x128xf32>
    %361 = arith.mulf %330, %360 : vector<16x128xf32>
    %362 = arith.addf %321, %361 : vector<16x128xf32>
    %c9_28 = arith.constant 9 : index
    %363 = memref.load %arg1[%c9_28] : memref<16xf32, #tpu.memory_space<smem>>
    %364 = vector.broadcast %363 : f32 to vector<16x128xf32>
    %365 = arith.mulf %1, %364 : vector<16x128xf32>
    %c9_29 = arith.constant 9 : index
    %366 = memref.load %arg2[%c9_29] : memref<16xf32, #tpu.memory_space<smem>>
    %367 = vector.broadcast %366 : f32 to vector<16x128xf32>
    %368 = arith.addf %365, %367 : vector<16x128xf32>
    %cst_30 = arith.constant 0.00999999977 : f32
    %369 = vector.broadcast %cst_30 : f32 to vector<16x128xf32>
    %370 = arith.mulf %369, %368 : vector<16x128xf32>
    %371 = arith.maximumf %368, %370 : vector<16x128xf32>
    %c72 = arith.constant 72 : index
    %372 = memref.load %arg3[%c72] : memref<128xf32, #tpu.memory_space<smem>>
    %373 = vector.broadcast %372 : f32 to vector<16x128xf32>
    %374 = arith.mulf %371, %373 : vector<16x128xf32>
    %375 = arith.addf %334, %374 : vector<16x128xf32>
    %c73 = arith.constant 73 : index
    %376 = memref.load %arg3[%c73] : memref<128xf32, #tpu.memory_space<smem>>
    %377 = vector.broadcast %376 : f32 to vector<16x128xf32>
    %378 = arith.mulf %371, %377 : vector<16x128xf32>
    %379 = arith.addf %338, %378 : vector<16x128xf32>
    %c74 = arith.constant 74 : index
    %380 = memref.load %arg3[%c74] : memref<128xf32, #tpu.memory_space<smem>>
    %381 = vector.broadcast %380 : f32 to vector<16x128xf32>
    %382 = arith.mulf %371, %381 : vector<16x128xf32>
    %383 = arith.addf %342, %382 : vector<16x128xf32>
    %c75 = arith.constant 75 : index
    %384 = memref.load %arg3[%c75] : memref<128xf32, #tpu.memory_space<smem>>
    %385 = vector.broadcast %384 : f32 to vector<16x128xf32>
    %386 = arith.mulf %371, %385 : vector<16x128xf32>
    %387 = arith.addf %346, %386 : vector<16x128xf32>
    %c76 = arith.constant 76 : index
    %388 = memref.load %arg3[%c76] : memref<128xf32, #tpu.memory_space<smem>>
    %389 = vector.broadcast %388 : f32 to vector<16x128xf32>
    %390 = arith.mulf %371, %389 : vector<16x128xf32>
    %391 = arith.addf %350, %390 : vector<16x128xf32>
    %c77 = arith.constant 77 : index
    %392 = memref.load %arg3[%c77] : memref<128xf32, #tpu.memory_space<smem>>
    %393 = vector.broadcast %392 : f32 to vector<16x128xf32>
    %394 = arith.mulf %371, %393 : vector<16x128xf32>
    %395 = arith.addf %354, %394 : vector<16x128xf32>
    %c78 = arith.constant 78 : index
    %396 = memref.load %arg3[%c78] : memref<128xf32, #tpu.memory_space<smem>>
    %397 = vector.broadcast %396 : f32 to vector<16x128xf32>
    %398 = arith.mulf %371, %397 : vector<16x128xf32>
    %399 = arith.addf %358, %398 : vector<16x128xf32>
    %c79 = arith.constant 79 : index
    %400 = memref.load %arg3[%c79] : memref<128xf32, #tpu.memory_space<smem>>
    %401 = vector.broadcast %400 : f32 to vector<16x128xf32>
    %402 = arith.mulf %371, %401 : vector<16x128xf32>
    %403 = arith.addf %362, %402 : vector<16x128xf32>
    %c10_31 = arith.constant 10 : index
    %404 = memref.load %arg1[%c10_31] : memref<16xf32, #tpu.memory_space<smem>>
    %405 = vector.broadcast %404 : f32 to vector<16x128xf32>
    %406 = arith.mulf %1, %405 : vector<16x128xf32>
    %c10_32 = arith.constant 10 : index
    %407 = memref.load %arg2[%c10_32] : memref<16xf32, #tpu.memory_space<smem>>
    %408 = vector.broadcast %407 : f32 to vector<16x128xf32>
    %409 = arith.addf %406, %408 : vector<16x128xf32>
    %cst_33 = arith.constant 0.00999999977 : f32
    %410 = vector.broadcast %cst_33 : f32 to vector<16x128xf32>
    %411 = arith.mulf %410, %409 : vector<16x128xf32>
    %412 = arith.maximumf %409, %411 : vector<16x128xf32>
    %c80 = arith.constant 80 : index
    %413 = memref.load %arg3[%c80] : memref<128xf32, #tpu.memory_space<smem>>
    %414 = vector.broadcast %413 : f32 to vector<16x128xf32>
    %415 = arith.mulf %412, %414 : vector<16x128xf32>
    %416 = arith.addf %375, %415 : vector<16x128xf32>
    %c81 = arith.constant 81 : index
    %417 = memref.load %arg3[%c81] : memref<128xf32, #tpu.memory_space<smem>>
    %418 = vector.broadcast %417 : f32 to vector<16x128xf32>
    %419 = arith.mulf %412, %418 : vector<16x128xf32>
    %420 = arith.addf %379, %419 : vector<16x128xf32>
    %c82 = arith.constant 82 : index
    %421 = memref.load %arg3[%c82] : memref<128xf32, #tpu.memory_space<smem>>
    %422 = vector.broadcast %421 : f32 to vector<16x128xf32>
    %423 = arith.mulf %412, %422 : vector<16x128xf32>
    %424 = arith.addf %383, %423 : vector<16x128xf32>
    %c83 = arith.constant 83 : index
    %425 = memref.load %arg3[%c83] : memref<128xf32, #tpu.memory_space<smem>>
    %426 = vector.broadcast %425 : f32 to vector<16x128xf32>
    %427 = arith.mulf %412, %426 : vector<16x128xf32>
    %428 = arith.addf %387, %427 : vector<16x128xf32>
    %c84 = arith.constant 84 : index
    %429 = memref.load %arg3[%c84] : memref<128xf32, #tpu.memory_space<smem>>
    %430 = vector.broadcast %429 : f32 to vector<16x128xf32>
    %431 = arith.mulf %412, %430 : vector<16x128xf32>
    %432 = arith.addf %391, %431 : vector<16x128xf32>
    %c85 = arith.constant 85 : index
    %433 = memref.load %arg3[%c85] : memref<128xf32, #tpu.memory_space<smem>>
    %434 = vector.broadcast %433 : f32 to vector<16x128xf32>
    %435 = arith.mulf %412, %434 : vector<16x128xf32>
    %436 = arith.addf %395, %435 : vector<16x128xf32>
    %c86 = arith.constant 86 : index
    %437 = memref.load %arg3[%c86] : memref<128xf32, #tpu.memory_space<smem>>
    %438 = vector.broadcast %437 : f32 to vector<16x128xf32>
    %439 = arith.mulf %412, %438 : vector<16x128xf32>
    %440 = arith.addf %399, %439 : vector<16x128xf32>
    %c87 = arith.constant 87 : index
    %441 = memref.load %arg3[%c87] : memref<128xf32, #tpu.memory_space<smem>>
    %442 = vector.broadcast %441 : f32 to vector<16x128xf32>
    %443 = arith.mulf %412, %442 : vector<16x128xf32>
    %444 = arith.addf %403, %443 : vector<16x128xf32>
    %c11_34 = arith.constant 11 : index
    %445 = memref.load %arg1[%c11_34] : memref<16xf32, #tpu.memory_space<smem>>
    %446 = vector.broadcast %445 : f32 to vector<16x128xf32>
    %447 = arith.mulf %1, %446 : vector<16x128xf32>
    %c11_35 = arith.constant 11 : index
    %448 = memref.load %arg2[%c11_35] : memref<16xf32, #tpu.memory_space<smem>>
    %449 = vector.broadcast %448 : f32 to vector<16x128xf32>
    %450 = arith.addf %447, %449 : vector<16x128xf32>
    %cst_36 = arith.constant 0.00999999977 : f32
    %451 = vector.broadcast %cst_36 : f32 to vector<16x128xf32>
    %452 = arith.mulf %451, %450 : vector<16x128xf32>
    %453 = arith.maximumf %450, %452 : vector<16x128xf32>
    %c88 = arith.constant 88 : index
    %454 = memref.load %arg3[%c88] : memref<128xf32, #tpu.memory_space<smem>>
    %455 = vector.broadcast %454 : f32 to vector<16x128xf32>
    %456 = arith.mulf %453, %455 : vector<16x128xf32>
    %457 = arith.addf %416, %456 : vector<16x128xf32>
    %c89 = arith.constant 89 : index
    %458 = memref.load %arg3[%c89] : memref<128xf32, #tpu.memory_space<smem>>
    %459 = vector.broadcast %458 : f32 to vector<16x128xf32>
    %460 = arith.mulf %453, %459 : vector<16x128xf32>
    %461 = arith.addf %420, %460 : vector<16x128xf32>
    %c90 = arith.constant 90 : index
    %462 = memref.load %arg3[%c90] : memref<128xf32, #tpu.memory_space<smem>>
    %463 = vector.broadcast %462 : f32 to vector<16x128xf32>
    %464 = arith.mulf %453, %463 : vector<16x128xf32>
    %465 = arith.addf %424, %464 : vector<16x128xf32>
    %c91 = arith.constant 91 : index
    %466 = memref.load %arg3[%c91] : memref<128xf32, #tpu.memory_space<smem>>
    %467 = vector.broadcast %466 : f32 to vector<16x128xf32>
    %468 = arith.mulf %453, %467 : vector<16x128xf32>
    %469 = arith.addf %428, %468 : vector<16x128xf32>
    %c92 = arith.constant 92 : index
    %470 = memref.load %arg3[%c92] : memref<128xf32, #tpu.memory_space<smem>>
    %471 = vector.broadcast %470 : f32 to vector<16x128xf32>
    %472 = arith.mulf %453, %471 : vector<16x128xf32>
    %473 = arith.addf %432, %472 : vector<16x128xf32>
    %c93 = arith.constant 93 : index
    %474 = memref.load %arg3[%c93] : memref<128xf32, #tpu.memory_space<smem>>
    %475 = vector.broadcast %474 : f32 to vector<16x128xf32>
    %476 = arith.mulf %453, %475 : vector<16x128xf32>
    %477 = arith.addf %436, %476 : vector<16x128xf32>
    %c94 = arith.constant 94 : index
    %478 = memref.load %arg3[%c94] : memref<128xf32, #tpu.memory_space<smem>>
    %479 = vector.broadcast %478 : f32 to vector<16x128xf32>
    %480 = arith.mulf %453, %479 : vector<16x128xf32>
    %481 = arith.addf %440, %480 : vector<16x128xf32>
    %c95 = arith.constant 95 : index
    %482 = memref.load %arg3[%c95] : memref<128xf32, #tpu.memory_space<smem>>
    %483 = vector.broadcast %482 : f32 to vector<16x128xf32>
    %484 = arith.mulf %453, %483 : vector<16x128xf32>
    %485 = arith.addf %444, %484 : vector<16x128xf32>
    %c12_37 = arith.constant 12 : index
    %486 = memref.load %arg1[%c12_37] : memref<16xf32, #tpu.memory_space<smem>>
    %487 = vector.broadcast %486 : f32 to vector<16x128xf32>
    %488 = arith.mulf %1, %487 : vector<16x128xf32>
    %c12_38 = arith.constant 12 : index
    %489 = memref.load %arg2[%c12_38] : memref<16xf32, #tpu.memory_space<smem>>
    %490 = vector.broadcast %489 : f32 to vector<16x128xf32>
    %491 = arith.addf %488, %490 : vector<16x128xf32>
    %cst_39 = arith.constant 0.00999999977 : f32
    %492 = vector.broadcast %cst_39 : f32 to vector<16x128xf32>
    %493 = arith.mulf %492, %491 : vector<16x128xf32>
    %494 = arith.maximumf %491, %493 : vector<16x128xf32>
    %c96 = arith.constant 96 : index
    %495 = memref.load %arg3[%c96] : memref<128xf32, #tpu.memory_space<smem>>
    %496 = vector.broadcast %495 : f32 to vector<16x128xf32>
    %497 = arith.mulf %494, %496 : vector<16x128xf32>
    %498 = arith.addf %457, %497 : vector<16x128xf32>
    %c97 = arith.constant 97 : index
    %499 = memref.load %arg3[%c97] : memref<128xf32, #tpu.memory_space<smem>>
    %500 = vector.broadcast %499 : f32 to vector<16x128xf32>
    %501 = arith.mulf %494, %500 : vector<16x128xf32>
    %502 = arith.addf %461, %501 : vector<16x128xf32>
    %c98 = arith.constant 98 : index
    %503 = memref.load %arg3[%c98] : memref<128xf32, #tpu.memory_space<smem>>
    %504 = vector.broadcast %503 : f32 to vector<16x128xf32>
    %505 = arith.mulf %494, %504 : vector<16x128xf32>
    %506 = arith.addf %465, %505 : vector<16x128xf32>
    %c99 = arith.constant 99 : index
    %507 = memref.load %arg3[%c99] : memref<128xf32, #tpu.memory_space<smem>>
    %508 = vector.broadcast %507 : f32 to vector<16x128xf32>
    %509 = arith.mulf %494, %508 : vector<16x128xf32>
    %510 = arith.addf %469, %509 : vector<16x128xf32>
    %c100 = arith.constant 100 : index
    %511 = memref.load %arg3[%c100] : memref<128xf32, #tpu.memory_space<smem>>
    %512 = vector.broadcast %511 : f32 to vector<16x128xf32>
    %513 = arith.mulf %494, %512 : vector<16x128xf32>
    %514 = arith.addf %473, %513 : vector<16x128xf32>
    %c101 = arith.constant 101 : index
    %515 = memref.load %arg3[%c101] : memref<128xf32, #tpu.memory_space<smem>>
    %516 = vector.broadcast %515 : f32 to vector<16x128xf32>
    %517 = arith.mulf %494, %516 : vector<16x128xf32>
    %518 = arith.addf %477, %517 : vector<16x128xf32>
    %c102 = arith.constant 102 : index
    %519 = memref.load %arg3[%c102] : memref<128xf32, #tpu.memory_space<smem>>
    %520 = vector.broadcast %519 : f32 to vector<16x128xf32>
    %521 = arith.mulf %494, %520 : vector<16x128xf32>
    %522 = arith.addf %481, %521 : vector<16x128xf32>
    %c103 = arith.constant 103 : index
    %523 = memref.load %arg3[%c103] : memref<128xf32, #tpu.memory_space<smem>>
    %524 = vector.broadcast %523 : f32 to vector<16x128xf32>
    %525 = arith.mulf %494, %524 : vector<16x128xf32>
    %526 = arith.addf %485, %525 : vector<16x128xf32>
    %c13_40 = arith.constant 13 : index
    %527 = memref.load %arg1[%c13_40] : memref<16xf32, #tpu.memory_space<smem>>
    %528 = vector.broadcast %527 : f32 to vector<16x128xf32>
    %529 = arith.mulf %1, %528 : vector<16x128xf32>
    %c13_41 = arith.constant 13 : index
    %530 = memref.load %arg2[%c13_41] : memref<16xf32, #tpu.memory_space<smem>>
    %531 = vector.broadcast %530 : f32 to vector<16x128xf32>
    %532 = arith.addf %529, %531 : vector<16x128xf32>
    %cst_42 = arith.constant 0.00999999977 : f32
    %533 = vector.broadcast %cst_42 : f32 to vector<16x128xf32>
    %534 = arith.mulf %533, %532 : vector<16x128xf32>
    %535 = arith.maximumf %532, %534 : vector<16x128xf32>
    %c104 = arith.constant 104 : index
    %536 = memref.load %arg3[%c104] : memref<128xf32, #tpu.memory_space<smem>>
    %537 = vector.broadcast %536 : f32 to vector<16x128xf32>
    %538 = arith.mulf %535, %537 : vector<16x128xf32>
    %539 = arith.addf %498, %538 : vector<16x128xf32>
    %c105 = arith.constant 105 : index
    %540 = memref.load %arg3[%c105] : memref<128xf32, #tpu.memory_space<smem>>
    %541 = vector.broadcast %540 : f32 to vector<16x128xf32>
    %542 = arith.mulf %535, %541 : vector<16x128xf32>
    %543 = arith.addf %502, %542 : vector<16x128xf32>
    %c106 = arith.constant 106 : index
    %544 = memref.load %arg3[%c106] : memref<128xf32, #tpu.memory_space<smem>>
    %545 = vector.broadcast %544 : f32 to vector<16x128xf32>
    %546 = arith.mulf %535, %545 : vector<16x128xf32>
    %547 = arith.addf %506, %546 : vector<16x128xf32>
    %c107 = arith.constant 107 : index
    %548 = memref.load %arg3[%c107] : memref<128xf32, #tpu.memory_space<smem>>
    %549 = vector.broadcast %548 : f32 to vector<16x128xf32>
    %550 = arith.mulf %535, %549 : vector<16x128xf32>
    %551 = arith.addf %510, %550 : vector<16x128xf32>
    %c108 = arith.constant 108 : index
    %552 = memref.load %arg3[%c108] : memref<128xf32, #tpu.memory_space<smem>>
    %553 = vector.broadcast %552 : f32 to vector<16x128xf32>
    %554 = arith.mulf %535, %553 : vector<16x128xf32>
    %555 = arith.addf %514, %554 : vector<16x128xf32>
    %c109 = arith.constant 109 : index
    %556 = memref.load %arg3[%c109] : memref<128xf32, #tpu.memory_space<smem>>
    %557 = vector.broadcast %556 : f32 to vector<16x128xf32>
    %558 = arith.mulf %535, %557 : vector<16x128xf32>
    %559 = arith.addf %518, %558 : vector<16x128xf32>
    %c110 = arith.constant 110 : index
    %560 = memref.load %arg3[%c110] : memref<128xf32, #tpu.memory_space<smem>>
    %561 = vector.broadcast %560 : f32 to vector<16x128xf32>
    %562 = arith.mulf %535, %561 : vector<16x128xf32>
    %563 = arith.addf %522, %562 : vector<16x128xf32>
    %c111 = arith.constant 111 : index
    %564 = memref.load %arg3[%c111] : memref<128xf32, #tpu.memory_space<smem>>
    %565 = vector.broadcast %564 : f32 to vector<16x128xf32>
    %566 = arith.mulf %535, %565 : vector<16x128xf32>
    %567 = arith.addf %526, %566 : vector<16x128xf32>
    %c14_43 = arith.constant 14 : index
    %568 = memref.load %arg1[%c14_43] : memref<16xf32, #tpu.memory_space<smem>>
    %569 = vector.broadcast %568 : f32 to vector<16x128xf32>
    %570 = arith.mulf %1, %569 : vector<16x128xf32>
    %c14_44 = arith.constant 14 : index
    %571 = memref.load %arg2[%c14_44] : memref<16xf32, #tpu.memory_space<smem>>
    %572 = vector.broadcast %571 : f32 to vector<16x128xf32>
    %573 = arith.addf %570, %572 : vector<16x128xf32>
    %cst_45 = arith.constant 0.00999999977 : f32
    %574 = vector.broadcast %cst_45 : f32 to vector<16x128xf32>
    %575 = arith.mulf %574, %573 : vector<16x128xf32>
    %576 = arith.maximumf %573, %575 : vector<16x128xf32>
    %c112 = arith.constant 112 : index
    %577 = memref.load %arg3[%c112] : memref<128xf32, #tpu.memory_space<smem>>
    %578 = vector.broadcast %577 : f32 to vector<16x128xf32>
    %579 = arith.mulf %576, %578 : vector<16x128xf32>
    %580 = arith.addf %539, %579 : vector<16x128xf32>
    %c113 = arith.constant 113 : index
    %581 = memref.load %arg3[%c113] : memref<128xf32, #tpu.memory_space<smem>>
    %582 = vector.broadcast %581 : f32 to vector<16x128xf32>
    %583 = arith.mulf %576, %582 : vector<16x128xf32>
    %584 = arith.addf %543, %583 : vector<16x128xf32>
    %c114 = arith.constant 114 : index
    %585 = memref.load %arg3[%c114] : memref<128xf32, #tpu.memory_space<smem>>
    %586 = vector.broadcast %585 : f32 to vector<16x128xf32>
    %587 = arith.mulf %576, %586 : vector<16x128xf32>
    %588 = arith.addf %547, %587 : vector<16x128xf32>
    %c115 = arith.constant 115 : index
    %589 = memref.load %arg3[%c115] : memref<128xf32, #tpu.memory_space<smem>>
    %590 = vector.broadcast %589 : f32 to vector<16x128xf32>
    %591 = arith.mulf %576, %590 : vector<16x128xf32>
    %592 = arith.addf %551, %591 : vector<16x128xf32>
    %c116 = arith.constant 116 : index
    %593 = memref.load %arg3[%c116] : memref<128xf32, #tpu.memory_space<smem>>
    %594 = vector.broadcast %593 : f32 to vector<16x128xf32>
    %595 = arith.mulf %576, %594 : vector<16x128xf32>
    %596 = arith.addf %555, %595 : vector<16x128xf32>
    %c117 = arith.constant 117 : index
    %597 = memref.load %arg3[%c117] : memref<128xf32, #tpu.memory_space<smem>>
    %598 = vector.broadcast %597 : f32 to vector<16x128xf32>
    %599 = arith.mulf %576, %598 : vector<16x128xf32>
    %600 = arith.addf %559, %599 : vector<16x128xf32>
    %c118 = arith.constant 118 : index
    %601 = memref.load %arg3[%c118] : memref<128xf32, #tpu.memory_space<smem>>
    %602 = vector.broadcast %601 : f32 to vector<16x128xf32>
    %603 = arith.mulf %576, %602 : vector<16x128xf32>
    %604 = arith.addf %563, %603 : vector<16x128xf32>
    %c119 = arith.constant 119 : index
    %605 = memref.load %arg3[%c119] : memref<128xf32, #tpu.memory_space<smem>>
    %606 = vector.broadcast %605 : f32 to vector<16x128xf32>
    %607 = arith.mulf %576, %606 : vector<16x128xf32>
    %608 = arith.addf %567, %607 : vector<16x128xf32>
    %c15_46 = arith.constant 15 : index
    %609 = memref.load %arg1[%c15_46] : memref<16xf32, #tpu.memory_space<smem>>
    %610 = vector.broadcast %609 : f32 to vector<16x128xf32>
    %611 = arith.mulf %1, %610 : vector<16x128xf32>
    %c15_47 = arith.constant 15 : index
    %612 = memref.load %arg2[%c15_47] : memref<16xf32, #tpu.memory_space<smem>>
    %613 = vector.broadcast %612 : f32 to vector<16x128xf32>
    %614 = arith.addf %611, %613 : vector<16x128xf32>
    %cst_48 = arith.constant 0.00999999977 : f32
    %615 = vector.broadcast %cst_48 : f32 to vector<16x128xf32>
    %616 = arith.mulf %615, %614 : vector<16x128xf32>
    %617 = arith.maximumf %614, %616 : vector<16x128xf32>
    %c120 = arith.constant 120 : index
    %618 = memref.load %arg3[%c120] : memref<128xf32, #tpu.memory_space<smem>>
    %619 = vector.broadcast %618 : f32 to vector<16x128xf32>
    %620 = arith.mulf %617, %619 : vector<16x128xf32>
    %621 = arith.addf %580, %620 : vector<16x128xf32>
    %c121 = arith.constant 121 : index
    %622 = memref.load %arg3[%c121] : memref<128xf32, #tpu.memory_space<smem>>
    %623 = vector.broadcast %622 : f32 to vector<16x128xf32>
    %624 = arith.mulf %617, %623 : vector<16x128xf32>
    %625 = arith.addf %584, %624 : vector<16x128xf32>
    %c122 = arith.constant 122 : index
    %626 = memref.load %arg3[%c122] : memref<128xf32, #tpu.memory_space<smem>>
    %627 = vector.broadcast %626 : f32 to vector<16x128xf32>
    %628 = arith.mulf %617, %627 : vector<16x128xf32>
    %629 = arith.addf %588, %628 : vector<16x128xf32>
    %c123 = arith.constant 123 : index
    %630 = memref.load %arg3[%c123] : memref<128xf32, #tpu.memory_space<smem>>
    %631 = vector.broadcast %630 : f32 to vector<16x128xf32>
    %632 = arith.mulf %617, %631 : vector<16x128xf32>
    %633 = arith.addf %592, %632 : vector<16x128xf32>
    %c124 = arith.constant 124 : index
    %634 = memref.load %arg3[%c124] : memref<128xf32, #tpu.memory_space<smem>>
    %635 = vector.broadcast %634 : f32 to vector<16x128xf32>
    %636 = arith.mulf %617, %635 : vector<16x128xf32>
    %637 = arith.addf %596, %636 : vector<16x128xf32>
    %c125 = arith.constant 125 : index
    %638 = memref.load %arg3[%c125] : memref<128xf32, #tpu.memory_space<smem>>
    %639 = vector.broadcast %638 : f32 to vector<16x128xf32>
    %640 = arith.mulf %617, %639 : vector<16x128xf32>
    %641 = arith.addf %600, %640 : vector<16x128xf32>
    %c126 = arith.constant 126 : index
    %642 = memref.load %arg3[%c126] : memref<128xf32, #tpu.memory_space<smem>>
    %643 = vector.broadcast %642 : f32 to vector<16x128xf32>
    %644 = arith.mulf %617, %643 : vector<16x128xf32>
    %645 = arith.addf %604, %644 : vector<16x128xf32>
    %c127 = arith.constant 127 : index
    %646 = memref.load %arg3[%c127] : memref<128xf32, #tpu.memory_space<smem>>
    %647 = vector.broadcast %646 : f32 to vector<16x128xf32>
    %648 = arith.mulf %617, %647 : vector<16x128xf32>
    %649 = arith.addf %608, %648 : vector<16x128xf32>
    %c0_49 = arith.constant 0 : index
    %650 = memref.load %arg4[%c0_49] : memref<8xf32, #tpu.memory_space<smem>>
    %651 = vector.broadcast %650 : f32 to vector<16x128xf32>
    %652 = arith.addf %621, %651 : vector<16x128xf32>
    %cst_50 = arith.constant 0.00999999977 : f32
    %653 = vector.broadcast %cst_50 : f32 to vector<16x128xf32>
    %654 = arith.mulf %653, %652 : vector<16x128xf32>
    %655 = arith.maximumf %652, %654 : vector<16x128xf32>
    %c1_51 = arith.constant 1 : index
    %656 = memref.load %arg4[%c1_51] : memref<8xf32, #tpu.memory_space<smem>>
    %657 = vector.broadcast %656 : f32 to vector<16x128xf32>
    %658 = arith.addf %625, %657 : vector<16x128xf32>
    %cst_52 = arith.constant 0.00999999977 : f32
    %659 = vector.broadcast %cst_52 : f32 to vector<16x128xf32>
    %660 = arith.mulf %659, %658 : vector<16x128xf32>
    %661 = arith.maximumf %658, %660 : vector<16x128xf32>
    %c2_53 = arith.constant 2 : index
    %662 = memref.load %arg4[%c2_53] : memref<8xf32, #tpu.memory_space<smem>>
    %663 = vector.broadcast %662 : f32 to vector<16x128xf32>
    %664 = arith.addf %629, %663 : vector<16x128xf32>
    %cst_54 = arith.constant 0.00999999977 : f32
    %665 = vector.broadcast %cst_54 : f32 to vector<16x128xf32>
    %666 = arith.mulf %665, %664 : vector<16x128xf32>
    %667 = arith.maximumf %664, %666 : vector<16x128xf32>
    %c3_55 = arith.constant 3 : index
    %668 = memref.load %arg4[%c3_55] : memref<8xf32, #tpu.memory_space<smem>>
    %669 = vector.broadcast %668 : f32 to vector<16x128xf32>
    %670 = arith.addf %633, %669 : vector<16x128xf32>
    %cst_56 = arith.constant 0.00999999977 : f32
    %671 = vector.broadcast %cst_56 : f32 to vector<16x128xf32>
    %672 = arith.mulf %671, %670 : vector<16x128xf32>
    %673 = arith.maximumf %670, %672 : vector<16x128xf32>
    %c4_57 = arith.constant 4 : index
    %674 = memref.load %arg4[%c4_57] : memref<8xf32, #tpu.memory_space<smem>>
    %675 = vector.broadcast %674 : f32 to vector<16x128xf32>
    %676 = arith.addf %637, %675 : vector<16x128xf32>
    %cst_58 = arith.constant 0.00999999977 : f32
    %677 = vector.broadcast %cst_58 : f32 to vector<16x128xf32>
    %678 = arith.mulf %677, %676 : vector<16x128xf32>
    %679 = arith.maximumf %676, %678 : vector<16x128xf32>
    %c5_59 = arith.constant 5 : index
    %680 = memref.load %arg4[%c5_59] : memref<8xf32, #tpu.memory_space<smem>>
    %681 = vector.broadcast %680 : f32 to vector<16x128xf32>
    %682 = arith.addf %641, %681 : vector<16x128xf32>
    %cst_60 = arith.constant 0.00999999977 : f32
    %683 = vector.broadcast %cst_60 : f32 to vector<16x128xf32>
    %684 = arith.mulf %683, %682 : vector<16x128xf32>
    %685 = arith.maximumf %682, %684 : vector<16x128xf32>
    %c6_61 = arith.constant 6 : index
    %686 = memref.load %arg4[%c6_61] : memref<8xf32, #tpu.memory_space<smem>>
    %687 = vector.broadcast %686 : f32 to vector<16x128xf32>
    %688 = arith.addf %645, %687 : vector<16x128xf32>
    %cst_62 = arith.constant 0.00999999977 : f32
    %689 = vector.broadcast %cst_62 : f32 to vector<16x128xf32>
    %690 = arith.mulf %689, %688 : vector<16x128xf32>
    %691 = arith.maximumf %688, %690 : vector<16x128xf32>
    %c7_63 = arith.constant 7 : index
    %692 = memref.load %arg4[%c7_63] : memref<8xf32, #tpu.memory_space<smem>>
    %693 = vector.broadcast %692 : f32 to vector<16x128xf32>
    %694 = arith.addf %649, %693 : vector<16x128xf32>
    %cst_64 = arith.constant 0.00999999977 : f32
    %695 = vector.broadcast %cst_64 : f32 to vector<16x128xf32>
    %696 = arith.mulf %695, %694 : vector<16x128xf32>
    %697 = arith.maximumf %694, %696 : vector<16x128xf32>
    %c0_65 = arith.constant 0 : index
    %698 = memref.load %arg5[%c0_65] : memref<32xf32, #tpu.memory_space<smem>>
    %699 = vector.broadcast %698 : f32 to vector<16x128xf32>
    %700 = arith.mulf %655, %699 : vector<16x128xf32>
    %c4_66 = arith.constant 4 : index
    %701 = memref.load %arg5[%c4_66] : memref<32xf32, #tpu.memory_space<smem>>
    %702 = vector.broadcast %701 : f32 to vector<16x128xf32>
    %703 = arith.mulf %661, %702 : vector<16x128xf32>
    %704 = arith.addf %700, %703 : vector<16x128xf32>
    %c8_67 = arith.constant 8 : index
    %705 = memref.load %arg5[%c8_67] : memref<32xf32, #tpu.memory_space<smem>>
    %706 = vector.broadcast %705 : f32 to vector<16x128xf32>
    %707 = arith.mulf %667, %706 : vector<16x128xf32>
    %708 = arith.addf %704, %707 : vector<16x128xf32>
    %c12_68 = arith.constant 12 : index
    %709 = memref.load %arg5[%c12_68] : memref<32xf32, #tpu.memory_space<smem>>
    %710 = vector.broadcast %709 : f32 to vector<16x128xf32>
    %711 = arith.mulf %673, %710 : vector<16x128xf32>
    %712 = arith.addf %708, %711 : vector<16x128xf32>
    %c16_69 = arith.constant 16 : index
    %713 = memref.load %arg5[%c16_69] : memref<32xf32, #tpu.memory_space<smem>>
    %714 = vector.broadcast %713 : f32 to vector<16x128xf32>
    %715 = arith.mulf %679, %714 : vector<16x128xf32>
    %716 = arith.addf %712, %715 : vector<16x128xf32>
    %c20_70 = arith.constant 20 : index
    %717 = memref.load %arg5[%c20_70] : memref<32xf32, #tpu.memory_space<smem>>
    %718 = vector.broadcast %717 : f32 to vector<16x128xf32>
    %719 = arith.mulf %685, %718 : vector<16x128xf32>
    %720 = arith.addf %716, %719 : vector<16x128xf32>
    %c24_71 = arith.constant 24 : index
    %721 = memref.load %arg5[%c24_71] : memref<32xf32, #tpu.memory_space<smem>>
    %722 = vector.broadcast %721 : f32 to vector<16x128xf32>
    %723 = arith.mulf %691, %722 : vector<16x128xf32>
    %724 = arith.addf %720, %723 : vector<16x128xf32>
    %c28_72 = arith.constant 28 : index
    %725 = memref.load %arg5[%c28_72] : memref<32xf32, #tpu.memory_space<smem>>
    %726 = vector.broadcast %725 : f32 to vector<16x128xf32>
    %727 = arith.mulf %697, %726 : vector<16x128xf32>
    %728 = arith.addf %724, %727 : vector<16x128xf32>
    %c0_73 = arith.constant 0 : index
    %729 = memref.load %arg6[%c0_73] : memref<4xf32, #tpu.memory_space<smem>>
    %730 = vector.broadcast %729 : f32 to vector<16x128xf32>
    %731 = arith.addf %728, %730 : vector<16x128xf32>
    %cst_74 = arith.constant 0.00999999977 : f32
    %732 = vector.broadcast %cst_74 : f32 to vector<16x128xf32>
    %733 = arith.mulf %732, %731 : vector<16x128xf32>
    %734 = arith.maximumf %731, %733 : vector<16x128xf32>
    %c1_75 = arith.constant 1 : index
    %735 = memref.load %arg5[%c1_75] : memref<32xf32, #tpu.memory_space<smem>>
    %736 = vector.broadcast %735 : f32 to vector<16x128xf32>
    %737 = arith.mulf %655, %736 : vector<16x128xf32>
    %c5_76 = arith.constant 5 : index
    %738 = memref.load %arg5[%c5_76] : memref<32xf32, #tpu.memory_space<smem>>
    %739 = vector.broadcast %738 : f32 to vector<16x128xf32>
    %740 = arith.mulf %661, %739 : vector<16x128xf32>
    %741 = arith.addf %737, %740 : vector<16x128xf32>
    %c9_77 = arith.constant 9 : index
    %742 = memref.load %arg5[%c9_77] : memref<32xf32, #tpu.memory_space<smem>>
    %743 = vector.broadcast %742 : f32 to vector<16x128xf32>
    %744 = arith.mulf %667, %743 : vector<16x128xf32>
    %745 = arith.addf %741, %744 : vector<16x128xf32>
    %c13_78 = arith.constant 13 : index
    %746 = memref.load %arg5[%c13_78] : memref<32xf32, #tpu.memory_space<smem>>
    %747 = vector.broadcast %746 : f32 to vector<16x128xf32>
    %748 = arith.mulf %673, %747 : vector<16x128xf32>
    %749 = arith.addf %745, %748 : vector<16x128xf32>
    %c17_79 = arith.constant 17 : index
    %750 = memref.load %arg5[%c17_79] : memref<32xf32, #tpu.memory_space<smem>>
    %751 = vector.broadcast %750 : f32 to vector<16x128xf32>
    %752 = arith.mulf %679, %751 : vector<16x128xf32>
    %753 = arith.addf %749, %752 : vector<16x128xf32>
    %c21_80 = arith.constant 21 : index
    %754 = memref.load %arg5[%c21_80] : memref<32xf32, #tpu.memory_space<smem>>
    %755 = vector.broadcast %754 : f32 to vector<16x128xf32>
    %756 = arith.mulf %685, %755 : vector<16x128xf32>
    %757 = arith.addf %753, %756 : vector<16x128xf32>
    %c25_81 = arith.constant 25 : index
    %758 = memref.load %arg5[%c25_81] : memref<32xf32, #tpu.memory_space<smem>>
    %759 = vector.broadcast %758 : f32 to vector<16x128xf32>
    %760 = arith.mulf %691, %759 : vector<16x128xf32>
    %761 = arith.addf %757, %760 : vector<16x128xf32>
    %c29_82 = arith.constant 29 : index
    %762 = memref.load %arg5[%c29_82] : memref<32xf32, #tpu.memory_space<smem>>
    %763 = vector.broadcast %762 : f32 to vector<16x128xf32>
    %764 = arith.mulf %697, %763 : vector<16x128xf32>
    %765 = arith.addf %761, %764 : vector<16x128xf32>
    %c1_83 = arith.constant 1 : index
    %766 = memref.load %arg6[%c1_83] : memref<4xf32, #tpu.memory_space<smem>>
    %767 = vector.broadcast %766 : f32 to vector<16x128xf32>
    %768 = arith.addf %765, %767 : vector<16x128xf32>
    %cst_84 = arith.constant 0.00999999977 : f32
    %769 = vector.broadcast %cst_84 : f32 to vector<16x128xf32>
    %770 = arith.mulf %769, %768 : vector<16x128xf32>
    %771 = arith.maximumf %768, %770 : vector<16x128xf32>
    %c2_85 = arith.constant 2 : index
    %772 = memref.load %arg5[%c2_85] : memref<32xf32, #tpu.memory_space<smem>>
    %773 = vector.broadcast %772 : f32 to vector<16x128xf32>
    %774 = arith.mulf %655, %773 : vector<16x128xf32>
    %c6_86 = arith.constant 6 : index
    %775 = memref.load %arg5[%c6_86] : memref<32xf32, #tpu.memory_space<smem>>
    %776 = vector.broadcast %775 : f32 to vector<16x128xf32>
    %777 = arith.mulf %661, %776 : vector<16x128xf32>
    %778 = arith.addf %774, %777 : vector<16x128xf32>
    %c10_87 = arith.constant 10 : index
    %779 = memref.load %arg5[%c10_87] : memref<32xf32, #tpu.memory_space<smem>>
    %780 = vector.broadcast %779 : f32 to vector<16x128xf32>
    %781 = arith.mulf %667, %780 : vector<16x128xf32>
    %782 = arith.addf %778, %781 : vector<16x128xf32>
    %c14_88 = arith.constant 14 : index
    %783 = memref.load %arg5[%c14_88] : memref<32xf32, #tpu.memory_space<smem>>
    %784 = vector.broadcast %783 : f32 to vector<16x128xf32>
    %785 = arith.mulf %673, %784 : vector<16x128xf32>
    %786 = arith.addf %782, %785 : vector<16x128xf32>
    %c18_89 = arith.constant 18 : index
    %787 = memref.load %arg5[%c18_89] : memref<32xf32, #tpu.memory_space<smem>>
    %788 = vector.broadcast %787 : f32 to vector<16x128xf32>
    %789 = arith.mulf %679, %788 : vector<16x128xf32>
    %790 = arith.addf %786, %789 : vector<16x128xf32>
    %c22_90 = arith.constant 22 : index
    %791 = memref.load %arg5[%c22_90] : memref<32xf32, #tpu.memory_space<smem>>
    %792 = vector.broadcast %791 : f32 to vector<16x128xf32>
    %793 = arith.mulf %685, %792 : vector<16x128xf32>
    %794 = arith.addf %790, %793 : vector<16x128xf32>
    %c26_91 = arith.constant 26 : index
    %795 = memref.load %arg5[%c26_91] : memref<32xf32, #tpu.memory_space<smem>>
    %796 = vector.broadcast %795 : f32 to vector<16x128xf32>
    %797 = arith.mulf %691, %796 : vector<16x128xf32>
    %798 = arith.addf %794, %797 : vector<16x128xf32>
    %c30_92 = arith.constant 30 : index
    %799 = memref.load %arg5[%c30_92] : memref<32xf32, #tpu.memory_space<smem>>
    %800 = vector.broadcast %799 : f32 to vector<16x128xf32>
    %801 = arith.mulf %697, %800 : vector<16x128xf32>
    %802 = arith.addf %798, %801 : vector<16x128xf32>
    %c2_93 = arith.constant 2 : index
    %803 = memref.load %arg6[%c2_93] : memref<4xf32, #tpu.memory_space<smem>>
    %804 = vector.broadcast %803 : f32 to vector<16x128xf32>
    %805 = arith.addf %802, %804 : vector<16x128xf32>
    %cst_94 = arith.constant 0.00999999977 : f32
    %806 = vector.broadcast %cst_94 : f32 to vector<16x128xf32>
    %807 = arith.mulf %806, %805 : vector<16x128xf32>
    %808 = arith.maximumf %805, %807 : vector<16x128xf32>
    %c3_95 = arith.constant 3 : index
    %809 = memref.load %arg5[%c3_95] : memref<32xf32, #tpu.memory_space<smem>>
    %810 = vector.broadcast %809 : f32 to vector<16x128xf32>
    %811 = arith.mulf %655, %810 : vector<16x128xf32>
    %c7_96 = arith.constant 7 : index
    %812 = memref.load %arg5[%c7_96] : memref<32xf32, #tpu.memory_space<smem>>
    %813 = vector.broadcast %812 : f32 to vector<16x128xf32>
    %814 = arith.mulf %661, %813 : vector<16x128xf32>
    %815 = arith.addf %811, %814 : vector<16x128xf32>
    %c11_97 = arith.constant 11 : index
    %816 = memref.load %arg5[%c11_97] : memref<32xf32, #tpu.memory_space<smem>>
    %817 = vector.broadcast %816 : f32 to vector<16x128xf32>
    %818 = arith.mulf %667, %817 : vector<16x128xf32>
    %819 = arith.addf %815, %818 : vector<16x128xf32>
    %c15_98 = arith.constant 15 : index
    %820 = memref.load %arg5[%c15_98] : memref<32xf32, #tpu.memory_space<smem>>
    %821 = vector.broadcast %820 : f32 to vector<16x128xf32>
    %822 = arith.mulf %673, %821 : vector<16x128xf32>
    %823 = arith.addf %819, %822 : vector<16x128xf32>
    %c19_99 = arith.constant 19 : index
    %824 = memref.load %arg5[%c19_99] : memref<32xf32, #tpu.memory_space<smem>>
    %825 = vector.broadcast %824 : f32 to vector<16x128xf32>
    %826 = arith.mulf %679, %825 : vector<16x128xf32>
    %827 = arith.addf %823, %826 : vector<16x128xf32>
    %c23_100 = arith.constant 23 : index
    %828 = memref.load %arg5[%c23_100] : memref<32xf32, #tpu.memory_space<smem>>
    %829 = vector.broadcast %828 : f32 to vector<16x128xf32>
    %830 = arith.mulf %685, %829 : vector<16x128xf32>
    %831 = arith.addf %827, %830 : vector<16x128xf32>
    %c27_101 = arith.constant 27 : index
    %832 = memref.load %arg5[%c27_101] : memref<32xf32, #tpu.memory_space<smem>>
    %833 = vector.broadcast %832 : f32 to vector<16x128xf32>
    %834 = arith.mulf %691, %833 : vector<16x128xf32>
    %835 = arith.addf %831, %834 : vector<16x128xf32>
    %c31_102 = arith.constant 31 : index
    %836 = memref.load %arg5[%c31_102] : memref<32xf32, #tpu.memory_space<smem>>
    %837 = vector.broadcast %836 : f32 to vector<16x128xf32>
    %838 = arith.mulf %697, %837 : vector<16x128xf32>
    %839 = arith.addf %835, %838 : vector<16x128xf32>
    %c3_103 = arith.constant 3 : index
    %840 = memref.load %arg6[%c3_103] : memref<4xf32, #tpu.memory_space<smem>>
    %841 = vector.broadcast %840 : f32 to vector<16x128xf32>
    %842 = arith.addf %839, %841 : vector<16x128xf32>
    %cst_104 = arith.constant 0.00999999977 : f32
    %843 = vector.broadcast %cst_104 : f32 to vector<16x128xf32>
    %844 = arith.mulf %843, %842 : vector<16x128xf32>
    %845 = arith.maximumf %842, %844 : vector<16x128xf32>
    %c0_105 = arith.constant 0 : index
    %846 = memref.load %arg7[%c0_105] : memref<4xf32, #tpu.memory_space<smem>>
    %847 = vector.broadcast %846 : f32 to vector<16x128xf32>
    %848 = arith.mulf %734, %847 : vector<16x128xf32>
    %c1_106 = arith.constant 1 : index
    %849 = memref.load %arg7[%c1_106] : memref<4xf32, #tpu.memory_space<smem>>
    %850 = vector.broadcast %849 : f32 to vector<16x128xf32>
    %851 = arith.mulf %771, %850 : vector<16x128xf32>
    %852 = arith.addf %848, %851 : vector<16x128xf32>
    %c2_107 = arith.constant 2 : index
    %853 = memref.load %arg7[%c2_107] : memref<4xf32, #tpu.memory_space<smem>>
    %854 = vector.broadcast %853 : f32 to vector<16x128xf32>
    %855 = arith.mulf %808, %854 : vector<16x128xf32>
    %856 = arith.addf %852, %855 : vector<16x128xf32>
    %c3_108 = arith.constant 3 : index
    %857 = memref.load %arg7[%c3_108] : memref<4xf32, #tpu.memory_space<smem>>
    %858 = vector.broadcast %857 : f32 to vector<16x128xf32>
    %859 = arith.mulf %845, %858 : vector<16x128xf32>
    %860 = arith.addf %856, %859 : vector<16x128xf32>
    %c0_109 = arith.constant 0 : index
    %861 = memref.load %arg8[%c0_109] : memref<1xf32, #tpu.memory_space<smem>>
    %862 = vector.broadcast %861 : f32 to vector<16x128xf32>
    %863 = arith.addf %860, %862 : vector<16x128xf32>
    %cst_110 = arith.constant 0.000000e+00 : f32
    %864 = vector.broadcast %cst_110 : f32 to vector<16x128xf32>
    %865 = arith.subf %864, %863 : vector<16x128xf32>
    %866 = math.exp %865 : vector<16x128xf32>
    %cst_111 = arith.constant 1.000000e+00 : f32
    %867 = vector.broadcast %cst_111 : f32 to vector<16x128xf32>
    %868 = arith.addf %867, %866 : vector<16x128xf32>
    %869 = tpu.reciprocal %868 {approx = true} : vector<16x128xf32> -> vector<16x128xf32>
    %c0_112 = arith.constant 0 : index
    %c0_113 = arith.constant 0 : index
    %870 = vector.load %arg10[%c0_112, %c0_113] : memref<16x128xf32, #tpu.memory_space<vmem>>, vector<16x128xf32>
    tpu.vector_store %arg10[%c0_112, %c0_113], %869 {strides = array<i32>} : memref<16x128xf32, #tpu.memory_space<vmem>>, vector<16x128xf32>,
    return
  }
  func.func @transform_0(%arg0: i32) -> i32 {
    %c0_i32 = arith.constant 0 : i32
    %c0_i32_0 = arith.constant 0 : i32
    return %c0_i32 : i32
  }
  func.func @transform_1(%arg0: i32) -> i32 {
    %c0_i32 = arith.constant 0 : i32
    %c0_i32_0 = arith.constant 0 : i32
    return %c0_i32 : i32
  }
  func.func @transform_2(%arg0: i32) -> i32 {
    %c0_i32 = arith.constant 0 : i32
    %c0_i32_0 = arith.constant 0 : i32
    return %c0_i32 : i32
  }
  func.func @transform_3(%arg0: i32) -> i32 {
    %c0_i32 = arith.constant 0 : i32
    %c0_i32_0 = arith.constant 0 : i32
    return %c0_i32 : i32
  }
  func.func @transform_4(%arg0: i32) -> i32 {
    %c0_i32 = arith.constant 0 : i32
    %c0_i32_0 = arith.constant 0 : i32
    return %c0_i32 : i32
  }
  func.func @transform_5(%arg0: i32) -> i32 {
    %c0_i32 = arith.constant 0 : i32
    %c0_i32_0 = arith.constant 0 : i32
    return %c0_i32 : i32
  }
  func.func @transform_6(%arg0: i32) -> i32 {
    %c0_i32 = arith.constant 0 : i32
    %c0_i32_0 = arith.constant 0 : i32
    return %c0_i32 : i32
  }
  func.func @transform_7(%arg0: i32) -> i32 {
    %c0_i32 = arith.constant 0 : i32
    %c0_i32_0 = arith.constant 0 : i32
    return %c0_i32 : i32
  }
  func.func @transform_8(%arg0: i32) -> (i32, i32) {
    %c0_i32 = arith.constant 0 : i32
    %c0_i32_0 = arith.constant 0 : i32
    return %arg0, %c0_i32 : i32, i32
  }
  func.func @transform_9(%arg0: i32) -> (i32, i32) {
    %c0_i32 = arith.constant 0 : i32
    %c0_i32_0 = arith.constant 0 : i32
    return %arg0, %c0_i32 : i32, i32
  }
}

</mosaic_0001>

<bundles_post_ra>
// kernel: branch_1_fun.2
= control target key start
LH: loop header
LB: loop body
LE: loop exit
PB: predicated region body
PF: predicated region fallthrough
CT: control target
= control target key end

     0   :  { %15 = vsyncpa [#allocation4], 0  ;;  %s3176_s0 = inlined_call_operand.vmem [shape: f32[16], index: 0, kind: input, shape index: {}]   ;;  %s3177_s1 = inlined_call_operand.vmem [shape: f32[16], index: 1, kind: input, shape index: {}]   ;;  %s3178_s2 = inlined_call_operand.vmem [shape: f32[128], index: 2, kind: input, shape index: {}]   ;;  %s3179_s3 = inlined_call_operand.vmem [shape: f32[8], index: 3, kind: input, shape index: {}]   ;;  %s3180_s4 = inlined_call_operand.vmem [shape: f32[32], index: 4, kind: input, shape index: {}]   ;;  %s3181_s5 = inlined_call_operand.vmem [shape: f32[4], index: 5, kind: input, shape index: {}]   ;;  %s3182_s6 = inlined_call_operand.vmem [shape: f32[4], index: 6, kind: input, shape index: {}]   ;;  %s3183_s7 = inlined_call_operand.<no memory space> [shape: f32[1], index: 7, kind: input, shape index: {}]   ;;  %s3184_s8 = inlined_call_operand.vmem [shape: f32[16,128], index: 8, kind: input, shape index: {}]   ;;  %s3185_s9 = inlined_call_operand.vmem [shape: f32[16,128], index: 9, kind: output, shape index: {}]  }
   0x1   :  { %16 = vsyncpa [#allocation6], 0 }
   0x2   :  { %17 = vsyncpa [#allocation9], 0  ;;  %s35_s11 = sshll.u32 %s3177_s1, 4  ;;  %s36_s11 = int_to_ptr.vmem [resolvable:$true] %s35_s11 }
   0x3   :  { %18 = vsyncpa [#allocation12], 0  ;;  %s55_s14 = sshll.u32 %s3179_s3, 4  ;;  %s1611_s15 = scalar_lea.vmem %s36_s11, 16  ;;  %s56_s14 = int_to_ptr.vmem [resolvable:$true] %s55_s14 }
   0x4   :  { %p1612_p0 = scmp.ne.s32.totalorder %s36_s11, %s1611_s15  ;;  %p1616_p1 = scmp.lt.s32.totalorder %s36_s11, %s36_s11 }
   0x5   :  { %p1617_p2 = scmp.lt.s32.totalorder %s1611_s15, %s1611_s15 }
   0x7   :  { %p1618_p3 = por %p1617_p2, %p1616_p1 }
   0x9   :  { %p1619_p4 = pnand %p1618_p3, %p1612_p0 }
   0xb   :  { %1622 = shalt.err (!%p1619_p4)
}
   0xc   :  { %s1703_s16 = smov [#allocation5]   ;;  %s1623_s17 = scalar_lea.vmem %s56_s14, 16 }
   0xd   :  { %38 = dma.vmem_to_smem %s36_s11, 16, %s1703_s16, [#allocation6]  }
   0xe   :  { %p1624_p5 = scmp.ne.s32.totalorder %s56_s14, %s1623_s17  ;;  %p1628_p6 = scmp.lt.s32.totalorder %s56_s14, %s56_s14 }
   0xf   :  { %p1629_p7 = scmp.lt.s32.totalorder %s1623_s17, %s1623_s17 }
  0x11   :  { %p1630_p8 = por %p1629_p7, %p1628_p6 }
  0x13   :  { %p1631_p9 = pnand %p1630_p8, %p1624_p5 }
  0x15   :  { %1634 = shalt.err (!%p1631_p9)
}
  0x16   :  { %s1704_s1 = smov [#allocation8]   ;;  %s75_s19 = sshll.u32 %s3181_s5, 4  ;;  %s76_s19 = int_to_ptr.vmem [resolvable:$true] %s75_s19 }
  0x17   :  { %58 = dma.vmem_to_smem %s56_s14, 16, %s1704_s1, [#allocation9]  }
  0x18   :  { %s25_s22 = sshll.u32 %s3176_s0, 4  ;;  %s1635_s23 = scalar_lea.vmem %s76_s19, 16  ;;  %s26_s22 = int_to_ptr.vmem [resolvable:$true] %s25_s22 }
  0x19   :  { %p1636_p10 = scmp.ne.s32.totalorder %s76_s19, %s1635_s23  ;;  %p1640_p11 = scmp.lt.s32.totalorder %s76_s19, %s76_s19 }
  0x1a   :  { %p1641_p12 = scmp.lt.s32.totalorder %s1635_s23, %s1635_s23 }
  0x1c   :  { %p1642_p13 = por %p1641_p12, %p1640_p11 }
  0x1e   :  { %p1643_p0 = pnand %p1642_p13, %p1636_p10 }
  0x20   :  { %1646 = shalt.err (!%p1643_p0)
}
  0x21   :  { %s1705_s24 = smov [#allocation11]   ;;  %s1647_s25 = scalar_lea.vmem %s26_s22, 16 }
  0x22   :  { %78 = dma.vmem_to_smem %s76_s19, 16, %s1705_s24, [#allocation12]  }
  0x23   :  { %p1648_p1 = scmp.ne.s32.totalorder %s26_s22, %s1647_s25  ;;  %p1652_p2 = scmp.lt.s32.totalorder %s26_s22, %s26_s22 }
  0x24   :  { %p1653_p3 = scmp.lt.s32.totalorder %s1647_s25, %s1647_s25 }
  0x26   :  { %p1654_p4 = por %p1653_p3, %p1652_p2 }
  0x28   :  { %p1655_p5 = pnand %p1654_p4, %p1648_p1 }
  0x2a   :  { %1658 = shalt.err (!%p1655_p5)
}
  0x2b   :  { %s1706_s5 = smov [#allocation3]   ;;  %s45_s27 = sshll.u32 %s3178_s2, 4  ;;  %s46_s27 = int_to_ptr.vmem [resolvable:$true] %s45_s27 }
  0x2c   :  { %28 = dma.vmem_to_smem %s26_s22, 16, %s1706_s5, [#allocation4]  }
  0x2d   :  { %s65_s30 = sshll.u32 %s3180_s4, 4  ;;  %s1659_s10 = scalar_lea.vmem %s46_s27, 16  ;;  %s66_s30 = int_to_ptr.vmem [resolvable:$true] %s65_s30 }
  0x2e   :  { %p1660_p6 = scmp.ne.s32.totalorder %s46_s27, %s1659_s10  ;;  %p1664_p7 = scmp.lt.s32.totalorder %s46_s27, %s46_s27 }
  0x2f   :  { %p1665_p8 = scmp.lt.s32.totalorder %s1659_s10, %s1659_s10 }
  0x31   :  { %p1666_p9 = por %p1665_p8, %p1664_p7 }
  0x33   :  { %p1667_p10 = pnand %p1666_p9, %p1660_p6 }
  0x35   :  { %1670 = shalt.err (!%p1667_p10)
}
  0x36   :  { %s1707_s11 = smov [#allocation7]   ;;  %s1671_s12 = scalar_lea.vmem %s66_s30, 16 }
  0x37   :  { %48 = dma.vmem_to_smem %s46_s27, 16, %s1707_s11, [#allocation6]  }
  0x38   :  { %p1672_p11 = scmp.ne.s32.totalorder %s66_s30, %s1671_s12  ;;  %p1676_p12 = scmp.lt.s32.totalorder %s66_s30, %s66_s30 }
  0x39   :  { %p1677_p13 = scmp.lt.s32.totalorder %s1671_s12, %s1671_s12 }
  0x3b   :  { %p1678_p0 = por %p1677_p13, %p1676_p12 }
  0x3d   :  { %p1679_p1 = pnand %p1678_p0, %p1672_p11 }
  0x3f   :  { %1682 = shalt.err (!%p1679_p1)
}
  0x40   :  { %s1708_s2 = smov [#allocation10]   ;;  %s85_s14 = sshll.u32 %s3182_s6, 4  ;;  %s86_s14 = int_to_ptr.vmem [resolvable:$true] %s85_s14 }
  0x41   :  { %68 = dma.vmem_to_smem %s66_s30, 16, %s1708_s2, [#allocation9]  }
  0x42   :  { %s1683_s15 = scalar_lea.vmem %s86_s14, 16  ;;  %p1688_p3 = scmp.lt.s32.totalorder %s86_s14, %s86_s14 }
  0x43   :  { %p1684_p2 = scmp.ne.s32.totalorder %s86_s14, %s1683_s15  ;;  %p1689_p4 = scmp.lt.s32.totalorder %s1683_s15, %s1683_s15 }
  0x45   :  { %p1690_p5 = por %p1689_p4, %p1688_p3 }
  0x47   :  { %p1691_p6 = pnand %p1690_p5, %p1684_p2 }
  0x49   :  { %1694 = shalt.err (!%p1691_p6)
}
  0x4a   :  { %s1709_s16 = smov [#allocation13]  }
  0x4b   :  { %88 = dma.vmem_to_smem %s86_s14, 16, %s1709_s16, [#allocation12]  }
  0x4c   :  { %1695 = dma.done.wait [#allocation4], 16  }
  0x4d   :  { %1696 = vsyncadd [#allocation4], 4294967280 }
  0x4e   :  { %1697 = dma.done.wait [#allocation6], 32  }
  0x4f   :  { %1698 = vsyncadd [#allocation6], 4294967264 }
  0x50   :  { %1699 = dma.done.wait [#allocation9], 32  }
  0x51   :  { %1700 = vsyncadd [#allocation9], 4294967264 }
  0x52   :  { %1701 = dma.done.wait [#allocation12], 32  }
  0x53   :  { %1702 = vsyncadd [#allocation12], 4294967264 }
  0x54   :  { %114 = sfence }
  0x55   :  { %v115_v0 = vld [vmem:[%s3184_s8] sm:$0xff]  ;;  %v116_v1 = vld [vmem:[%s3184_s8 + $0x8] sm:$0xff]  ;;  %s1787_s18 = sld [smem:[#allocation3]]  ;;  %s1793_s21 = sld [smem:[#allocation7 + $0x1]] }
  0x56   :  { %s1789_s19 = sld [smem:[#allocation5]]  ;;  %1599 = vlog2.f32 %v115_v0  ;;  %s1795_s22 = sld [smem:[#allocation7 + $0x2]] }
  0x57   :  { %s1791_s20 = sld [smem:[#allocation7]]  ;;  %1601 = vlog2.f32 %v116_v1  ;;  %s1797_s23 = sld [smem:[#allocation7 + $0x3]] }
  0x58   :  { %s1799_s24 = sld [smem:[#allocation7 + $0x4]]  ;;  %s1801_s8 = sld [smem:[#allocation7 + $0x5]] }
  0x59   :  { %s1803_s25 = sld [smem:[#allocation7 + $0x6]]  ;;  %s1805_s5 = sld [smem:[#allocation7 + $0x7]] }
  0x5a   :  { %s1807_s0 = sld [smem:[#allocation3 + $0x1]]  ;;  %s1811_s27 = sld [smem:[#allocation7 + $0x8]] }
  0x5b   :  { %s1809_s26 = sld [smem:[#allocation5 + $0x1]]  ;;  %s1815_s29 = sld [smem:[#allocation7 + $0xa]]  ;;  %v122_v2 = vstv %s1787_s18  ;;  %v138_v5 = vstv %s1793_s21 }
  0x5c   :  { %s1813_s28 = sld [smem:[#allocation7 + $0x9]]  ;;  %s1817_s30 = sld [smem:[#allocation7 + $0xb]]  ;;  %v126_v3 = vstv %s1789_s19  ;;  %v142_v6 = vstv %s1795_s22 }
  0x5d   :  { %s1819_s10 = sld [smem:[#allocation7 + $0xc]]  ;;  %s1821_s11 = sld [smem:[#allocation7 + $0xd]]  ;;  %v134_v4 = vstv %s1791_s20  ;;  %v146_v8 = vstv %s1797_s23 }
  0x5e   :  { %s1824_s12 = sld [smem:[#allocation7 + $0xe]]  ;;  %s1826_s2 = sld [smem:[#allocation7 + $0xf]]  ;;  %v150_v9 = vstv %s1799_s24  ;;  %v154_v10 = vstv %s1801_s8 }
  0x5f   :  { %s1832_s4 = sld [smem:[#allocation3 + $0x2]]  ;;  %s1840_s14 = sld [smem:[#allocation7 + $0x10]]  ;;  %v158_v14 = vstv %s1803_s25  ;;  %v162_v15 = vstv %s1805_s5 }
  0x60   :  { %s1834_s13 = sld [smem:[#allocation5 + $0x2]]  ;;  %v1600_v7 = vpop.eup %1599  ;;  %v166_v11 = vstv %s1807_s0  ;;  %s1847_s15 = sld [smem:[#allocation7 + $0x11]]  ;;  %v178_v18 = vstv %s1811_s27 }
  0x61   :  { %v1602_v12 = vpop.eup %1601  ;;  %v1842_v13 = vmul.f32 0.6931472, %v1600_v7  ;;  %v170_v16 = vstv %s1809_s26  ;;  %s1849_s16 = sld [smem:[#allocation7 + $0x12]]  ;;  %v190_v20 = vstv %s1815_s29  ;;  %s1856_s6 = sld [smem:[#allocation7 + $0x13]] }
  0x62   :  { %v1851_v17 = vmul.f32 0.6931472, %v1602_v12  ;;  %v184_v19 = vstv %s1813_s28  ;;  %v196_v23 = vstv %s1817_s30  ;;  %s1883_s17 = sld [smem:[#allocation7 + $0x14]]  ;;  %s1885_s1 = sld [smem:[#allocation7 + $0x15]] }
  0x63   :  { %v123_v21 = vmul.f32 %v122_v2, %v1842_v13  ;;  %v167_v22 = vmul.f32 %v166_v11, %v1842_v13  ;;  %v202_v24 = vstv %s1819_s10  ;;  %v208_v27 = vstv %s1821_s11  ;;  %s1887_s3 = sld [smem:[#allocation7 + $0x16]]  ;;  %s1891_s18 = sld [smem:[#allocation7 + $0x17]] }
  0x64   :  { %v124_v25 = vmul.f32 %v122_v2, %v1851_v17  ;;  %v168_v26 = vmul.f32 %v166_v11, %v1851_v17  ;;  %v214_v28 = vstv %s1824_s12  ;;  %v220_v39 = vstv %s1826_s2  ;;  %s1893_s19 = sld [smem:[#allocation3 + $0x3]]  ;;  %s1912_s21 = sld [smem:[#allocation7 + $0x18]] }
  0x65   :  { %v127_v29 = vadd.f32 %v126_v3, %v123_v21  ;;  %v171_v30 = vadd.f32 %v170_v16, %v167_v22  ;;  %v226_v31 = vstv %s1832_s4  ;;  %v238_v40 = vstv %s1840_s14  ;;  %s1895_s20 = sld [smem:[#allocation5 + $0x3]]  ;;  %s1918_s22 = sld [smem:[#allocation7 + $0x19]] }
  0x66   :  { %v230_v32 = vstv %s1834_s13  ;;  %v128_v33 = vadd.f32 %v126_v3, %v124_v25  ;;  %v172_v34 = vadd.f32 %v170_v16, %v168_v26  ;;  %v227_v35 = vmul.f32 %v226_v31, %v1842_v13  ;;  %s1920_s23 = sld [smem:[#allocation7 + $0x1a]]  ;;  %s1930_s24 = sld [smem:[#allocation7 + $0x1b]] }
  0x67   :  { %v228_v36 = vmul.f32 %v226_v31, %v1851_v17  ;;  %v129_v37 = vmul.f32 0.01, %v127_v29  ;;  %v173_v38 = vmul.f32 0.01, %v171_v30  ;;  %v244_v47 = vstv %s1847_s15  ;;  %s1932_s8 = sld [smem:[#allocation7 + $0x1c]]  ;;  %s1941_s25 = sld [smem:[#allocation7 + $0x1d]] }
  0x68   :  { %v130_v41 = vmul.f32 0.01, %v128_v33  ;;  %v174_v42 = vmul.f32 0.01, %v172_v34  ;;  %v1872_v43 = vadd.f32 %v230_v32, %v227_v35  ;;  %v250_v48 = vstv %s1849_s16  ;;  %s1943_s5 = sld [smem:[#allocation7 + $0x1e]]  ;;  %s1953_s0 = sld [smem:[#allocation7 + $0x1f]] }
  0x69   :  { %v1874_v44 = vadd.f32 %v230_v32, %v228_v36  ;;  %v131_v45 = vmax.f32 %v127_v29, %v129_v37  ;;  %v175_v46 = vmax.f32 %v171_v30, %v173_v38  ;;  %v256_v52 = vstv %s1856_s6  ;;  %s1955_s26 = sld [smem:[#allocation3 + $0x4]]  ;;  %s1967_s28 = sld [smem:[#allocation7 + $0x20]] }
  0x6a   :  { %v132_v49 = vmax.f32 %v128_v33, %v130_v41  ;;  %v176_v50 = vmax.f32 %v172_v34, %v174_v42  ;;  %v233_v51 = vmul.f32 0.01, %v1872_v43  ;;  %s1965_s27 = sld [smem:[#allocation5 + $0x4]]  ;;  %s1969_s29 = sld [smem:[#allocation7 + $0x21]] }
  0x6b   :  { %v135_v53 = vmul.f32 %v134_v4, %v131_v45  ;;  %v139_v54 = vmul.f32 %v138_v5, %v131_v45  ;;  %v143_v55 = vmul.f32 %v142_v6, %v131_v45  ;;  %v234_v56 = vmul.f32 0.01, %v1874_v44  ;;  %s1971_s30 = sld [smem:[#allocation7 + $0x22]]  ;;  %s1973_s10 = sld [smem:[#allocation7 + $0x23]] }
  0x6c   :  { %v136_v57 = vmul.f32 %v134_v4, %v132_v49  ;;  %v140_v58 = vmul.f32 %v138_v5, %v132_v49  ;;  %v144_v59 = vmul.f32 %v142_v6, %v132_v49  ;;  %v147_v60 = vmul.f32 %v146_v8, %v131_v45  ;;  %s1975_s11 = sld [smem:[#allocation7 + $0x24]]  ;;  %s1985_s12 = sld [smem:[#allocation7 + $0x25]] }
  0x6d   :  { %v148_v61 = vmul.f32 %v146_v8, %v132_v49  ;;  %v151_v62 = vmul.f32 %v150_v9, %v131_v45  ;;  %v152_v63 = vmul.f32 %v150_v9, %v132_v49  ;;  %v155_v0 = vmul.f32 %v154_v10, %v131_v45  ;;  %s1987_s2 = sld [smem:[#allocation7 + $0x26]]  ;;  %s1997_s4 = sld [smem:[#allocation7 + $0x27]] }
  0x6e   :  { %v156_v1 = vmul.f32 %v154_v10, %v132_v49  ;;  %v159_v2 = vmul.f32 %v158_v14, %v131_v45  ;;  %v160_v3 = vmul.f32 %v158_v14, %v132_v49  ;;  %v163_v7 = vmul.f32 %v162_v15, %v131_v45  ;;  %s1999_s13 = sld [smem:[#allocation3 + $0x5]]  ;;  %s2028_s15 = sld [smem:[#allocation7 + $0x28]] }
  0x6f   :  { %v179_v11 = vmul.f32 %v178_v18, %v175_v46  ;;  %v180_v12 = vmul.f32 %v178_v18, %v176_v50  ;;  %v185_v16 = vmul.f32 %v184_v19, %v175_v46  ;;  %v186_v21 = vmul.f32 %v184_v19, %v176_v50  ;;  %s2010_s14 = sld [smem:[#allocation5 + $0x5]]  ;;  %s2031_s16 = sld [smem:[#allocation7 + $0x29]] }
  0x70   :  { %v164_v4 = vmul.f32 %v162_v15, %v132_v49  ;;  %v191_v5 = vmul.f32 %v190_v20, %v175_v46  ;;  %v192_v6 = vmul.f32 %v190_v20, %v176_v50  ;;  %v197_v8 = vmul.f32 %v196_v23, %v175_v46  ;;  %s2033_s6 = sld [smem:[#allocation7 + $0x2a]] }
  0x71   :  { %v181_v9 = vadd.f32 %v179_v11, %v135_v53  ;;  %v182_v10 = vadd.f32 %v180_v12, %v136_v57  ;;  %v187_v14 = vadd.f32 %v185_v16, %v139_v54  ;;  %v198_v18 = vmul.f32 %v196_v23, %v176_v50 }
  0x72   :  { %v188_v19 = vadd.f32 %v186_v21, %v140_v58  ;;  %v193_v22 = vadd.f32 %v191_v5, %v143_v55  ;;  %v194_v25 = vadd.f32 %v192_v6, %v144_v59  ;;  %v199_v15 = vadd.f32 %v197_v8, %v147_v60 }
  0x73   :  { %v203_v20 = vmul.f32 %v202_v24, %v175_v46  ;;  %v204_v26 = vmul.f32 %v202_v24, %v176_v50  ;;  %v209_v29 = vmul.f32 %v208_v27, %v175_v46  ;;  %v210_v30 = vmul.f32 %v208_v27, %v176_v50 }
  0x74   :  { %v215_v31 = vmul.f32 %v214_v28, %v175_v46  ;;  %v216_v32 = vmul.f32 %v214_v28, %v176_v50  ;;  %v221_v23 = vmul.f32 %v220_v39, %v175_v46  ;;  %v222_v33 = vmul.f32 %v220_v39, %v176_v50 }
  0x75   :  { %v200_v34 = vadd.f32 %v198_v18, %v148_v61  ;;  %v205_v35 = vadd.f32 %v203_v20, %v151_v62  ;;  %v206_v36 = vadd.f32 %v204_v26, %v152_v63  ;;  %v211_v37 = vadd.f32 %v209_v29, %v155_v0 }
  0x76   :  { %v212_v24 = vadd.f32 %v210_v30, %v156_v1  ;;  %v217_v38 = vadd.f32 %v215_v31, %v159_v2  ;;  %v218_v27 = vadd.f32 %v216_v32, %v160_v3  ;;  %v223_v41 = vadd.f32 %v221_v23, %v163_v7 }
  0x77   :  { %v224_v42 = vadd.f32 %v222_v33, %v164_v4  ;;  %v235_v28 = vmax.f32 %v1872_v43, %v233_v51  ;;  %v236_v39 = vmax.f32 %v1874_v44, %v234_v56  ;;  %v262_v45 = vstv %s1883_s17  ;;  %s2038_s17 = sld [smem:[#allocation7 + $0x2b]] }
  0x78   :  { %v268_v46 = vstv %s1885_s1  ;;  %v274_v49 = vstv %s1887_s3  ;;  %v280_v50 = vstv %s1891_s18  ;;  %v286_v53 = vstv %s1893_s19  ;;  %s2040_s1 = sld [smem:[#allocation7 + $0x2c]]  ;;  %s2046_s3 = sld [smem:[#allocation7 + $0x2d]] }
  0x79   :  { %v239_v43 = vmul.f32 %v238_v40, %v235_v28  ;;  %v240_v51 = vmul.f32 %v238_v40, %v236_v39  ;;  %v245_v44 = vmul.f32 %v244_v47, %v235_v28  ;;  %v246_v54 = vmul.f32 %v244_v47, %v236_v39  ;;  %s2048_s18 = sld [smem:[#allocation7 + $0x2e]]  ;;  %s2050_s19 = sld [smem:[#allocation7 + $0x2f]] }
  0x7a   :  { %v251_v55 = vmul.f32 %v250_v48, %v235_v28  ;;  %v252_v56 = vmul.f32 %v250_v48, %v236_v39  ;;  %v257_v57 = vmul.f32 %v256_v52, %v235_v28  ;;  %v290_v58 = vstv %s1895_s20  ;;  %s2078_s20 = sld [smem:[#allocation3 + $0x6]] }
  0x7b   :  { %v1945_v40 = vadd.f32 %v239_v43, %v181_v9  ;;  %v1947_v59 = vadd.f32 %v240_v51, %v182_v10  ;;  %v1949_v47 = vadd.f32 %v245_v44, %v187_v14  ;;  %v258_v60 = vmul.f32 %v256_v52, %v236_v39 }
  0x7c   :  { %v1957_v48 = vadd.f32 %v246_v54, %v188_v19  ;;  %v1959_v61 = vadd.f32 %v251_v55, %v193_v22  ;;  %v1961_v62 = vadd.f32 %v252_v56, %v194_v25  ;;  %v1963_v63 = vadd.f32 %v257_v57, %v199_v15 }
  0x7d   :  { %v263_v0 = vmul.f32 %v262_v45, %v235_v28  ;;  %v264_v1 = vmul.f32 %v262_v45, %v236_v39  ;;  %v269_v2 = vmul.f32 %v268_v46, %v235_v28  ;;  %v270_v52 = vmul.f32 %v268_v46, %v236_v39 }
  0x7e   :  { %v275_v3 = vmul.f32 %v274_v49, %v235_v28  ;;  %v276_v7 = vmul.f32 %v274_v49, %v236_v39  ;;  %v281_v11 = vmul.f32 %v280_v50, %v235_v28  ;;  %v282_v12 = vmul.f32 %v280_v50, %v236_v39 }
  0x7f   :  { %v1977_v16 = vadd.f32 %v258_v60, %v200_v34  ;;  %v1979_v21 = vadd.f32 %v263_v0, %v205_v35  ;;  %v1981_v4 = vadd.f32 %v264_v1, %v206_v36  ;;  %v1983_v5 = vadd.f32 %v269_v2, %v211_v37 }
  0x80   :  { %v1989_v6 = vadd.f32 %v270_v52, %v212_v24  ;;  %v1991_v8 = vadd.f32 %v275_v3, %v217_v38  ;;  %v1993_v9 = vadd.f32 %v276_v7, %v218_v27  ;;  %v1995_v10 = vadd.f32 %v281_v11, %v223_v41 }
  0x81   :  { %v2001_v14 = vadd.f32 %v282_v12, %v224_v42  ;;  %v287_v18 = vmul.f32 %v286_v53, %v1842_v13  ;;  %v288_v19 = vmul.f32 %v286_v53, %v1851_v17  ;;  %v298_v22 = vstv %s1912_s21  ;;  %s2080_s21 = sld [smem:[#allocation5 + $0x6]] }
  0x82   :  { %v304_v25 = vstv %s1918_s22  ;;  %v310_v15 = vstv %s1920_s23  ;;  %v316_v20 = vstv %s1930_s24  ;;  %v322_v26 = vstv %s1932_s8  ;;  %s2089_s22 = sld [smem:[#allocation7 + $0x30]]  ;;  %s2093_s23 = sld [smem:[#allocation7 + $0x31]] }
  0x83   :  { %v291_v29 = vadd.f32 %v290_v58, %v287_v18  ;;  %v292_v30 = vadd.f32 %v290_v58, %v288_v19  ;;  %v328_v31 = vstv %s1941_s25  ;;  %v334_v32 = vstv %s1943_s5  ;;  %s2095_s24 = sld [smem:[#allocation7 + $0x32]]  ;;  %s2097_s8 = sld [smem:[#allocation7 + $0x33]] }
  0x84   :  { %v340_v23 = vstv %s1953_s0  ;;  %v346_v33 = vstv %s1955_s26  ;;  %v350_v34 = vstv %s1965_s27  ;;  %v358_v35 = vstv %s1967_s28  ;;  %s2099_s25 = sld [smem:[#allocation7 + $0x34]]  ;;  %s2117_s5 = sld [smem:[#allocation7 + $0x35]] }
  0x85   :  { %v293_v36 = vmul.f32 0.01, %v291_v29  ;;  %v294_v37 = vmul.f32 0.01, %v292_v30  ;;  %v347_v24 = vmul.f32 %v346_v33, %v1842_v13  ;;  %v348_v38 = vmul.f32 %v346_v33, %v1851_v17  ;;  %s2128_s0 = sld [smem:[#allocation7 + $0x36]]  ;;  %s2138_s26 = sld [smem:[#allocation7 + $0x37]] }
  0x86   :  { %v364_v27 = vstv %s1969_s29  ;;  %v370_v41 = vstv %s1971_s30  ;;  %v376_v42 = vstv %s1973_s10  ;;  %v382_v28 = vstv %s1975_s11  ;;  %s2140_s27 = sld [smem:[#allocation3 + $0x7]]  ;;  %s2151_s29 = sld [smem:[#allocation7 + $0x38]] }
  0x87   :  { %v295_v39 = vmax.f32 %v291_v29, %v293_v36  ;;  %v296_v45 = vmax.f32 %v292_v30, %v294_v37  ;;  %v351_v46 = vadd.f32 %v350_v34, %v347_v24  ;;  %v388_v49 = vstv %s1985_s12  ;;  %s2149_s28 = sld [smem:[#allocation5 + $0x7]]  ;;  %s2155_s30 = sld [smem:[#allocation7 + $0x39]] }
  0x88   :  { %v352_v50 = vadd.f32 %v350_v34, %v348_v38  ;;  %v394_v53 = vstv %s1987_s2  ;;  %v400_v43 = vstv %s1997_s4  ;;  %v406_v51 = vstv %s1999_s13  ;;  %s2157_s10 = sld [smem:[#allocation7 + $0x3a]]  ;;  %s2159_s11 = sld [smem:[#allocation7 + $0x3b]] }
  0x89   :  { %v299_v44 = vmul.f32 %v298_v22, %v295_v39  ;;  %v300_v54 = vmul.f32 %v298_v22, %v296_v45  ;;  %v305_v55 = vmul.f32 %v304_v25, %v295_v39  ;;  %v306_v56 = vmul.f32 %v304_v25, %v296_v45  ;;  %s2161_s12 = sld [smem:[#allocation7 + $0x3c]]  ;;  %s2179_s2 = sld [smem:[#allocation7 + $0x3d]] }
  0x8a   :  { %v311_v57 = vmul.f32 %v310_v15, %v295_v39  ;;  %v312_v58 = vmul.f32 %v310_v15, %v296_v45  ;;  %v317_v60 = vmul.f32 %v316_v20, %v295_v39  ;;  %v410_v0 = vstv %s2010_s14  ;;  %s2192_s4 = sld [smem:[#allocation7 + $0x3e]]  ;;  %s2202_s13 = sld [smem:[#allocation7 + $0x3f]] }
  0x8b   :  { %v301_v1 = vadd.f32 %v299_v44, %v1945_v40  ;;  %v302_v2 = vadd.f32 %v300_v54, %v1947_v59  ;;  %v307_v52 = vadd.f32 %v305_v55, %v1949_v47  ;;  %v318_v3 = vmul.f32 %v316_v20, %v296_v45  ;;  %s2204_s14 = sld [smem:[#allocation3 + $0x8]] }
  0x8c   :  { %v308_v7 = vadd.f32 %v306_v56, %v1957_v48  ;;  %v313_v11 = vadd.f32 %v311_v57, %v1959_v61  ;;  %v314_v12 = vadd.f32 %v312_v58, %v1961_v62  ;;  %v319_v18 = vadd.f32 %v317_v60, %v1963_v63 }
  0x8d   :  { %v323_v40 = vmul.f32 %v322_v26, %v295_v39  ;;  %v324_v59 = vmul.f32 %v322_v26, %v296_v45  ;;  %v329_v47 = vmul.f32 %v328_v31, %v295_v39  ;;  %v330_v19 = vmul.f32 %v328_v31, %v296_v45 }
  0x8e   :  { %v335_v22 = vmul.f32 %v334_v32, %v295_v39  ;;  %v336_v25 = vmul.f32 %v334_v32, %v296_v45  ;;  %v341_v15 = vmul.f32 %v340_v23, %v295_v39  ;;  %v342_v20 = vmul.f32 %v340_v23, %v296_v45 }
  0x8f   :  { %v320_v48 = vadd.f32 %v318_v3, %v1977_v16  ;;  %v325_v61 = vadd.f32 %v323_v40, %v1979_v21  ;;  %v326_v62 = vadd.f32 %v324_v59, %v1981_v4  ;;  %v331_v63 = vadd.f32 %v329_v47, %v1983_v5 }
  0x90   :  { %v332_v26 = vadd.f32 %v330_v19, %v1989_v6  ;;  %v337_v29 = vadd.f32 %v335_v22, %v1991_v8  ;;  %v338_v30 = vadd.f32 %v336_v25, %v1993_v9  ;;  %v343_v31 = vadd.f32 %v341_v15, %v1995_v10 }
  0x91   :  { %v353_v32 = vmul.f32 0.01, %v351_v46  ;;  %v354_v16 = vmul.f32 0.01, %v352_v50  ;;  %v407_v21 = vmul.f32 %v406_v51, %v1842_v13  ;;  %v408_v4 = vmul.f32 %v406_v51, %v1851_v17 }
  0x92   :  { %v344_v5 = vadd.f32 %v342_v20, %v2001_v14  ;;  %v418_v6 = vstv %s2028_s15  ;;  %v424_v8 = vstv %s2031_s16  ;;  %v430_v9 = vstv %s2033_s6  ;;  %s2213_s15 = sld [smem:[#allocation5 + $0x8]]  ;;  %s2225_s6 = sld [smem:[#allocation7 + $0x41]] }
  0x93   :  { %v355_v23 = vmax.f32 %v351_v46, %v353_v32  ;;  %v356_v10 = vmax.f32 %v352_v50, %v354_v16  ;;  %v411_v33 = vadd.f32 %v410_v0, %v407_v21  ;;  %v436_v34 = vstv %s2038_s17  ;;  %s2215_s16 = sld [smem:[#allocation7 + $0x40]]  ;;  %s2227_s17 = sld [smem:[#allocation7 + $0x42]] }
  0x94   :  { %v412_v36 = vadd.f32 %v410_v0, %v408_v4  ;;  %v442_v37 = vstv %s2040_s1  ;;  %v448_v24 = vstv %s2046_s3  ;;  %v454_v38 = vstv %s2048_s18  ;;  %s2237_s1 = sld [smem:[#allocation7 + $0x43]]  ;;  %s2239_s3 = sld [smem:[#allocation7 + $0x44]] }
  0x95   :  { %v359_v39 = vmul.f32 %v358_v35, %v355_v23  ;;  %v360_v14 = vmul.f32 %v358_v35, %v356_v10  ;;  %v365_v45 = vmul.f32 %v364_v27, %v355_v23  ;;  %v366_v51 = vmul.f32 %v364_v27, %v356_v10  ;;  %s2249_s18 = sld [smem:[#allocation7 + $0x45]] }
  0x96   :  { %v371_v46 = vmul.f32 %v370_v41, %v355_v23  ;;  %v372_v50 = vmul.f32 %v370_v41, %v356_v10  ;;  %v377_v44 = vmul.f32 %v376_v42, %v355_v23  ;;  %v460_v54 = vstv %s2050_s19  ;;  %s2251_s19 = sld [smem:[#allocation7 + $0x46]] }
  0x97   :  { %v361_v35 = vadd.f32 %v359_v39, %v301_v1  ;;  %v362_v27 = vadd.f32 %v360_v14, %v302_v2  ;;  %v367_v55 = vadd.f32 %v365_v45, %v307_v52  ;;  %v378_v56 = vmul.f32 %v376_v42, %v356_v10 }
  0x98   :  { %v368_v41 = vadd.f32 %v366_v51, %v308_v7  ;;  %v373_v57 = vadd.f32 %v371_v46, %v313_v11  ;;  %v374_v58 = vadd.f32 %v372_v50, %v314_v12  ;;  %v379_v60 = vadd.f32 %v377_v44, %v319_v18 }
  0x99   :  { %v383_v0 = vmul.f32 %v382_v28, %v355_v23  ;;  %v384_v1 = vmul.f32 %v382_v28, %v356_v10  ;;  %v389_v2 = vmul.f32 %v388_v49, %v355_v23  ;;  %v390_v42 = vmul.f32 %v388_v49, %v356_v10 }
  0x9a   :  { %v395_v52 = vmul.f32 %v394_v53, %v355_v23  ;;  %v396_v3 = vmul.f32 %v394_v53, %v356_v10  ;;  %v401_v7 = vmul.f32 %v400_v43, %v355_v23  ;;  %v402_v11 = vmul.f32 %v400_v43, %v356_v10 }
  0x9b   :  { %v380_v12 = vadd.f32 %v378_v56, %v320_v48  ;;  %v385_v18 = vadd.f32 %v383_v0, %v325_v61  ;;  %v386_v28 = vadd.f32 %v384_v1, %v326_v62  ;;  %v391_v40 = vadd.f32 %v389_v2, %v331_v63 }
  0x9c   :  { %v392_v49 = vadd.f32 %v390_v42, %v332_v26  ;;  %v397_v59 = vadd.f32 %v395_v52, %v337_v29  ;;  %v398_v47 = vadd.f32 %v396_v3, %v338_v30  ;;  %v403_v19 = vadd.f32 %v401_v7, %v343_v31 }
  0x9d   :  { %v413_v53 = vmul.f32 0.01, %v411_v33  ;;  %v414_v22 = vmul.f32 0.01, %v412_v36  ;;  %v466_v25 = vstv %s2078_s20  ;;  %v470_v43 = vstv %s2080_s21  ;;  %s2253_s20 = sld [smem:[#allocation7 + $0x47]]  ;;  %s2255_s21 = sld [smem:[#allocation3 + $0x9]] }
  0x9e   :  { %v404_v15 = vadd.f32 %v402_v11, %v344_v5  ;;  %v467_v20 = vmul.f32 %v466_v25, %v1842_v13  ;;  %v468_v48 = vmul.f32 %v466_v25, %v1851_v17  ;;  %v478_v61 = vstv %s2089_s22  ;;  %s2273_s22 = sld [smem:[#allocation5 + $0x9]] }
  0x9f   :  { %v415_v62 = vmax.f32 %v411_v33, %v413_v53  ;;  %v416_v63 = vmax.f32 %v412_v36, %v414_v22  ;;  %v484_v26 = vstv %s2093_s23  ;;  %v490_v29 = vstv %s2095_s24  ;;  %s2300_s23 = sld [smem:[#allocation7 + $0x48]]  ;;  %s2309_s24 = sld [smem:[#allocation7 + $0x49]] }
  0xa0   :  { %v471_v30 = vadd.f32 %v470_v43, %v467_v20  ;;  %v472_v31 = vadd.f32 %v470_v43, %v468_v48  ;;  %v496_v32 = vstv %s2097_s8  ;;  %v502_v16 = vstv %s2099_s25  ;;  %s2311_s8 = sld [smem:[#allocation7 + $0x4a]]  ;;  %s2318_s25 = sld [smem:[#allocation7 + $0x4b]] }
  0xa1   :  { %v419_v21 = vmul.f32 %v418_v6, %v415_v62  ;;  %v420_v4 = vmul.f32 %v418_v6, %v416_v63  ;;  %v425_v5 = vmul.f32 %v424_v8, %v415_v62  ;;  %v426_v23 = vmul.f32 %v424_v8, %v416_v63 }
  0xa2   :  { %v431_v10 = vmul.f32 %v430_v9, %v415_v62  ;;  %v432_v33 = vmul.f32 %v430_v9, %v416_v63  ;;  %v437_v36 = vmul.f32 %v436_v34, %v415_v62  ;;  %v508_v39 = vstv %s2117_s5  ;;  %s2320_s5 = sld [smem:[#allocation7 + $0x4c]] }
  0xa3   :  { %v421_v6 = vadd.f32 %v419_v21, %v361_v35  ;;  %v422_v8 = vadd.f32 %v420_v4, %v362_v27  ;;  %v427_v14 = vadd.f32 %v425_v5, %v367_v55  ;;  %v438_v45 = vmul.f32 %v436_v34, %v416_v63 }
  0xa4   :  { %v428_v9 = vadd.f32 %v426_v23, %v368_v41  ;;  %v433_v51 = vadd.f32 %v431_v10, %v373_v57  ;;  %v434_v46 = vadd.f32 %v432_v33, %v374_v58  ;;  %v439_v50 = vadd.f32 %v437_v36, %v379_v60 }
  0xa5   :  { %v443_v44 = vmul.f32 %v442_v37, %v415_v62  ;;  %v444_v35 = vmul.f32 %v442_v37, %v416_v63  ;;  %v449_v27 = vmul.f32 %v448_v24, %v415_v62  ;;  %v450_v34 = vmul.f32 %v448_v24, %v416_v63 }
  0xa6   :  { %v455_v55 = vmul.f32 %v454_v38, %v415_v62  ;;  %v456_v56 = vmul.f32 %v454_v38, %v416_v63  ;;  %v461_v41 = vmul.f32 %v460_v54, %v415_v62  ;;  %v462_v57 = vmul.f32 %v460_v54, %v416_v63 }
  0xa7   :  { %v440_v37 = vadd.f32 %v438_v45, %v380_v12  ;;  %v445_v58 = vadd.f32 %v443_v44, %v385_v18  ;;  %v446_v60 = vadd.f32 %v444_v35, %v386_v28  ;;  %v451_v0 = vadd.f32 %v449_v27, %v391_v40 }
  0xa8   :  { %v452_v24 = vadd.f32 %v450_v34, %v392_v49  ;;  %v457_v1 = vadd.f32 %v455_v55, %v397_v59  ;;  %v458_v2 = vadd.f32 %v456_v56, %v398_v47  ;;  %v463_v38 = vadd.f32 %v461_v41, %v403_v19 }
  0xa9   :  { %v464_v42 = vadd.f32 %v462_v57, %v404_v15  ;;  %v473_v52 = vmul.f32 0.01, %v471_v30  ;;  %v474_v54 = vmul.f32 0.01, %v472_v31  ;;  %v514_v3 = vstv %s2128_s0  ;;  %s2326_s0 = sld [smem:[#allocation7 + $0x4d]] }
  0xaa   :  { %v520_v7 = vstv %s2138_s26  ;;  %v526_v11 = vstv %s2140_s27  ;;  %v530_v12 = vstv %s2149_s28  ;;  %v538_v18 = vstv %s2151_s29  ;;  %s2328_s26 = sld [smem:[#allocation7 + $0x4e]]  ;;  %s2338_s27 = sld [smem:[#allocation7 + $0x4f]] }
  0xab   :  { %v475_v28 = vmax.f32 %v471_v30, %v473_v52  ;;  %v476_v40 = vmax.f32 %v472_v31, %v474_v54  ;;  %v527_v49 = vmul.f32 %v526_v11, %v1842_v13  ;;  %v544_v59 = vstv %s2155_s30  ;;  %s2366_s28 = sld [smem:[#allocation3 + $0xa]]  ;;  %s2377_s30 = sld [smem:[#allocation7 + $0x50]] }
  0xac   :  { %v528_v47 = vmul.f32 %v526_v11, %v1851_v17  ;;  %v550_v19 = vstv %s2157_s10  ;;  %v556_v53 = vstv %s2159_s11  ;;  %v562_v22 = vstv %s2161_s12  ;;  %s2368_s29 = sld [smem:[#allocation5 + $0xa]]  ;;  %s2381_s10 = sld [smem:[#allocation7 + $0x51]] }
  0xad   :  { %v479_v25 = vmul.f32 %v478_v61, %v475_v28  ;;  %v480_v43 = vmul.f32 %v478_v61, %v476_v40  ;;  %v485_v15 = vmul.f32 %v484_v26, %v475_v28  ;;  %v486_v20 = vmul.f32 %v484_v26, %v476_v40  ;;  %s2383_s11 = sld [smem:[#allocation7 + $0x52]]  ;;  %s2385_s12 = sld [smem:[#allocation7 + $0x53]] }
  0xae   :  { %v491_v48 = vmul.f32 %v490_v29, %v475_v28  ;;  %v492_v62 = vmul.f32 %v490_v29, %v476_v40  ;;  %v497_v63 = vmul.f32 %v496_v32, %v475_v28  ;;  %v568_v30 = vstv %s2179_s2  ;;  %s2387_s2 = sld [smem:[#allocation7 + $0x54]] }
  0xaf   :  { %v2217_v61 = vadd.f32 %v479_v25, %v421_v6  ;;  %v2219_v26 = vadd.f32 %v480_v43, %v422_v8  ;;  %v2221_v31 = vadd.f32 %v485_v15, %v427_v14  ;;  %v498_v21 = vmul.f32 %v496_v32, %v476_v40 }
  0xb0   :  { %v2229_v29 = vadd.f32 %v486_v20, %v428_v9  ;;  %v2231_v4 = vadd.f32 %v491_v48, %v433_v51  ;;  %v2233_v5 = vadd.f32 %v492_v62, %v434_v46  ;;  %v2235_v23 = vadd.f32 %v497_v63, %v439_v50 }
  0xb1   :  { %v503_v10 = vmul.f32 %v502_v16, %v475_v28  ;;  %v504_v32 = vmul.f32 %v502_v16, %v476_v40  ;;  %v509_v33 = vmul.f32 %v508_v39, %v475_v28  ;;  %v510_v36 = vmul.f32 %v508_v39, %v476_v40 }
  0xb2   :  { %v515_v6 = vmul.f32 %v514_v3, %v475_v28  ;;  %v516_v8 = vmul.f32 %v514_v3, %v476_v40  ;;  %v521_v14 = vmul.f32 %v520_v7, %v475_v28  ;;  %v522_v45 = vmul.f32 %v520_v7, %v476_v40 }
  0xb3   :  { %v2257_v16 = vadd.f32 %v498_v21, %v440_v37  ;;  %v2259_v39 = vadd.f32 %v503_v10, %v445_v58  ;;  %v2261_v9 = vadd.f32 %v504_v32, %v446_v60  ;;  %v2263_v51 = vadd.f32 %v509_v33, %v451_v0 }
  0xb4   :  { %v2265_v46 = vadd.f32 %v510_v36, %v452_v24  ;;  %v2267_v50 = vadd.f32 %v515_v6, %v457_v1  ;;  %v2269_v44 = vadd.f32 %v516_v8, %v458_v2  ;;  %v2271_v35 = vadd.f32 %v521_v14, %v463_v38 }
  0xb5   :  { %v2275_v27 = vadd.f32 %v522_v45, %v464_v42  ;;  %v531_v34 = vadd.f32 %v530_v12, %v527_v49  ;;  %v532_v55 = vadd.f32 %v530_v12, %v528_v47  ;;  %v574_v56 = vstv %s2192_s4  ;;  %s2405_s4 = sld [smem:[#allocation7 + $0x55]] }
  0xb6   :  { %v580_v41 = vstv %s2202_s13  ;;  %v586_v57 = vstv %s2204_s14  ;;  %v590_v37 = vstv %s2213_s15  ;;  %v598_v58 = vstv %s2215_s16  ;;  %s2416_s13 = sld [smem:[#allocation7 + $0x56]]  ;;  %s2426_s14 = sld [smem:[#allocation7 + $0x57]] }
  0xb7   :  { %v533_v60 = vmul.f32 0.01, %v531_v34  ;;  %v534_v0 = vmul.f32 0.01, %v532_v55  ;;  %v587_v24 = vmul.f32 %v586_v57, %v1842_v13  ;;  %v588_v1 = vmul.f32 %v586_v57, %v1851_v17  ;;  %s2428_s15 = sld [smem:[#allocation3 + $0xb]] }
  0xb8   :  { %v604_v2 = vstv %s2225_s6  ;;  %v610_v38 = vstv %s2227_s17  ;;  %v616_v42 = vstv %s2237_s1  ;;  %v622_v52 = vstv %s2239_s3  ;;  %s2437_s16 = sld [smem:[#allocation5 + $0xb]]  ;;  %s2439_s6 = sld [smem:[#allocation7 + $0x58]] }
  0xb9   :  { %v535_v54 = vmax.f32 %v531_v34, %v533_v60  ;;  %v536_v3 = vmax.f32 %v532_v55, %v534_v0  ;;  %v591_v7 = vadd.f32 %v590_v37, %v587_v24  ;;  %v628_v11 = vstv %s2249_s18  ;;  %s2443_s17 = sld [smem:[#allocation7 + $0x59]]  ;;  %s2445_s1 = sld [smem:[#allocation7 + $0x5a]] }
  0xba   :  { %v592_v12 = vadd.f32 %v590_v37, %v588_v1  ;;  %v634_v28 = vstv %s2251_s19  ;;  %v640_v40 = vstv %s2253_s20  ;;  %v646_v49 = vstv %s2255_s21  ;;  %s2447_s3 = sld [smem:[#allocation7 + $0x5b]]  ;;  %s2449_s18 = sld [smem:[#allocation7 + $0x5c]] }
  0xbb   :  { %v539_v47 = vmul.f32 %v538_v18, %v535_v54  ;;  %v540_v25 = vmul.f32 %v538_v18, %v536_v3  ;;  %v545_v43 = vmul.f32 %v544_v59, %v535_v54  ;;  %v546_v15 = vmul.f32 %v544_v59, %v536_v3  ;;  %s2467_s19 = sld [smem:[#allocation7 + $0x5d]]  ;;  %s2480_s20 = sld [smem:[#allocation7 + $0x5e]] }
  0xbc   :  { %v551_v20 = vmul.f32 %v550_v19, %v535_v54  ;;  %v552_v48 = vmul.f32 %v550_v19, %v536_v3  ;;  %v557_v62 = vmul.f32 %v556_v53, %v535_v54  ;;  %v650_v63 = vstv %s2273_s22  ;;  %s2490_s21 = sld [smem:[#allocation7 + $0x5f]]  ;;  %s2492_s22 = sld [smem:[#allocation3 + $0xc]] }
  0xbd   :  { %v541_v18 = vadd.f32 %v539_v47, %v2217_v61  ;;  %v542_v59 = vadd.f32 %v540_v25, %v2219_v26  ;;  %v547_v21 = vadd.f32 %v545_v43, %v2221_v31  ;;  %v558_v10 = vmul.f32 %v556_v53, %v536_v3 }
  0xbe   :  { %v548_v19 = vadd.f32 %v546_v15, %v2229_v29  ;;  %v553_v32 = vadd.f32 %v551_v20, %v2231_v4  ;;  %v554_v33 = vadd.f32 %v552_v48, %v2233_v5  ;;  %v559_v36 = vadd.f32 %v557_v62, %v2235_v23 }
  0xbf   :  { %v563_v61 = vmul.f32 %v562_v22, %v535_v54  ;;  %v564_v53 = vmul.f32 %v562_v22, %v536_v3  ;;  %v569_v26 = vmul.f32 %v568_v30, %v535_v54  ;;  %v570_v31 = vmul.f32 %v568_v30, %v536_v3 }
  0xc0   :  { %v575_v6 = vmul.f32 %v574_v56, %v535_v54  ;;  %v576_v29 = vmul.f32 %v574_v56, %v536_v3  ;;  %v581_v8 = vmul.f32 %v580_v41, %v535_v54  ;;  %v582_v4 = vmul.f32 %v580_v41, %v536_v3 }
  0xc1   :  { %v560_v5 = vadd.f32 %v558_v10, %v2257_v16  ;;  %v565_v23 = vadd.f32 %v563_v61, %v2259_v39  ;;  %v566_v14 = vadd.f32 %v564_v53, %v2261_v9  ;;  %v571_v22 = vadd.f32 %v569_v26, %v2263_v51 }
  0xc2   :  { %v572_v30 = vadd.f32 %v570_v31, %v2265_v46  ;;  %v577_v45 = vadd.f32 %v575_v6, %v2267_v50  ;;  %v578_v34 = vadd.f32 %v576_v29, %v2269_v44  ;;  %v583_v55 = vadd.f32 %v581_v8, %v2271_v35 }
  0xc3   :  { %v593_v56 = vmul.f32 0.01, %v591_v7  ;;  %v594_v16 = vmul.f32 0.01, %v592_v12  ;;  %v647_v39 = vmul.f32 %v646_v49, %v1842_v13  ;;  %v648_v9 = vmul.f32 %v646_v49, %v1851_v17 }
  0xc4   :  { %v584_v51 = vadd.f32 %v582_v4, %v2275_v27  ;;  %v658_v46 = vstv %s2300_s23  ;;  %v664_v50 = vstv %s2309_s24  ;;  %v670_v44 = vstv %s2311_s8  ;;  %s2501_s23 = sld [smem:[#allocation5 + $0xc]]  ;;  %s2503_s24 = sld [smem:[#allocation7 + $0x60]] }
  0xc5   :  { %v595_v41 = vmax.f32 %v591_v7, %v593_v56  ;;  %v596_v35 = vmax.f32 %v592_v12, %v594_v16  ;;  %v651_v57 = vadd.f32 %v650_v63, %v647_v39  ;;  %v676_v37 = vstv %s2318_s25  ;;  %s2513_s8 = sld [smem:[#allocation7 + $0x61]]  ;;  %s2515_s25 = sld [smem:[#allocation7 + $0x62]] }
  0xc6   :  { %v652_v60 = vadd.f32 %v650_v63, %v648_v9  ;;  %v682_v0 = vstv %s2320_s5  ;;  %v688_v24 = vstv %s2326_s0  ;;  %v694_v1 = vstv %s2328_s26  ;;  %s2525_s5 = sld [smem:[#allocation7 + $0x63]]  ;;  %s2527_s0 = sld [smem:[#allocation7 + $0x64]] }
  0xc7   :  { %v599_v54 = vmul.f32 %v598_v58, %v595_v41  ;;  %v600_v27 = vmul.f32 %v598_v58, %v596_v35  ;;  %v605_v3 = vmul.f32 %v604_v2, %v595_v41  ;;  %v606_v49 = vmul.f32 %v604_v2, %v596_v35  ;;  %s2537_s26 = sld [smem:[#allocation7 + $0x65]] }
  0xc8   :  { %v611_v7 = vmul.f32 %v610_v38, %v595_v41  ;;  %v612_v12 = vmul.f32 %v610_v38, %v596_v35  ;;  %v617_v47 = vmul.f32 %v616_v42, %v595_v41  ;;  %v700_v25 = vstv %s2338_s27  ;;  %s2539_s27 = sld [smem:[#allocation7 + $0x66]] }
  0xc9   :  { %v601_v58 = vadd.f32 %v599_v54, %v541_v18  ;;  %v602_v2 = vadd.f32 %v600_v27, %v542_v59  ;;  %v607_v43 = vadd.f32 %v605_v3, %v547_v21  ;;  %v618_v15 = vmul.f32 %v616_v42, %v596_v35 }
  0xca   :  { %v608_v38 = vadd.f32 %v606_v49, %v548_v19  ;;  %v613_v20 = vadd.f32 %v611_v7, %v553_v32  ;;  %v614_v48 = vadd.f32 %v612_v12, %v554_v33  ;;  %v619_v62 = vadd.f32 %v617_v47, %v559_v36 }
  0xcb   :  { %v623_v63 = vmul.f32 %v622_v52, %v595_v41  ;;  %v624_v18 = vmul.f32 %v622_v52, %v596_v35  ;;  %v629_v59 = vmul.f32 %v628_v11, %v595_v41  ;;  %v630_v42 = vmul.f32 %v628_v11, %v596_v35 }
  0xcc   :  { %v635_v21 = vmul.f32 %v634_v28, %v595_v41  ;;  %v636_v10 = vmul.f32 %v634_v28, %v596_v35  ;;  %v641_v19 = vmul.f32 %v640_v40, %v595_v41  ;;  %v642_v32 = vmul.f32 %v640_v40, %v596_v35 }
  0xcd   :  { %v620_v33 = vadd.f32 %v618_v15, %v560_v5  ;;  %v625_v36 = vadd.f32 %v623_v63, %v565_v23  ;;  %v626_v52 = vadd.f32 %v624_v18, %v566_v14  ;;  %v631_v61 = vadd.f32 %v629_v59, %v571_v22 }
  0xce   :  { %v632_v11 = vadd.f32 %v630_v42, %v572_v30  ;;  %v637_v53 = vadd.f32 %v635_v21, %v577_v45  ;;  %v638_v26 = vadd.f32 %v636_v10, %v578_v34  ;;  %v643_v31 = vadd.f32 %v641_v19, %v583_v55 }
  0xcf   :  { %v653_v28 = vmul.f32 0.01, %v651_v57  ;;  %v654_v6 = vmul.f32 0.01, %v652_v60  ;;  %v706_v29 = vstv %s2366_s28  ;;  %v710_v40 = vstv %s2368_s29  ;;  %s2541_s28 = sld [smem:[#allocation7 + $0x67]]  ;;  %s2543_s29 = sld [smem:[#allocation3 + $0xd]] }
  0xd0   :  { %v644_v8 = vadd.f32 %v642_v32, %v584_v51  ;;  %v707_v4 = vmul.f32 %v706_v29, %v1842_v13  ;;  %v708_v5 = vmul.f32 %v706_v29, %v1851_v17  ;;  %v718_v23 = vstv %s2377_s30  ;;  %s2561_s30 = sld [smem:[#allocation5 + $0xd]] }
  0xd1   :  { %v655_v14 = vmax.f32 %v651_v57, %v653_v28  ;;  %v656_v22 = vmax.f32 %v652_v60, %v654_v6  ;;  %v724_v30 = vstv %s2381_s10  ;;  %v730_v45 = vstv %s2383_s11  ;;  %s2588_s10 = sld [smem:[#allocation7 + $0x68]]  ;;  %s2597_s11 = sld [smem:[#allocation7 + $0x69]] }
  0xd2   :  { %v711_v34 = vadd.f32 %v710_v40, %v707_v4  ;;  %v712_v55 = vadd.f32 %v710_v40, %v708_v5  ;;  %v736_v56 = vstv %s2385_s12  ;;  %v742_v16 = vstv %s2387_s2  ;;  %s2599_s12 = sld [smem:[#allocation7 + $0x6a]]  ;;  %s2606_s2 = sld [smem:[#allocation7 + $0x6b]] }
  0xd3   :  { %v659_v39 = vmul.f32 %v658_v46, %v655_v14  ;;  %v660_v9 = vmul.f32 %v658_v46, %v656_v22  ;;  %v665_v51 = vmul.f32 %v664_v50, %v655_v14  ;;  %v666_v41 = vmul.f32 %v664_v50, %v656_v22 }
  0xd4   :  { %v671_v35 = vmul.f32 %v670_v44, %v655_v14  ;;  %v672_v57 = vmul.f32 %v670_v44, %v656_v22  ;;  %v677_v60 = vmul.f32 %v676_v37, %v655_v14  ;;  %v748_v54 = vstv %s2405_s4  ;;  %s2608_s4 = sld [smem:[#allocation7 + $0x6c]] }
  0xd5   :  { %v661_v46 = vadd.f32 %v659_v39, %v601_v58  ;;  %v662_v50 = vadd.f32 %v660_v9, %v602_v2  ;;  %v667_v27 = vadd.f32 %v665_v51, %v607_v43  ;;  %v678_v3 = vmul.f32 %v676_v37, %v656_v22 }
  0xd6   :  { %v668_v44 = vadd.f32 %v666_v41, %v608_v38  ;;  %v673_v49 = vadd.f32 %v671_v35, %v613_v20  ;;  %v674_v7 = vadd.f32 %v672_v57, %v614_v48  ;;  %v679_v12 = vadd.f32 %v677_v60, %v619_v62 }
  0xd7   :  { %v683_v47 = vmul.f32 %v682_v0, %v655_v14  ;;  %v684_v58 = vmul.f32 %v682_v0, %v656_v22  ;;  %v689_v2 = vmul.f32 %v688_v24, %v655_v14  ;;  %v690_v37 = vmul.f32 %v688_v24, %v656_v22 }
  0xd8   :  { %v695_v43 = vmul.f32 %v694_v1, %v655_v14  ;;  %v696_v15 = vmul.f32 %v694_v1, %v656_v22  ;;  %v701_v38 = vmul.f32 %v700_v25, %v655_v14  ;;  %v702_v20 = vmul.f32 %v700_v25, %v656_v22 }
  0xd9   :  { %v680_v0 = vadd.f32 %v678_v3, %v620_v33  ;;  %v685_v48 = vadd.f32 %v683_v47, %v625_v36  ;;  %v686_v62 = vadd.f32 %v684_v58, %v626_v52  ;;  %v691_v63 = vadd.f32 %v689_v2, %v631_v61 }
  0xda   :  { %v692_v24 = vadd.f32 %v690_v37, %v632_v11  ;;  %v697_v18 = vadd.f32 %v695_v43, %v637_v53  ;;  %v698_v59 = vadd.f32 %v696_v15, %v638_v26  ;;  %v703_v1 = vadd.f32 %v701_v38, %v643_v31 }
  0xdb   :  { %v704_v42 = vadd.f32 %v702_v20, %v644_v8  ;;  %v713_v21 = vmul.f32 0.01, %v711_v34  ;;  %v714_v25 = vmul.f32 0.01, %v712_v55  ;;  %v754_v10 = vstv %s2416_s13  ;;  %s2614_s13 = sld [smem:[#allocation7 + $0x6d]] }
  0xdc   :  { %v760_v19 = vstv %s2426_s14  ;;  %v766_v32 = vstv %s2428_s15  ;;  %v770_v33 = vstv %s2437_s16  ;;  %v778_v36 = vstv %s2439_s6  ;;  %s2616_s14 = sld [smem:[#allocation7 + $0x6e]]  ;;  %s2626_s15 = sld [smem:[#allocation7 + $0x6f]] }
  0xdd   :  { %v715_v52 = vmax.f32 %v711_v34, %v713_v21  ;;  %v716_v61 = vmax.f32 %v712_v55, %v714_v25  ;;  %v767_v11 = vmul.f32 %v766_v32, %v1842_v13  ;;  %v784_v53 = vstv %s2443_s17  ;;  %s2654_s16 = sld [smem:[#allocation3 + $0xe]]  ;;  %s2665_s17 = sld [smem:[#allocation7 + $0x70]] }
  0xde   :  { %v768_v26 = vmul.f32 %v766_v32, %v1851_v17  ;;  %v790_v31 = vstv %s2445_s1  ;;  %v796_v28 = vstv %s2447_s3  ;;  %v802_v6 = vstv %s2449_s18  ;;  %s2656_s6 = sld [smem:[#allocation5 + $0xe]]  ;;  %s2669_s1 = sld [smem:[#allocation7 + $0x71]] }
  0xdf   :  { %v719_v29 = vmul.f32 %v718_v23, %v715_v52  ;;  %v720_v40 = vmul.f32 %v718_v23, %v716_v61  ;;  %v725_v8 = vmul.f32 %v724_v30, %v715_v52  ;;  %v726_v4 = vmul.f32 %v724_v30, %v716_v61  ;;  %s2671_s3 = sld [smem:[#allocation7 + $0x72]]  ;;  %s2673_s18 = sld [smem:[#allocation7 + $0x73]] }
  0xe0   :  { %v731_v5 = vmul.f32 %v730_v45, %v715_v52  ;;  %v732_v14 = vmul.f32 %v730_v45, %v716_v61  ;;  %v737_v22 = vmul.f32 %v736_v56, %v715_v52  ;;  %v808_v34 = vstv %s2467_s19  ;;  %s2675_s19 = sld [smem:[#allocation7 + $0x74]] }
  0xe1   :  { %v2505_v23 = vadd.f32 %v719_v29, %v661_v46  ;;  %v2507_v30 = vadd.f32 %v720_v40, %v662_v50  ;;  %v2509_v55 = vadd.f32 %v725_v8, %v667_v27  ;;  %v738_v39 = vmul.f32 %v736_v56, %v716_v61 }
  0xe2   :  { %v2517_v45 = vadd.f32 %v726_v4, %v668_v44  ;;  %v2519_v9 = vadd.f32 %v731_v5, %v673_v49  ;;  %v2521_v51 = vadd.f32 %v732_v14, %v674_v7  ;;  %v2523_v41 = vadd.f32 %v737_v22, %v679_v12 }
  0xe3   :  { %v743_v35 = vmul.f32 %v742_v16, %v715_v52  ;;  %v744_v56 = vmul.f32 %v742_v16, %v716_v61  ;;  %v749_v57 = vmul.f32 %v748_v54, %v715_v52  ;;  %v750_v60 = vmul.f32 %v748_v54, %v716_v61 }
  0xe4   :  { %v755_v46 = vmul.f32 %v754_v10, %v715_v52  ;;  %v756_v50 = vmul.f32 %v754_v10, %v716_v61  ;;  %v761_v27 = vmul.f32 %v760_v19, %v715_v52  ;;  %v762_v3 = vmul.f32 %v760_v19, %v716_v61 }
  0xe5   :  { %v2545_v16 = vadd.f32 %v738_v39, %v680_v0  ;;  %v2547_v54 = vadd.f32 %v743_v35, %v685_v48  ;;  %v2549_v44 = vadd.f32 %v744_v56, %v686_v62  ;;  %v2551_v49 = vadd.f32 %v749_v57, %v691_v63 }
  0xe6   :  { %v2553_v7 = vadd.f32 %v750_v60, %v692_v24  ;;  %v2555_v12 = vadd.f32 %v755_v46, %v697_v18  ;;  %v2557_v47 = vadd.f32 %v756_v50, %v698_v59  ;;  %v2559_v58 = vadd.f32 %v761_v27, %v703_v1 }
  0xe7   :  { %v2563_v2 = vadd.f32 %v762_v3, %v704_v42  ;;  %v771_v37 = vadd.f32 %v770_v33, %v767_v11  ;;  %v772_v43 = vadd.f32 %v770_v33, %v768_v26  ;;  %v814_v15 = vstv %s2480_s20  ;;  %s2693_s20 = sld [smem:[#allocation7 + $0x75]] }
  0xe8   :  { %v820_v38 = vstv %s2490_s21  ;;  %v826_v20 = vstv %s2492_s22  ;;  %v830_v0 = vstv %s2501_s23  ;;  %v838_v48 = vstv %s2503_s24  ;;  %s2704_s21 = sld [smem:[#allocation7 + $0x76]]  ;;  %s2714_s22 = sld [smem:[#allocation7 + $0x77]] }
  0xe9   :  { %v773_v62 = vmul.f32 0.01, %v771_v37  ;;  %v774_v63 = vmul.f32 0.01, %v772_v43  ;;  %v827_v24 = vmul.f32 %v826_v20, %v1842_v13  ;;  %v828_v18 = vmul.f32 %v826_v20, %v1851_v17  ;;  %s2716_s23 = sld [smem:[#allocation3 + $0xf]] }
  0xea   :  { %v844_v59 = vstv %s2513_s8  ;;  %v850_v1 = vstv %s2515_s25  ;;  %v856_v42 = vstv %s2525_s5  ;;  %v862_v21 = vstv %s2527_s0  ;;  %s2725_s24 = sld [smem:[#allocation5 + $0xf]]  ;;  %s2727_s8 = sld [smem:[#allocation7 + $0x78]] }
  0xeb   :  { %v775_v25 = vmax.f32 %v771_v37, %v773_v62  ;;  %v776_v10 = vmax.f32 %v772_v43, %v774_v63  ;;  %v831_v19 = vadd.f32 %v830_v0, %v827_v24  ;;  %v868_v32 = vstv %s2537_s26  ;;  %s2731_s25 = sld [smem:[#allocation7 + $0x79]]  ;;  %s2733_s5 = sld [smem:[#allocation7 + $0x7a]] }
  0xec   :  { %v832_v33 = vadd.f32 %v830_v0, %v828_v18  ;;  %v874_v52 = vstv %s2539_s27  ;;  %v880_v61 = vstv %s2541_s28  ;;  %v886_v11 = vstv %s2543_s29  ;;  %s2735_s0 = sld [smem:[#allocation7 + $0x7b]]  ;;  %s2737_s26 = sld [smem:[#allocation7 + $0x7c]] }
  0xed   :  { %v779_v26 = vmul.f32 %v778_v36, %v775_v25  ;;  %v780_v29 = vmul.f32 %v778_v36, %v776_v10  ;;  %v785_v40 = vmul.f32 %v784_v53, %v775_v25  ;;  %v786_v8 = vmul.f32 %v784_v53, %v776_v10  ;;  %s2755_s27 = sld [smem:[#allocation7 + $0x7d]]  ;;  %s2780_s28 = sld [smem:[#allocation7 + $0x7e]] }
  0xee   :  { %v791_v4 = vmul.f32 %v790_v31, %v775_v25  ;;  %v792_v5 = vmul.f32 %v790_v31, %v776_v10  ;;  %v797_v14 = vmul.f32 %v796_v28, %v775_v25  ;;  %v890_v22 = vstv %s2561_s30  ;;  %s2784_s29 = sld [smem:[#allocation7 + $0x7f]]  ;;  %s2786_s30 = sld [smem:[#allocation8]] }
  0xef   :  { %v781_v36 = vadd.f32 %v779_v26, %v2505_v23  ;;  %v782_v53 = vadd.f32 %v780_v29, %v2507_v30  ;;  %v787_v39 = vadd.f32 %v785_v40, %v2509_v55  ;;  %v798_v35 = vmul.f32 %v796_v28, %v776_v10 }
  0xf0   :  { %v788_v31 = vadd.f32 %v786_v8, %v2517_v45  ;;  %v793_v56 = vadd.f32 %v791_v4, %v2519_v9  ;;  %v794_v57 = vadd.f32 %v792_v5, %v2521_v51  ;;  %v799_v60 = vadd.f32 %v797_v14, %v2523_v41 }
  0xf1   :  { %v803_v23 = vmul.f32 %v802_v6, %v775_v25  ;;  %v804_v28 = vmul.f32 %v802_v6, %v776_v10  ;;  %v809_v30 = vmul.f32 %v808_v34, %v775_v25  ;;  %v810_v55 = vmul.f32 %v808_v34, %v776_v10 }
  0xf2   :  { %v815_v46 = vmul.f32 %v814_v15, %v775_v25  ;;  %v816_v45 = vmul.f32 %v814_v15, %v776_v10  ;;  %v821_v50 = vmul.f32 %v820_v38, %v775_v25  ;;  %v822_v9 = vmul.f32 %v820_v38, %v776_v10 }
  0xf3   :  { %v800_v51 = vadd.f32 %v798_v35, %v2545_v16  ;;  %v805_v41 = vadd.f32 %v803_v23, %v2547_v54  ;;  %v806_v27 = vadd.f32 %v804_v28, %v2549_v44  ;;  %v811_v6 = vadd.f32 %v809_v30, %v2551_v49 }
  0xf4   :  { %v812_v34 = vadd.f32 %v810_v55, %v2553_v7  ;;  %v817_v3 = vadd.f32 %v815_v46, %v2555_v12  ;;  %v818_v37 = vadd.f32 %v816_v45, %v2557_v47  ;;  %v823_v43 = vadd.f32 %v821_v50, %v2559_v58 }
  0xf5   :  { %v833_v15 = vmul.f32 0.01, %v831_v19  ;;  %v834_v16 = vmul.f32 0.01, %v832_v33  ;;  %v887_v54 = vmul.f32 %v886_v11, %v1842_v13  ;;  %v888_v44 = vmul.f32 %v886_v11, %v1851_v17 }
  0xf6   :  { %v824_v49 = vadd.f32 %v822_v9, %v2563_v2  ;;  %v898_v7 = vstv %s2588_s10  ;;  %v904_v12 = vstv %s2597_s11  ;;  %v910_v47 = vstv %s2599_s12  ;;  %s2792_s10 = sld [smem:[#allocation8 + $0x1]]  ;;  %s2794_s11 = sld [smem:[#allocation8 + $0x2]] }
  0xf7   :  { %v835_v38 = vmax.f32 %v831_v19, %v833_v15  ;;  %v836_v58 = vmax.f32 %v832_v33, %v834_v16  ;;  %v891_v20 = vadd.f32 %v890_v22, %v887_v54  ;;  %v916_v0 = vstv %s2606_s2  ;;  %s2804_s12 = sld [smem:[#allocation8 + $0x3]]  ;;  %s2806_s2 = sld [smem:[#allocation8 + $0x4]] }
  0xf8   :  { %v892_v62 = vadd.f32 %v890_v22, %v888_v44  ;;  %v922_v63 = vstv %s2608_s4  ;;  %v928_v24 = vstv %s2614_s13  ;;  %v934_v18 = vstv %s2616_s14  ;;  %s2815_s4 = sld [smem:[#allocation8 + $0x5]]  ;;  %s2817_s13 = sld [smem:[#allocation8 + $0x6]] }
  0xf9   :  { %v839_v25 = vmul.f32 %v838_v48, %v835_v38  ;;  %v840_v2 = vmul.f32 %v838_v48, %v836_v58  ;;  %v845_v10 = vmul.f32 %v844_v59, %v835_v38  ;;  %v846_v11 = vmul.f32 %v844_v59, %v836_v58  ;;  %s2827_s14 = sld [smem:[#allocation10]] }
  0xfa   :  { %v851_v19 = vmul.f32 %v850_v1, %v835_v38  ;;  %v852_v33 = vmul.f32 %v850_v1, %v836_v58  ;;  %v857_v26 = vmul.f32 %v856_v42, %v835_v38  ;;  %v940_v29 = vstv %s2626_s15  ;;  %s2829_s15 = sld [smem:[#allocation10 + $0x4]] }
  0xfb   :  { %v841_v48 = vadd.f32 %v839_v25, %v781_v36  ;;  %v842_v59 = vadd.f32 %v840_v2, %v782_v53  ;;  %v847_v40 = vadd.f32 %v845_v10, %v787_v39  ;;  %v858_v8 = vmul.f32 %v856_v42, %v836_v58 }
  0xfc   :  { %v848_v1 = vadd.f32 %v846_v11, %v788_v31  ;;  %v853_v4 = vadd.f32 %v851_v19, %v793_v56  ;;  %v854_v5 = vadd.f32 %v852_v33, %v794_v57  ;;  %v859_v14 = vadd.f32 %v857_v26, %v799_v60 }
  0xfd   :  { %v863_v22 = vmul.f32 %v862_v21, %v835_v38  ;;  %v864_v36 = vmul.f32 %v862_v21, %v836_v58  ;;  %v869_v53 = vmul.f32 %v868_v32, %v835_v38  ;;  %v870_v42 = vmul.f32 %v868_v32, %v836_v58 }
  0xfe   :  { %v875_v39 = vmul.f32 %v874_v52, %v835_v38  ;;  %v876_v35 = vmul.f32 %v874_v52, %v836_v58  ;;  %v881_v31 = vmul.f32 %v880_v61, %v835_v38  ;;  %v882_v56 = vmul.f32 %v880_v61, %v836_v58 }
  0xff   :  { %v860_v57 = vadd.f32 %v858_v8, %v800_v51  ;;  %v865_v60 = vadd.f32 %v863_v22, %v805_v41  ;;  %v866_v21 = vadd.f32 %v864_v36, %v806_v27  ;;  %v871_v23 = vadd.f32 %v869_v53, %v811_v6 }
 0x100   :  { %v872_v32 = vadd.f32 %v870_v42, %v812_v34  ;;  %v877_v28 = vadd.f32 %v875_v39, %v817_v3  ;;  %v878_v30 = vadd.f32 %v876_v35, %v818_v37  ;;  %v883_v55 = vadd.f32 %v881_v31, %v823_v43 }
 0x101   :  { %v893_v52 = vmul.f32 0.01, %v891_v20  ;;  %v894_v46 = vmul.f32 0.01, %v892_v62  ;;  %v946_v45 = vstv %s2654_s16  ;;  %v950_v61 = vstv %s2656_s6  ;;  %s2831_s16 = sld [smem:[#allocation8 + $0x7]]  ;;  %s2833_s6 = sld [smem:[#allocation10 + $0x8]] }
 0x102   :  { %v884_v50 = vadd.f32 %v882_v56, %v824_v49  ;;  %v947_v9 = vmul.f32 %v946_v45, %v1842_v13  ;;  %v948_v51 = vmul.f32 %v946_v45, %v1851_v17  ;;  %v958_v41 = vstv %s2665_s17  ;;  %s2843_s17 = sld [smem:[#allocation10 + $0xc]] }
 0x103   :  { %v895_v27 = vmax.f32 %v891_v20, %v893_v52  ;;  %v896_v6 = vmax.f32 %v892_v62, %v894_v46  ;;  %v964_v34 = vstv %s2669_s1  ;;  %v970_v3 = vstv %s2671_s3  ;;  %s2845_s1 = sld [smem:[#allocation10 + $0x10]]  ;;  %s2847_s3 = sld [smem:[#allocation10 + $0x14]] }
 0x104   :  { %v951_v37 = vadd.f32 %v950_v61, %v947_v9  ;;  %v952_v43 = vadd.f32 %v950_v61, %v948_v51  ;;  %v976_v15 = vstv %s2673_s18  ;;  %v982_v16 = vstv %s2675_s19  ;;  %s2849_s18 = sld [smem:[#allocation10 + $0x18]]  ;;  %s2916_s19 = sld [smem:[#allocation10 + $0x1c]] }
 0x105   :  { %v899_v54 = vmul.f32 %v898_v7, %v895_v27  ;;  %v900_v44 = vmul.f32 %v898_v7, %v896_v6  ;;  %v905_v49 = vmul.f32 %v904_v12, %v895_v27  ;;  %v906_v38 = vmul.f32 %v904_v12, %v896_v6 }
 0x106   :  { %v911_v58 = vmul.f32 %v910_v47, %v895_v27  ;;  %v912_v20 = vmul.f32 %v910_v47, %v896_v6  ;;  %v917_v62 = vmul.f32 %v916_v0, %v895_v27  ;;  %v988_v25 = vstv %s2693_s20  ;;  %s2930_s20 = sld [smem:[#allocation10 + $0x1]] }
 0x107   :  { %v901_v7 = vadd.f32 %v899_v54, %v841_v48  ;;  %v902_v12 = vadd.f32 %v900_v44, %v842_v59  ;;  %v907_v2 = vadd.f32 %v905_v49, %v847_v40  ;;  %v918_v10 = vmul.f32 %v916_v0, %v896_v6 }
 0x108   :  { %v908_v47 = vadd.f32 %v906_v38, %v848_v1  ;;  %v913_v11 = vadd.f32 %v911_v58, %v853_v4  ;;  %v914_v19 = vadd.f32 %v912_v20, %v854_v5  ;;  %v919_v33 = vadd.f32 %v917_v62, %v859_v14 }
 0x109   :  { %v923_v26 = vmul.f32 %v922_v63, %v895_v27  ;;  %v924_v48 = vmul.f32 %v922_v63, %v896_v6  ;;  %v929_v59 = vmul.f32 %v928_v24, %v895_v27  ;;  %v930_v0 = vmul.f32 %v928_v24, %v896_v6 }
 0x10a   :  { %v935_v40 = vmul.f32 %v934_v18, %v895_v27  ;;  %v936_v8 = vmul.f32 %v934_v18, %v896_v6  ;;  %v941_v1 = vmul.f32 %v940_v29, %v895_v27  ;;  %v942_v4 = vmul.f32 %v940_v29, %v896_v6 }
 0x10b   :  { %v2757_v63 = vadd.f32 %v918_v10, %v860_v57  ;;  %v2759_v5 = vadd.f32 %v923_v26, %v865_v60  ;;  %v2761_v24 = vadd.f32 %v924_v48, %v866_v21  ;;  %v2763_v14 = vadd.f32 %v929_v59, %v871_v23 }
 0x10c   :  { %v2765_v22 = vadd.f32 %v930_v0, %v872_v32  ;;  %v2767_v18 = vadd.f32 %v935_v40, %v877_v28  ;;  %v2769_v36 = vadd.f32 %v936_v8, %v878_v30  ;;  %v2771_v29 = vadd.f32 %v941_v1, %v883_v55 }
 0x10d   :  { %v2773_v53 = vadd.f32 %v942_v4, %v884_v50  ;;  %v953_v42 = vmul.f32 0.01, %v951_v37  ;;  %v954_v39 = vmul.f32 0.01, %v952_v43  ;;  %v994_v35 = vstv %s2704_s21  ;;  %s2938_s21 = sld [smem:[#allocation10 + $0x5]] }
 0x10e   :  { %v1000_v31 = vstv %s2714_s22  ;;  %v1006_v56 = vstv %s2716_s23  ;;  %v1010_v57 = vstv %s2725_s24  ;;  %v1018_v60 = vstv %s2727_s8  ;;  %s2940_s22 = sld [smem:[#allocation10 + $0x9]]  ;;  %s2969_s23 = sld [smem:[#allocation10 + $0xd]] }
 0x10f   :  { %v955_v21 = vmax.f32 %v951_v37, %v953_v42  ;;  %v956_v23 = vmax.f32 %v952_v43, %v954_v39  ;;  %v1007_v32 = vmul.f32 %v1006_v56, %v1842_v13  ;;  %v1024_v28 = vstv %s2731_s25  ;;  %s2971_s24 = sld [smem:[#allocation10 + $0x11]]  ;;  %s3000_s8 = sld [smem:[#allocation10 + $0x15]] }
 0x110   :  { %v1008_v30 = vmul.f32 %v1006_v56, %v1851_v17  ;;  %v1030_v55 = vstv %s2733_s5  ;;  %v1036_v52 = vstv %s2735_s0  ;;  %v1042_v46 = vstv %s2737_s26  ;;  %s3002_s25 = sld [smem:[#allocation10 + $0x19]]  ;;  %s3008_s5 = sld [smem:[#allocation11]] }
 0x111   :  { %v959_v13 = vmul.f32 %v958_v41, %v955_v21  ;;  %v960_v45 = vmul.f32 %v958_v41, %v956_v23  ;;  %v965_v61 = vmul.f32 %v964_v34, %v955_v21  ;;  %v966_v50 = vmul.f32 %v964_v34, %v956_v23  ;;  %s3016_s0 = sld [smem:[#allocation10 + $0x1d]]  ;;  %s3024_s26 = sld [smem:[#allocation10 + $0x2]] }
 0x112   :  { %v971_v17 = vmul.f32 %v970_v3, %v955_v21  ;;  %v972_v9 = vmul.f32 %v970_v3, %v956_v23  ;;  %v977_v51 = vmul.f32 %v976_v15, %v955_v21  ;;  %v1048_v27 = vstv %s2755_s27  ;;  %s3026_s27 = sld [smem:[#allocation10 + $0x6]] }
 0x113   :  { %v2819_v41 = vadd.f32 %v959_v13, %v901_v7  ;;  %v2821_v6 = vadd.f32 %v960_v45, %v902_v12  ;;  %v2823_v34 = vadd.f32 %v965_v61, %v907_v2  ;;  %v978_v37 = vmul.f32 %v976_v15, %v956_v23 }
 0x114   :  { %v968_v3 = vadd.f32 %v966_v50, %v908_v47  ;;  %v973_v43 = vadd.f32 %v971_v17, %v913_v11  ;;  %v974_v54 = vadd.f32 %v972_v9, %v914_v19  ;;  %v979_v44 = vadd.f32 %v977_v51, %v919_v33 }
 0x115   :  { %v983_v49 = vmul.f32 %v982_v16, %v955_v21  ;;  %v984_v38 = vmul.f32 %v982_v16, %v956_v23  ;;  %v989_v58 = vmul.f32 %v988_v25, %v955_v21  ;;  %v990_v15 = vmul.f32 %v988_v25, %v956_v23 }
 0x116   :  { %v995_v20 = vmul.f32 %v994_v35, %v955_v21  ;;  %v996_v62 = vmul.f32 %v994_v35, %v956_v23  ;;  %v1001_v7 = vmul.f32 %v1000_v31, %v955_v21  ;;  %v1002_v12 = vmul.f32 %v1000_v31, %v956_v23 }
 0x117   :  { %v980_v16 = vadd.f32 %v978_v37, %v2757_v63  ;;  %v985_v25 = vadd.f32 %v983_v49, %v2759_v5  ;;  %v986_v2 = vadd.f32 %v984_v38, %v2761_v24  ;;  %v991_v10 = vadd.f32 %v989_v58, %v2763_v14 }
 0x118   :  { %v992_v47 = vadd.f32 %v990_v15, %v2765_v22  ;;  %v997_v11 = vadd.f32 %v995_v20, %v2767_v18  ;;  %v998_v19 = vadd.f32 %v996_v62, %v2769_v36  ;;  %v1003_v33 = vadd.f32 %v1001_v7, %v2771_v29 }
 0x119   :  { %v1004_v26 = vadd.f32 %v1002_v12, %v2773_v53  ;;  %v1011_v48 = vadd.f32 %v1010_v57, %v1007_v32  ;;  %v1012_v59 = vadd.f32 %v1010_v57, %v1008_v30  ;;  %v1054_v0 = vstv %s2780_s28  ;;  %s3032_s28 = sld [smem:[#allocation11 + $0x1]] }
 0x11a   :  { %v1060_v40 = vstv %s2784_s29  ;;  %v1066_v8 = vstv %s2786_s30  ;;  %v1074_v1 = vstv %s2792_s10  ;;  %v1082_v4 = vstv %s2794_s11  ;;  %s3036_s29 = sld [smem:[#allocation10 + $0xa]]  ;;  %s3038_s30 = sld [smem:[#allocation10 + $0xe]] }
 0x11b   :  { %v1013_v63 = vmul.f32 0.01, %v1011_v48  ;;  %v1014_v5 = vmul.f32 0.01, %v1012_v59  ;;  %v1090_v24 = vstv %s2804_s12  ;;  %v1098_v14 = vstv %s2806_s2  ;;  %s3046_s10 = sld [smem:[#allocation10 + $0x12]]  ;;  %s3048_s11 = sld [smem:[#allocation10 + $0x16]] }
 0x11c   :  { %v1106_v22 = vstv %s2815_s4  ;;  %v1114_v18 = vstv %s2817_s13  ;;  %v1122_v36 = vstv %s2831_s16  ;;  %v1130_v29 = vstv %s2827_s14  ;;  %s3058_s12 = sld [smem:[#allocation10 + $0x3]]  ;;  %s3063_s2 = sld [smem:[#allocation10 + $0x1a]] }
 0x11d   :  { %v1015_v53 = vmax.f32 %v1011_v48, %v1013_v63  ;;  %v1016_v42 = vmax.f32 %v1012_v59, %v1014_v5  ;;  %v1134_v39 = vstv %s2829_s15  ;;  %v1140_v35 = vstv %s2833_s6  ;;  %s3065_s4 = sld [smem:[#allocation10 + $0x1e]]  ;;  %s3069_s13 = sld [smem:[#allocation11 + $0x2]] }
 0x11e   :  { %v1146_v31 = vstv %s2843_s17  ;;  %v1152_v56 = vstv %s2845_s1  ;;  %v1158_v57 = vstv %s2847_s3  ;;  %v1164_v21 = vstv %s2849_s18  ;;  %s3078_s14 = sld [smem:[#allocation10 + $0x7]]  ;;  %s3080_s15 = sld [smem:[#allocation10 + $0xb]] }
 0x11f   :  { %v1019_v23 = vmul.f32 %v1018_v60, %v1015_v53  ;;  %v1020_v32 = vmul.f32 %v1018_v60, %v1016_v42  ;;  %v1025_v30 = vmul.f32 %v1024_v28, %v1015_v53  ;;  %v1026_v13 = vmul.f32 %v1024_v28, %v1016_v42  ;;  %s3086_s16 = sld [smem:[#allocation10 + $0xf]]  ;;  %s3088_s6 = sld [smem:[#allocation10 + $0x13]] }
 0x120   :  { %v1031_v45 = vmul.f32 %v1030_v55, %v1015_v53  ;;  %v1032_v61 = vmul.f32 %v1030_v55, %v1016_v42  ;;  %v1037_v50 = vmul.f32 %v1036_v52, %v1015_v53  ;;  %v1038_v17 = vmul.f32 %v1036_v52, %v1016_v42  ;;  %s3109_s17 = sld [smem:[#allocation10 + $0x17]]  ;;  %s3111_s1 = sld [smem:[#allocation10 + $0x1b]] }
 0x121   :  { %v1021_v9 = vadd.f32 %v1019_v23, %v2819_v41  ;;  %v1022_v51 = vadd.f32 %v1020_v32, %v2821_v6  ;;  %v1027_v60 = vadd.f32 %v1025_v30, %v2823_v34  ;;  %v1028_v37 = vadd.f32 %v1026_v13, %v968_v3  ;;  %s3127_s3 = sld [smem:[#allocation10 + $0x1f]]  ;;  %s3131_s18 = sld [smem:[#allocation13]] }
 0x122   :  { %v1033_v49 = vadd.f32 %v1031_v45, %v973_v43  ;;  %v1034_v38 = vadd.f32 %v1032_v61, %v974_v54  ;;  %v1039_v58 = vadd.f32 %v1037_v50, %v979_v44  ;;  %v1040_v28 = vadd.f32 %v1038_v17, %v980_v16 }
 0x123   :  { %v1043_v15 = vmul.f32 %v1042_v46, %v1015_v53  ;;  %v1044_v20 = vmul.f32 %v1042_v46, %v1016_v42  ;;  %v1049_v55 = vmul.f32 %v1048_v27, %v1015_v53  ;;  %v1050_v62 = vmul.f32 %v1048_v27, %v1016_v42 }
 0x124   :  { %v1055_v52 = vmul.f32 %v1054_v0, %v1015_v53  ;;  %v1056_v7 = vmul.f32 %v1054_v0, %v1016_v42  ;;  %v1061_v41 = vmul.f32 %v1060_v40, %v1015_v53  ;;  %v1062_v12 = vmul.f32 %v1060_v40, %v1016_v42 }
 0x125   :  { %v1045_v6 = vadd.f32 %v1043_v15, %v985_v25  ;;  %v1046_v48 = vadd.f32 %v1044_v20, %v986_v2  ;;  %v1051_v34 = vadd.f32 %v1049_v55, %v991_v10  ;;  %v1052_v3 = vadd.f32 %v1050_v62, %v992_v47 }
 0x126   :  { %v1057_v43 = vadd.f32 %v1055_v52, %v997_v11  ;;  %v1058_v54 = vadd.f32 %v1056_v7, %v998_v19  ;;  %v1063_v44 = vadd.f32 %v1061_v41, %v1003_v33  ;;  %v1064_v16 = vadd.f32 %v1062_v12, %v1004_v26 }
 0x127   :  { %v1067_v59 = vadd.f32 %v1066_v8, %v1021_v9  ;;  %v1068_v63 = vadd.f32 %v1066_v8, %v1022_v51  ;;  %v1075_v5 = vadd.f32 %v1074_v1, %v1027_v60  ;;  %v1076_v46 = vadd.f32 %v1074_v1, %v1028_v37 }
 0x128   :  { %v1083_v23 = vadd.f32 %v1082_v4, %v1033_v49  ;;  %v1084_v32 = vadd.f32 %v1082_v4, %v1034_v38  ;;  %v1091_v30 = vadd.f32 %v1090_v24, %v1039_v58  ;;  %v1092_v27 = vadd.f32 %v1090_v24, %v1040_v28 }
 0x129   :  { %v1069_v13 = vmul.f32 0.01, %v1067_v59  ;;  %v1070_v0 = vmul.f32 0.01, %v1068_v63  ;;  %v1077_v53 = vmul.f32 0.01, %v1075_v5  ;;  %v1099_v40 = vadd.f32 %v1098_v14, %v1045_v6 }
 0x12a   :  { %v1078_v25 = vmul.f32 0.01, %v1076_v46  ;;  %v1085_v2 = vmul.f32 0.01, %v1083_v23  ;;  %v1086_v10 = vmul.f32 0.01, %v1084_v32  ;;  %v1100_v47 = vadd.f32 %v1098_v14, %v1046_v48 }
 0x12b   :  { %v2904_v11 = vmax.f32 %v1067_v59, %v1069_v13  ;;  %v2906_v19 = vmax.f32 %v1068_v63, %v1070_v0  ;;  %v2908_v33 = vmax.f32 %v1075_v5, %v1077_v53  ;;  %v1093_v26 = vmul.f32 0.01, %v1091_v30 }
 0x12c   :  { %v2910_v8 = vmax.f32 %v1076_v46, %v1078_v25  ;;  %v2912_v1 = vmax.f32 %v1083_v23, %v1085_v2  ;;  %v2914_v4 = vmax.f32 %v1084_v32, %v1086_v10  ;;  %v1094_v24 = vmul.f32 0.01, %v1092_v27 }
 0x12d   :  { %v2918_v14 = vmax.f32 %v1091_v30, %v1093_v26  ;;  %v1101_v42 = vmul.f32 0.01, %v1099_v40  ;;  %v1102_v45 = vmul.f32 0.01, %v1100_v47  ;;  %v1107_v61 = vadd.f32 %v1106_v22, %v1051_v34 }
 0x12e   :  { %v2922_v50 = vmax.f32 %v1092_v27, %v1094_v24  ;;  %v1108_v17 = vadd.f32 %v1106_v22, %v1052_v3  ;;  %v1115_v9 = vadd.f32 %v1114_v18, %v1057_v43  ;;  %v1116_v51 = vadd.f32 %v1114_v18, %v1058_v54 }
 0x12f   :  { %v2932_v60 = vmax.f32 %v1099_v40, %v1101_v42  ;;  %v2934_v37 = vmax.f32 %v1100_v47, %v1102_v45  ;;  %v1109_v49 = vmul.f32 0.01, %v1107_v61  ;;  %v1123_v38 = vadd.f32 %v1122_v36, %v1063_v44 }
 0x130   :  { %v1110_v22 = vmul.f32 0.01, %v1108_v17  ;;  %v1117_v58 = vmul.f32 0.01, %v1115_v9  ;;  %v1118_v28 = vmul.f32 0.01, %v1116_v51  ;;  %v1124_v18 = vadd.f32 %v1122_v36, %v1064_v16 }
 0x131   :  { %v2944_v15 = vmax.f32 %v1107_v61, %v1109_v49  ;;  %v1125_v20 = vmul.f32 0.01, %v1123_v38  ;;  %v1131_v55 = vmul.f32 %v1130_v29, %v2904_v11  ;;  %v1132_v62 = vmul.f32 %v1130_v29, %v2906_v19 }
 0x132   :  { %v2952_v52 = vmax.f32 %v1108_v17, %v1110_v22  ;;  %v2954_v7 = vmax.f32 %v1115_v9, %v1117_v58  ;;  %v2956_v41 = vmax.f32 %v1116_v51, %v1118_v28  ;;  %v1126_v36 = vmul.f32 0.01, %v1124_v18 }
 0x133   :  { %v2958_v12 = vmax.f32 %v1123_v38, %v1125_v20  ;;  %v1135_v6 = vmul.f32 %v1134_v39, %v2908_v33  ;;  %v1136_v29 = vmul.f32 %v1134_v39, %v2910_v8  ;;  %v1141_v48 = vmul.f32 %v1140_v35, %v2912_v1 }
 0x134   :  { %v2973_v34 = vmax.f32 %v1124_v18, %v1126_v36  ;;  %v1142_v3 = vmul.f32 %v1140_v35, %v2914_v4  ;;  %v1147_v43 = vmul.f32 %v1146_v31, %v2918_v14  ;;  %v1170_v54 = vstv %s2916_s19  ;;  %s3133_s19 = sld [smem:[#allocation13 + $0x1]] }
 0x135   :  { %v1137_v44 = vadd.f32 %v1135_v6, %v1131_v55  ;;  %v1138_v39 = vadd.f32 %v1136_v29, %v1132_v62  ;;  %v1148_v16 = vmul.f32 %v1146_v31, %v2922_v50  ;;  %v1153_v59 = vmul.f32 %v1152_v56, %v2932_v60 }
 0x136   :  { %v1154_v63 = vmul.f32 %v1152_v56, %v2934_v37  ;;  %v1159_v35 = vmul.f32 %v1158_v57, %v2944_v15  ;;  %v1160_v5 = vmul.f32 %v1158_v57, %v2952_v52  ;;  %v1165_v46 = vmul.f32 %v1164_v21, %v2954_v7 }
 0x137   :  { %v1143_v31 = vadd.f32 %v1141_v48, %v1137_v44  ;;  %v1144_v23 = vadd.f32 %v1142_v3, %v1138_v39  ;;  %v1166_v32 = vmul.f32 %v1164_v21, %v2956_v41  ;;  %v1171_v56 = vmul.f32 %v1170_v54, %v2958_v12 }
 0x138   :  { %v1172_v30 = vmul.f32 %v1170_v54, %v2973_v34  ;;  %v1184_v57 = vstv %s2930_s20  ;;  %v1188_v27 = vstv %s2938_s21  ;;  %v1194_v13 = vstv %s2940_s22  ;;  %s3150_s20 = sld [smem:[#allocation11 + $0x3]]  ;;  %s3152_s21 = sld [smem:[#allocation13 + $0x2]] }
 0x139   :  { %v1149_v0 = vadd.f32 %v1147_v43, %v1143_v31  ;;  %v1150_v53 = vadd.f32 %v1148_v16, %v1144_v23  ;;  %v1185_v40 = vmul.f32 %v1184_v57, %v2904_v11  ;;  %v1186_v25 = vmul.f32 %v1184_v57, %v2906_v19  ;;  %s1591_s22 = sld [smem:[#allocation13 + $0x3]] }
 0x13a   :  { %v1189_v21 = vmul.f32 %v1188_v27, %v2908_v33  ;;  %v1190_v2 = vmul.f32 %v1188_v27, %v2910_v8  ;;  %v1195_v10 = vmul.f32 %v1194_v13, %v2912_v1  ;;  %v1196_v47 = vmul.f32 %v1194_v13, %v2914_v4 }
 0x13b   :  { %v1155_v26 = vadd.f32 %v1153_v59, %v1149_v0  ;;  %v1156_v24 = vadd.f32 %v1154_v63, %v1150_v53  ;;  %v1200_v42 = vstv %s2969_s23  ;;  %v1206_v45 = vstv %s2971_s24 }
 0x13c   :  { %v1191_v61 = vadd.f32 %v1189_v21, %v1185_v40  ;;  %v1192_v17 = vadd.f32 %v1190_v2, %v1186_v25  ;;  %v1201_v9 = vmul.f32 %v1200_v42, %v2918_v14  ;;  %v1202_v51 = vmul.f32 %v1200_v42, %v2922_v50 }
 0x13d   :  { %v1161_v49 = vadd.f32 %v1159_v35, %v1155_v26  ;;  %v1162_v38 = vadd.f32 %v1160_v5, %v1156_v24  ;;  %v1207_v22 = vmul.f32 %v1206_v45, %v2932_v60  ;;  %v1208_v58 = vmul.f32 %v1206_v45, %v2934_v37 }
 0x13e   :  { %v1197_v28 = vadd.f32 %v1195_v10, %v1191_v61  ;;  %v1198_v18 = vadd.f32 %v1196_v47, %v1192_v17  ;;  %v1212_v20 = vstv %s3000_s8  ;;  %v1218_v55 = vstv %s3002_s25 }
 0x13f   :  { %v1167_v62 = vadd.f32 %v1165_v46, %v1161_v49  ;;  %v1168_v36 = vadd.f32 %v1166_v32, %v1162_v38  ;;  %v1176_v6 = vstv %s3008_s5  ;;  %v1213_v3 = vmul.f32 %v1212_v20, %v2944_v15 }
 0x140   :  { %v1203_v29 = vadd.f32 %v1201_v9, %v1197_v28  ;;  %v1204_v48 = vadd.f32 %v1202_v51, %v1198_v18  ;;  %v1214_v43 = vmul.f32 %v1212_v20, %v2952_v52  ;;  %v1219_v44 = vmul.f32 %v1218_v55, %v2954_v7 }
 0x141   :  { %v1173_v54 = vadd.f32 %v1171_v56, %v1167_v62  ;;  %v1220_v39 = vmul.f32 %v1218_v55, %v2956_v41  ;;  %v1224_v16 = vstv %s3016_s0  ;;  %v1174_v59 = vadd.f32 %v1172_v30, %v1168_v36 }
 0x142   :  { %v1209_v63 = vadd.f32 %v1207_v22, %v1203_v29  ;;  %v1210_v35 = vadd.f32 %v1208_v58, %v1204_v48  ;;  %v1225_v5 = vmul.f32 %v1224_v16, %v2958_v12  ;;  %v1226_v31 = vmul.f32 %v1224_v16, %v2973_v34 }
 0x143   :  { %v3051_v46 = vadd.f32 %v1176_v6, %v1173_v54  ;;  %v1238_v23 = vstv %s3024_s26  ;;  %v1242_v32 = vstv %s3026_s27  ;;  %v1230_v30 = vstv %s3032_s28 }
 0x144   :  { %v1215_v56 = vadd.f32 %v1213_v3, %v1209_v63  ;;  %v1216_v57 = vadd.f32 %v1214_v43, %v1210_v35  ;;  %v1239_v27 = vmul.f32 %v1238_v23, %v2904_v11  ;;  %v1240_v13 = vmul.f32 %v1238_v23, %v2906_v19 }
 0x145   :  { %v1243_v0 = vmul.f32 %v1242_v32, %v2908_v33  ;;  %v1244_v53 = vmul.f32 %v1242_v32, %v2910_v8  ;;  %v1248_v21 = vstv %s3036_s29  ;;  %v1254_v2 = vstv %s3038_s30 }
 0x146   :  { %v1221_v40 = vadd.f32 %v1219_v44, %v1215_v56  ;;  %v1222_v25 = vadd.f32 %v1220_v39, %v1216_v57  ;;  %v3071_v10 = vadd.f32 %v1176_v6, %v1174_v59  ;;  %v3074_v47 = vmul.f32 0.01, %v3051_v46 }
 0x147   :  { %v1245_v26 = vadd.f32 %v1243_v0, %v1239_v27  ;;  %v1246_v24 = vadd.f32 %v1244_v53, %v1240_v13  ;;  %v1249_v61 = vmul.f32 %v1248_v21, %v2912_v1  ;;  %v1250_v17 = vmul.f32 %v1248_v21, %v2914_v4 }
 0x148   :  { %v1227_v42 = vadd.f32 %v1225_v5, %v1221_v40  ;;  %v1228_v45 = vadd.f32 %v1226_v31, %v1222_v25  ;;  %v1255_v9 = vmul.f32 %v1254_v2, %v2918_v14  ;;  %v1256_v51 = vmul.f32 %v1254_v2, %v2922_v50 }
 0x149   :  { %v1260_v49 = vstv %s3046_s10  ;;  %v1266_v38 = vstv %s3048_s11  ;;  %v1251_v28 = vadd.f32 %v1249_v61, %v1245_v26  ;;  %v1252_v18 = vadd.f32 %v1250_v17, %v1246_v24 }
 0x14a   :  { %v3090_v22 = vadd.f32 %v1230_v30, %v1227_v42  ;;  %v3092_v58 = vadd.f32 %v1230_v30, %v1228_v45  ;;  %v3095_v20 = vmul.f32 0.01, %v3071_v10  ;;  %v1181_v55 = vmax.f32 %v3051_v46, %v3074_v47 }
 0x14b   :  { %v1261_v62 = vmul.f32 %v1260_v49, %v2932_v60  ;;  %v1262_v36 = vmul.f32 %v1260_v49, %v2934_v37  ;;  %v1257_v6 = vadd.f32 %v1255_v9, %v1251_v28  ;;  %v1258_v29 = vadd.f32 %v1256_v51, %v1252_v18 }
 0x14c   :  { %v1267_v48 = vmul.f32 %v1266_v38, %v2944_v15  ;;  %v1268_v3 = vmul.f32 %v1266_v38, %v2952_v52  ;;  %v3104_v43 = vmul.f32 0.01, %v3090_v22  ;;  %v1272_v54 = vstv %s3063_s2 }
 0x14d   :  { %v1278_v44 = vstv %s3065_s4  ;;  %v1292_v39 = vstv %s3058_s12  ;;  %v3114_v16 = vmul.f32 0.01, %v3092_v58  ;;  %v1263_v59 = vadd.f32 %v1261_v62, %v1257_v6 }
 0x14e   :  { %v1264_v63 = vadd.f32 %v1262_v36, %v1258_v29  ;;  %v1284_v35 = vstv %s3069_s13  ;;  %v1273_v5 = vmul.f32 %v1272_v54, %v2954_v7  ;;  %v1274_v31 = vmul.f32 %v1272_v54, %v2956_v41 }
 0x14f   :  { %v1279_v23 = vmul.f32 %v1278_v44, %v2958_v12  ;;  %v1280_v32 = vmul.f32 %v1278_v44, %v2973_v34  ;;  %v1269_v56 = vadd.f32 %v1267_v48, %v1263_v59  ;;  %v1293_v27 = vmul.f32 %v1292_v39, %v2904_v11 }
 0x150   :  { %v1270_v57 = vadd.f32 %v1268_v3, %v1264_v63  ;;  %v1294_v13 = vmul.f32 %v1292_v39, %v2906_v19  ;;  %v1296_v30 = vstv %s3078_s14  ;;  %v1302_v0 = vstv %s3080_s15 }
 0x151   :  { %v1308_v53 = vstv %s3086_s16  ;;  %v1314_v40 = vstv %s3088_s6  ;;  %v1275_v25 = vadd.f32 %v1273_v5, %v1269_v56  ;;  %v1297_v2 = vmul.f32 %v1296_v30, %v2908_v33 }
 0x152   :  { %v1276_v21 = vadd.f32 %v1274_v31, %v1270_v57  ;;  %v1298_v26 = vmul.f32 %v1296_v30, %v2910_v8  ;;  %v1303_v11 = vmul.f32 %v1302_v0, %v2912_v1  ;;  %v1304_v19 = vmul.f32 %v1302_v0, %v2914_v4 }
 0x153   :  { %v1309_v24 = vmul.f32 %v1308_v53, %v2918_v14  ;;  %v1310_v42 = vmul.f32 %v1308_v53, %v2922_v50  ;;  %v1281_v45 = vadd.f32 %v1279_v23, %v1275_v25  ;;  %v1299_v17 = vadd.f32 %v1297_v2, %v1293_v27 }
 0x154   :  { %v1282_v61 = vadd.f32 %v1280_v32, %v1276_v21  ;;  %v1300_v9 = vadd.f32 %v1298_v26, %v1294_v13  ;;  %v1315_v33 = vmul.f32 %v1314_v40, %v2932_v60  ;;  %v1316_v8 = vmul.f32 %v1314_v40, %v2934_v37 }
 0x155   :  { %v1320_v51 = vstv %s3109_s17  ;;  %v1326_v49 = vstv %s3111_s1  ;;  %v1285_v38 = vadd.f32 %v1284_v35, %v1281_v45  ;;  %v1305_v1 = vadd.f32 %v1303_v11, %v1299_v17 }
 0x156   :  { %v1286_v28 = vadd.f32 %v1284_v35, %v1282_v61  ;;  %v1306_v18 = vadd.f32 %v1304_v19, %v1300_v9  ;;  %v1182_v4 = vmax.f32 %v3071_v10, %v3095_v20  ;;  %v1235_v14 = vmax.f32 %v3090_v22, %v3104_v43 }
 0x157   :  { %v1236_v50 = vmax.f32 %v3092_v58, %v3114_v16  ;;  %v1321_v60 = vmul.f32 %v1320_v51, %v2944_v15  ;;  %v1311_v37 = vadd.f32 %v1309_v24, %v1305_v1  ;;  %v1322_v36 = vmul.f32 %v1320_v51, %v2952_v52 }
 0x158   :  { %v1312_v62 = vadd.f32 %v1310_v42, %v1306_v18  ;;  %v1327_v10 = vmul.f32 %v1326_v49, %v2954_v7  ;;  %v1287_v20 = vmul.f32 0.01, %v1285_v38  ;;  %v1288_v6 = vmul.f32 0.01, %v1286_v28 }
 0x159   :  { %v1328_v22 = vmul.f32 %v1326_v49, %v2956_v41  ;;  %v1332_v29 = vstv %s3127_s3  ;;  %v1317_v48 = vadd.f32 %v1315_v33, %v1311_v37  ;;  %v1346_v58 = vstv %s3131_s18 }
 0x15a   :  { %v1318_v3 = vadd.f32 %v1316_v8, %v1312_v62  ;;  %v1350_v15 = vstv %s3133_s19  ;;  %v1333_v44 = vmul.f32 %v1332_v29, %v2958_v12  ;;  %v1334_v39 = vmul.f32 %v1332_v29, %v2973_v34 }
 0x15b   :  { %v1323_v43 = vadd.f32 %v1321_v60, %v1317_v48  ;;  %v1347_v52 = vmul.f32 %v1346_v58, %v1181_v55  ;;  %v1348_v7 = vmul.f32 %v1346_v58, %v1182_v4  ;;  %v1351_v16 = vmul.f32 %v1350_v15, %v1235_v14 }
 0x15c   :  { %v1324_v54 = vadd.f32 %v1322_v36, %v1318_v3  ;;  %v1352_v41 = vmul.f32 %v1350_v15, %v1236_v50  ;;  %v1289_v59 = vmax.f32 %v1285_v38, %v1287_v20  ;;  %v1290_v63 = vmax.f32 %v1286_v28, %v1288_v6 }
 0x15d   :  { %v1329_v35 = vadd.f32 %v1327_v10, %v1323_v43  ;;  %v1338_v31 = vstv %s3150_s20  ;;  %v1356_v23 = vstv %s3152_s21  ;;  %v1353_v57 = vadd.f32 %v1351_v16, %v1347_v52 }
 0x15e   :  { %v1330_v5 = vadd.f32 %v1328_v22, %v1324_v54  ;;  %v1354_v12 = vadd.f32 %v1352_v41, %v1348_v7  ;;  %v1357_v13 = vmul.f32 %v1356_v23, %v1289_v59  ;;  %v1358_v30 = vmul.f32 %v1356_v23, %v1290_v63 }
 0x15f   :  { %v1335_v32 = vadd.f32 %v1333_v44, %v1329_v35  ;;  %v1362_v55 = vstv %s1591_s22  ;;  %v1368_v26 = vstv %s3183_s7 }
 0x160   :  { %v1336_v56 = vadd.f32 %v1334_v39, %v1330_v5  ;;  %v1359_v40 = vadd.f32 %v1357_v13, %v1353_v57  ;;  %v1360_v25 = vadd.f32 %v1358_v30, %v1354_v12 }
 0x161   :  { %v1339_v27 = vadd.f32 %v1338_v31, %v1335_v32 }
 0x162   :  { %v1340_v34 = vadd.f32 %v1338_v31, %v1336_v56 }
 0x163   :  { %v1341_v46 = vmul.f32 0.01, %v1339_v27 }
 0x164   :  { %v1342_v47 = vmul.f32 0.01, %v1340_v34 }
 0x165   :  { %v1343_v0 = vmax.f32 %v1339_v27, %v1341_v46 }
 0x166   :  { %v1344_v53 = vmax.f32 %v1340_v34, %v1342_v47 }
 0x167   :  { %v1363_v21 = vmul.f32 %v1362_v55, %v1343_v0 }
 0x168   :  { %v1364_v2 = vmul.f32 %v1362_v55, %v1344_v53 }
 0x169   :  { %v1365_v11 = vadd.f32 %v1363_v21, %v1359_v40 }
 0x16a   :  { %v1366_v19 = vadd.f32 %v1364_v2, %v1360_v25 }
 0x16b   :  { %v1369_v24 = vadd.f32 %v1368_v26, %v1365_v11 }
 0x16c   :  { %v1370_v42 = vadd.f32 %v1368_v26, %v1366_v19 }
 0x16d   :  { %v1371_v45 = vsub.f32 0.0, %v1369_v24 }
 0x16e   :  { %v1372_v61 = vsub.f32 0.0, %v1370_v42 }
 0x16f   :  { %v1373_v17 = vmul.f32 1.442695, %v1371_v45 }
 0x170   :  { %v1375_v9 = vmul.f32 1.442695, %v1372_v61 }
 0x171   :  { %1603 = vpow2.f32 %v1373_v17 }
 0x172   :  { %1605 = vpow2.f32 %v1375_v9 }
 0x17b   :  { %v1604_v33 = vpop.eup %1603 }
 0x17c   :  { %v1606_v8 = vpop.eup %1605  ;;  %v1377_v51 = vadd.f32 1.0, %v1604_v33 }
 0x17d   :  { %v1378_v49 = vadd.f32 1.0, %v1606_v8 }
 0x17e   :  { %1607 = vrcp.f32 %v1377_v51 }
 0x17f   :  { %1609 = vrcp.f32 %v1378_v49 }
 0x188   :  { %v1608_v38 = vpop.eup %1607 }
 0x189   :  { %v1610_v28 = vpop.eup %1609  ;;  %1381 = vst [vmem:[%s3185_s9] sm:$0xff] %v1608_v38 }
 0x18a   :  { %1382 = vst [vmem:[%s3185_s9 + $0x8] sm:$0xff] %v1610_v28 }
 0x18b   :  { %1387 = vsyncpa [#allocation4], 1 }
 0x18c   :  { %1388 = vsyncpa [#allocation6], 1 }
 0x18d   :  { %1389 = vsyncpa [#allocation9], 1 }
 0x18e   :  { %1390 = vsyncpa [#allocation12], 1 }

</bundles_post_ra>
